<compile_context>
chip_gen: v6e
topology: v6e:2x2x1
jax: 0.10.0
libtpu: 0.0.40
codegen_flags: <defaults>
</compile_context>

<pallas_src>
import math

import jax
import jax.numpy as jnp
from jax.experimental import pallas as pl
from jax.experimental.pallas import tpu as pltpu  # noqa: F401  (TPU backend)

# ------------------------- config (small shapes) -------------------------
BATCH       = 2
OBS_DIM     = 16
ACTION_DIM  = 8
HIDDEN      = 32
NUM_LAYERS  = 2
HORIZON     = 8
NUM_HEADS   = 4
HEAD_DIM    = HIDDEN // NUM_HEADS
FFN_DIM     = 2048            # nn.TransformerEncoderLayer default dim_feedforward
FFN_CHUNK   = 512             # FFN processed in 4 chunks to bound vreg live range
LN_EPS      = 1e-5
LOG_STD_BOUNDS = (-5.0, 2.0)
N_ROWS      = BATCH * HORIZON

F32  = jnp.float32
BF16 = jnp.bfloat16

assert ACTION_DIM == HEAD_DIM, "w8 slab packs head-dim and action-dim weights at the same width"

# ------------------- packed-parameter slab row offsets -------------------
# w8 slab: width HEAD_DIM (=ACTION_DIM).  32-row weight blocks first (aligned),
# then 1-row biases.
def _w8_wq(l, h): return HIDDEN * (l * NUM_HEADS + h)
def _w8_wk(l, h): return HIDDEN * (NUM_LAYERS * NUM_HEADS + l * NUM_HEADS + h)
_W8_WMU  = HIDDEN * (2 * NUM_LAYERS * NUM_HEADS)
_W8_WLS  = _W8_WMU + HIDDEN
_W8_B0   = _W8_WLS + HIDDEN
def _w8_bq(l, h): return _W8_B0 + l * NUM_HEADS + h
def _w8_bk(l, h): return _W8_B0 + NUM_LAYERS * NUM_HEADS + l * NUM_HEADS + h
_W8_BMU  = _W8_B0 + 2 * NUM_LAYERS * NUM_HEADS
_W8_BLS  = _W8_BMU + 1
W8_ROWS  = _W8_BLS + 1

# w32 slab: width HIDDEN.  32-row W_vo blocks, then we / pe_tiled, then 1-row biases.
def _w32_wvo(l, h): return HIDDEN * (l * NUM_HEADS + h)
_W32_WE  = HIDDEN * (NUM_LAYERS * NUM_HEADS)
_W32_PE  = _W32_WE + OBS_DIM
_W32_BE  = _W32_PE + N_ROWS
def _w32_bvo(l, h): return _W32_BE + 1 + l * (NUM_HEADS + 6) + h
def _w32_bo(l):     return _W32_BE + 1 + l * (NUM_HEADS + 6) + NUM_HEADS
def _w32_ln1g(l):   return _w32_bo(l) + 1
def _w32_ln1b(l):   return _w32_bo(l) + 2
def _w32_ln2g(l):   return _w32_bo(l) + 3
def _w32_ln2b(l):   return _w32_bo(l) + 4
def _w32_b2(l):     return _w32_bo(l) + 5
W32_ROWS = _W32_BE + 1 + NUM_LAYERS * (NUM_HEADS + 6)


# ------------------------------ fused kernel ------------------------------
def _fused_actor_kernel(obs_ref, eps_ref, w8_ref, w32_ref, w1_ref, b1_ref, w2_ref,
                        out_ref):
    n = N_ROWS
    h = HIDDEN
    a = ACTION_DIM

    # ---- obs embedding + positional encoding on flattened (N=B*T, H) rows ----
    we  = w32_ref[_W32_WE:_W32_WE + OBS_DIM, :]
    be  = w32_ref[_W32_BE:_W32_BE + 1, :]
    emb = jnp.dot(obs_ref[...], we, preferred_element_type=F32) + be      # (B, H)

    # Batch broadcast (row r belongs to batch r // HORIZON): pure VPU selects.
    rows = jax.lax.broadcasted_iota(jnp.int32, (n, h), 0)
    x = jnp.broadcast_to(emb[0:1, :], (n, h))
    for b in range(1, BATCH):
        x = jnp.where(rows >= b * HORIZON,
                      jnp.broadcast_to(emb[b:b + 1, :], (n, h)), x)
    x = x + w32_ref[_W32_PE:_W32_PE + n, :]                               # + PE (tiled)

    # Additive attention mask built in-kernel: rows attend only within the same
    # horizon index (this reproduces batch_first=False attention over B).
    ri = jax.lax.broadcasted_iota(jnp.int32, (n, n), 0)
    ci = jax.lax.broadcasted_iota(jnp.int32, (n, n), 1)
    if HORIZON & (HORIZON - 1) == 0:
        ti = jnp.bitwise_and(ri, HORIZON - 1)
        tj = jnp.bitwise_and(ci, HORIZON - 1)
    else:
        ti = ri % HORIZON
        tj = ci % HORIZON
    mask = jnp.where(ti == tj, jnp.float32(0.0), jnp.float32(-1e30))       # keep f32!

    for l in range(NUM_LAYERS):                                            # static unroll
        # --- multi-head self-attention (out_proj folded into value weights) ---
        attn = jnp.zeros((n, h), F32)
        for hh in range(NUM_HEADS):
            wq = w8_ref[_w8_wq(l, hh):_w8_wq(l, hh) + HIDDEN, :]           # scale folded in
            bq = w8_ref[_w8_bq(l, hh):_w8_bq(l, hh) + 1, :]
            wk = w8_ref[_w8_wk(l, hh):_w8_wk(l, hh) + HIDDEN, :]
            bk = w8_ref[_w8_bk(l, hh):_w8_bk(l, hh) + 1, :]
            qh = jnp.dot(x, wq, preferred_element_type=F32) + bq           # (N, hd)
            kh = jnp.dot(x, wk, preferred_element_type=F32) + bk           # (N, hd)
            s = jnp.dot(qh, kh.T, preferred_element_type=F32) + mask       # (N, N)
            s = s - jnp.max(s, axis=-1, keepdims=True)
            p = jnp.exp(s)
            p = p / jnp.sum(p, axis=-1, keepdims=True)
            wvo = w32_ref[_w32_wvo(l, hh):_w32_wvo(l, hh) + HIDDEN, :]     # W_v_h @ W_o_h
            bvo = w32_ref[_w32_bvo(l, hh):_w32_bvo(l, hh) + 1, :]
            vproj = jnp.dot(x, wvo, preferred_element_type=F32) + bvo      # (N, H)
            attn = attn + jnp.dot(p, vproj, preferred_element_type=F32)
        attn = attn + w32_ref[_w32_bo(l):_w32_bo(l) + 1, :]

        # residual + LayerNorm1 (post-norm)
        y = x + attn
        m1 = jnp.mean(y, axis=-1, keepdims=True)
        v1 = jnp.mean(jnp.square(y - m1), axis=-1, keepdims=True)
        y = ((y - m1) * jax.lax.rsqrt(v1 + LN_EPS)
             * w32_ref[_w32_ln1g(l):_w32_ln1g(l) + 1, :]
             + w32_ref[_w32_ln1b(l):_w32_ln1b(l) + 1, :])

        # --- feed-forward (ReLU), chunked over FFN_DIM; bf16 weights, f32 acc ---
        ybf = y.astype(BF16)
        ff = jnp.zeros((n, h), F32)
        for c in range(FFN_DIM // FFN_CHUNK):
            c0 = c * FFN_CHUNK
            h1 = jnp.dot(ybf, w1_ref[l, :, c0:c0 + FFN_CHUNK],
                         preferred_element_type=F32)
            h1 = jnp.maximum(h1 + b1_ref[l, :, c0:c0 + FFN_CHUNK], 0.0)
            ff = ff + jnp.dot(h1.astype(BF16), w2_ref[l, c0:c0 + FFN_CHUNK, :],
                              preferred_element_type=F32)
        ff = ff + w32_ref[_w32_b2(l):_w32_b2(l) + 1, :]

        # residual + LayerNorm2
        z = y + ff
        m2 = jnp.mean(z, axis=-1, keepdims=True)
        v2 = jnp.mean(jnp.square(z - m2), axis=-1, keepdims=True)
        x = ((z - m2) * jax.lax.rsqrt(v2 + LN_EPS)
             * w32_ref[_w32_ln2g(l):_w32_ln2g(l) + 1, :]
             + w32_ref[_w32_ln2b(l):_w32_ln2b(l) + 1, :])

    # ---- policy heads ----
    wmu = w8_ref[_W8_WMU:_W8_WMU + HIDDEN, :]
    bmu = w8_ref[_W8_BMU:_W8_BMU + 1, :]
    wls = w8_ref[_W8_WLS:_W8_WLS + HIDDEN, :]
    bls = w8_ref[_W8_BLS:_W8_BLS + 1, :]
    mu = jnp.dot(x, wmu, preferred_element_type=F32) + bmu
    ls = jnp.dot(x, wls, preferred_element_type=F32) + bls
    ls = jnp.tanh(ls)
    ls = LOG_STD_BOUNDS[0] + 0.5 * (LOG_STD_BOUNDS[1] - LOG_STD_BOUNDS[0]) * (ls + 1.0)
    std = jnp.exp(ls)

    e = eps_ref[...]                                            # (N, A) ~ N(0,1)
    xs = mu + std * e                                           # pre-tanh sample
    pi = jnp.tanh(xs)                                           # SquashedNormal.rsample()

    # Normal.log_prob(xs) with loc=mu, scale=std   (xs - mu = std * e)
    normal_lp = -0.5 * e * e - ls - 0.5 * math.log(2.0 * math.pi)
    # TanhTransform.log_abs_det_jacobian(xs, pi) = 2*(log2 - xs - softplus(-2*xs))
    zneg = -2.0 * xs
    softplus_z = jnp.maximum(zneg, 0.0) + jnp.log1p(jnp.exp(-jnp.abs(zneg)))
    jac = 2.0 * (math.log(2.0) - xs - softplus_z)
    lp = jnp.sum(normal_lp - jac, axis=-1, keepdims=True)       # (N, 1)

    # packed output: [tanh(mu) | pi | log_pi] -> single writeback DMA
    out_ref[:, 0:a]           = jnp.tanh(mu)
    out_ref[:, a:2 * a]       = pi
    out_ref[:, 2 * a:2 * a + 1] = lp


# --------------------------- pallas_call wrapper ---------------------------
def _fused_forward(obs, eps_flat, p):
    # No grid: every operand is a whole-array VMEM block (~1 MiB total), no
    # pipelining needed; single invocation, single TensorCore.
    return pl.pallas_call(
        _fused_actor_kernel,
        out_shape=jax.ShapeDtypeStruct((N_ROWS, 2 * ACTION_DIM + 1), F32),
    )(obs, eps_flat, p["w8"], p["w32"], p["w1"], p["b1"], p["w2"])


# ------------------------------- params ----------------------------------
def init_params(key):
    """Create raw parameters and pack them into the DMA-friendly slabs."""
    def dense(k, fan_in, fan_out):
        kw, kb = jax.random.split(k)
        w = jax.random.normal(kw, (fan_in, fan_out), F32) / math.sqrt(fan_in)
        b = jax.random.normal(kb, (1, fan_out), F32) * 0.01
        return w, b

    keys = jax.random.split(key, 4 + NUM_LAYERS)
    we, be = dense(keys[0], OBS_DIM, HIDDEN)
    pe = jax.random.normal(keys[1], (HORIZON, HIDDEN), F32) * 0.1
    wmu, bmu = dense(keys[2], HIDDEN, ACTION_DIM)
    wls, bls = dense(keys[3], HIDDEN, ACTION_DIM)

    w8  = jnp.zeros((W8_ROWS, HEAD_DIM), F32)
    w32 = jnp.zeros((W32_ROWS, HIDDEN), F32)
    w1  = jnp.zeros((NUM_LAYERS, HIDDEN, FFN_DIM), BF16)
    w2  = jnp.zeros((NUM_LAYERS, FFN_DIM, HIDDEN), BF16)
    b1  = jnp.zeros((NUM_LAYERS, 1, FFN_DIM), F32)

    scale = 1.0 / math.sqrt(HEAD_DIM)

    # embedding / PE (tiled over the fixed batch) / output heads
    w32 = w32.at[_W32_WE:_W32_WE + OBS_DIM].set(we)
    w32 = w32.at[_W32_BE].set(be[0])
    w32 = w32.at[_W32_PE:_W32_PE + N_ROWS].set(jnp.tile(pe, (BATCH, 1)))
    w8 = w8.at[_W8_WMU:_W8_WMU + HIDDEN].set(wmu)
    w8 = w8.at[_W8_WLS:_W8_WLS + HIDDEN].set(wls)
    w8 = w8.at[_W8_BMU].set(bmu[0])
    w8 = w8.at[_W8_BLS].set(bls[0])

    for l in range(NUM_LAYERS):
        lk = jax.random.split(keys[4 + l], 4)
        wqkv, bqkv = dense(lk[0], HIDDEN, 3 * HIDDEN)
        wo,   bo   = dense(lk[1], HIDDEN, HIDDEN)
        w1l,  b1l  = dense(lk[2], HIDDEN, FFN_DIM)
        w2l,  b2l  = dense(lk[3], FFN_DIM, HIDDEN)

        wq_all = wqkv[:, 0:HIDDEN]
        wk_all = wqkv[:, HIDDEN:2 * HIDDEN]
        wv_all = wqkv[:, 2 * HIDDEN:3 * HIDDEN]
        bq_all = bqkv[0, 0:HIDDEN]
        bk_all = bqkv[0, HIDDEN:2 * HIDDEN]
        bv_all = bqkv[0, 2 * HIDDEN:3 * HIDDEN]

        for hh in range(NUM_HEADS):
            sl = slice(hh * HEAD_DIM, (hh + 1) * HEAD_DIM)
            # fold the 1/sqrt(hd) score scale into W_q / b_q
            w8 = w8.at[_w8_wq(l, hh):_w8_wq(l, hh) + HIDDEN].set(wq_all[:, sl] * scale)
            w8 = w8.at[_w8_bq(l, hh)].set(bq_all[sl] * scale)
            w8 = w8.at[_w8_wk(l, hh):_w8_wk(l, hh) + HIDDEN].set(wk_all[:, sl])
            w8 = w8.at[_w8_bk(l, hh)].set(bk_all[sl])
            # fold out_proj into per-head value weights: W_vo_h = W_v_h @ W_o_h
            w32 = w32.at[_w32_wvo(l, hh):_w32_wvo(l, hh) + HIDDEN].set(wv_all[:, sl] @ wo[sl, :])
            w32 = w32.at[_w32_bvo(l, hh)].set(bv_all[sl] @ wo[sl, :])

        w32 = w32.at[_w32_bo(l)].set(bo[0])
        w32 = w32.at[_w32_ln1g(l)].set(jnp.ones((HIDDEN,), F32))
        w32 = w32.at[_w32_ln1b(l)].set(jnp.zeros((HIDDEN,), F32))
        w32 = w32.at[_w32_ln2g(l)].set(jnp.ones((HIDDEN,), F32))
        w32 = w32.at[_w32_ln2b(l)].set(jnp.zeros((HIDDEN,), F32))
        w32 = w32.at[_w32_b2(l)].set(b2l[0])
        w1 = w1.at[l].set(w1l.astype(BF16))
        w2 = w2.at[l].set(w2l.astype(BF16))
        b1 = b1.at[l].set(b1l)

    return {"w8": w8, "w32": w32, "w1": w1, "w2": w2, "b1": b1}


# ------------------------------- forward ----------------------------------
def transformer_actor_forward(obs, params, eps):
    """obs: (B, obs_dim); eps: (B, horizon, action_dim) ~ N(0,1) for rsample."""
    if obs.ndim == 1:
        obs = obs[None, :]
    assert obs.shape == (BATCH, OBS_DIM), "fused kernel is specialized to the packed batch size"
    b, t, a = BATCH, HORIZON, ACTION_DIM

    eps_flat = eps.reshape(b * t, a)                             # free (contiguous) reshape
    out = _fused_forward(obs, eps_flat, params)                  # (N, 2A+1)
    mean = out[:, 0:a].reshape(b, t, a)                          # policy.mean
    pi   = out[:, a:2 * a].reshape(b, t, a)                      # rsample
    lp   = out[:, 2 * a:2 * a + 1].reshape(b, t, 1)              # log_prob sum
    return mean, pi, lp


if __name__ == "__main__":
    key = jax.random.PRNGKey(0)
    kp, ko, ke = jax.random.split(key, 3)
    params = init_params(kp)
    obs = jax.random.normal(ko, (BATCH, OBS_DIM), F32)
    eps = jax.random.normal(ke, (BATCH, HORIZON, ACTION_DIM), F32)

    mean, pi, log_pi = jax.jit(transformer_actor_forward)(obs, params, eps)
    jax.block_until_ready((mean, pi, log_pi))

    assert mean.shape == (BATCH, HORIZON, ACTION_DIM)
    assert pi.shape == (BATCH, HORIZON, ACTION_DIM)
    assert log_pi.shape == (BATCH, HORIZON, 1)
    assert bool(jnp.all(jnp.isfinite(mean))) and bool(jnp.all(jnp.isfinite(pi)))
    assert bool(jnp.all(jnp.isfinite(log_pi)))
    assert bool(jnp.all(jnp.abs(pi) <= 1.0)) and bool(jnp.all(jnp.abs(mean) <= 1.0))
    print("KERNEL_OK")
</pallas_src>

<mosaic_0001>
module attributes {stable_mosaic.version = 11 : i64} {
  func.func @_fused_actor_kernel(%arg0: memref<2x16xf32, #tpu.memory_space<vmem>>, %arg1: memref<16x8xf32, #tpu.memory_space<vmem>>, %arg2: memref<594x8xf32, #tpu.memory_space<vmem>>, %arg3: memref<309x32xf32, #tpu.memory_space<vmem>>, %arg4: memref<2x32x2048xbf16, #tpu.memory_space<vmem>>, %arg5: memref<2x1x2048xf32, #tpu.memory_space<vmem>>, %arg6: memref<2x2048x32xbf16, #tpu.memory_space<vmem>>, %arg7: memref<16x17xf32, #tpu.memory_space<vmem>>) attributes {dimension_semantics = [], scalar_prefetch = 0 : i64, scratch_operands = 0 : i64, tpu.core_type = #tpu.core_type<tc>} {
    %c256 = arith.constant 256 : index
    %c0 = arith.constant 0 : index
    %0 = vector.load %arg3[%c256, %c0] : memref<309x32xf32, #tpu.memory_space<vmem>>, vector<16x32xf32>
    %c288 = arith.constant 288 : index
    %c0_0 = arith.constant 0 : index
    %1 = vector.load %arg3[%c288, %c0_0] : memref<309x32xf32, #tpu.memory_space<vmem>>, vector<1x32xf32>
    %c0_1 = arith.constant 0 : index
    %c0_2 = arith.constant 0 : index
    %2 = vector.load %arg0[%c0_1, %c0_2] : memref<2x16xf32, #tpu.memory_space<vmem>>, vector<2x16xf32>
    %cst = arith.constant dense<0.000000e+00> : vector<2x32xf32>
    %3 = tpu.matmul %2, %0, %cst {dimension_numbers = #tpu.dot_dimension_numbers<[1], [0], [0], [1], [0, 0, 1, 1], [], []>} : vector<2x16xf32>, vector<16x32xf32>, vector<2x32xf32> -> vector<2x32xf32>
    %4 = vector.broadcast %1 : vector<1x32xf32> to vector<2x32xf32>
    %5 = arith.addf %3, %4 : vector<2x32xf32>
    %6 = tpu.iota {dimensions = array<i32: 0>} : vector<16x32xi32>
    %7 = vector.extract_strided_slice %5 {offsets = [0, 0], sizes = [1, 32], strides = [1, 1]} : vector<2x32xf32> to vector<1x32xf32>
    %8 = vector.shape_cast %7 : vector<1x32xf32> to vector<1x32xf32>
    %9 = vector.broadcast %8 : vector<1x32xf32> to vector<16x32xf32>
    %c8_i32 = arith.constant 8 : i32
    %10 = vector.broadcast %c8_i32 : i32 to vector<16x32xi32>
    %11 = arith.cmpi sge, %6, %10 : vector<16x32xi32>
    %12 = vector.extract_strided_slice %5 {offsets = [1, 0], sizes = [1, 32], strides = [1, 1]} : vector<2x32xf32> to vector<1x32xf32>
    %13 = vector.shape_cast %12 : vector<1x32xf32> to vector<1x32xf32>
    %14 = vector.broadcast %13 : vector<1x32xf32> to vector<16x32xf32>
    %15 = arith.select %11, %14, %9 : vector<16x32xi1>, vector<16x32xf32>
    %c272 = arith.constant 272 : index
    %c0_3 = arith.constant 0 : index
    %16 = vector.load %arg3[%c272, %c0_3] : memref<309x32xf32, #tpu.memory_space<vmem>>, vector<16x32xf32>
    %17 = arith.addf %15, %16 : vector<16x32xf32>
    %18 = tpu.iota {dimensions = array<i32: 0>} : vector<16x16xi32>
    %19 = tpu.iota {dimensions = array<i32: 1>} : vector<16x16xi32>
    %c7_i32 = arith.constant 7 : i32
    %20 = vector.broadcast %c7_i32 : i32 to vector<16x16xi32>
    %21 = arith.andi %18, %20 : vector<16x16xi32>
    %c7_i32_4 = arith.constant 7 : i32
    %22 = vector.broadcast %c7_i32_4 : i32 to vector<16x16xi32>
    %23 = arith.andi %19, %22 : vector<16x16xi32>
    %24 = arith.cmpi eq, %21, %23 : vector<16x16xi32>
    %cst_5 = arith.constant 0.000000e+00 : f32
    %cst_6 = arith.constant -1.000000e+30 : f32
    %25 = vector.broadcast %cst_5 : f32 to vector<16x16xf32>
    %26 = vector.broadcast %cst_6 : f32 to vector<16x16xf32>
    %27 = arith.select %24, %25, %26 : vector<16x16xi1>, vector<16x16xf32>
    %cst_7 = arith.constant 0.000000e+00 : f32
    %28 = vector.broadcast %cst_7 : f32 to vector<16x32xf32>
    %c0_8 = arith.constant 0 : index
    %c0_9 = arith.constant 0 : index
    %29 = vector.load %arg2[%c0_8, %c0_9] : memref<594x8xf32, #tpu.memory_space<vmem>>, vector<32x8xf32>
    %c576 = arith.constant 576 : index
    %c0_10 = arith.constant 0 : index
    %30 = vector.load %arg2[%c576, %c0_10] : memref<594x8xf32, #tpu.memory_space<vmem>>, vector<1x8xf32>
    %c256_11 = arith.constant 256 : index
    %c0_12 = arith.constant 0 : index
    %31 = vector.load %arg2[%c256_11, %c0_12] : memref<594x8xf32, #tpu.memory_space<vmem>>, vector<32x8xf32>
    %c584 = arith.constant 584 : index
    %c0_13 = arith.constant 0 : index
    %32 = vector.load %arg2[%c584, %c0_13] : memref<594x8xf32, #tpu.memory_space<vmem>>, vector<1x8xf32>
    %cst_14 = arith.constant dense<0.000000e+00> : vector<16x8xf32>
    %33 = tpu.matmul %17, %29, %cst_14 {dimension_numbers = #tpu.dot_dimension_numbers<[1], [0], [0], [1], [0, 0, 1, 1], [], []>} : vector<16x32xf32>, vector<32x8xf32>, vector<16x8xf32> -> vector<16x8xf32>
    %34 = vector.broadcast %30 : vector<1x8xf32> to vector<16x8xf32>
    %35 = arith.addf %33, %34 : vector<16x8xf32>
    %cst_15 = arith.constant dense<0.000000e+00> : vector<16x8xf32>
    %36 = tpu.matmul %17, %31, %cst_15 {dimension_numbers = #tpu.dot_dimension_numbers<[1], [0], [0], [1], [0, 0, 1, 1], [], []>} : vector<16x32xf32>, vector<32x8xf32>, vector<16x8xf32> -> vector<16x8xf32>
    %37 = vector.broadcast %32 : vector<1x8xf32> to vector<16x8xf32>
    %38 = arith.addf %36, %37 : vector<16x8xf32>
    %39 = tpu.transpose %38, [1, 0] : vector<16x8xf32> -> vector<8x16xf32>
    %cst_16 = arith.constant dense<0.000000e+00> : vector<16x16xf32>
    %40 = tpu.matmul %35, %39, %cst_16 {dimension_numbers = #tpu.dot_dimension_numbers<[1], [0], [0], [1], [0, 0, 1, 1], [], []>} : vector<16x8xf32>, vector<8x16xf32>, vector<16x16xf32> -> vector<16x16xf32>
    %41 = arith.addf %40, %27 : vector<16x16xf32>
    %cst_17 = arith.constant dense<0xFF800000> : vector<16xf32>
    %42 = vector.multi_reduction <maximumf>, %41, %cst_17 [1] : vector<16x16xf32> to vector<16xf32>
    %43 = vector.shape_cast %42 : vector<16xf32> to vector<16x1xf32>
    %44 = vector.broadcast %43 : vector<16x1xf32> to vector<16x16xf32>
    %45 = arith.subf %41, %44 : vector<16x16xf32>
    %46 = math.exp %45 : vector<16x16xf32>
    %cst_18 = arith.constant dense<0.000000e+00> : vector<16xf32>
    %47 = vector.multi_reduction <add>, %46, %cst_18 [1] : vector<16x16xf32> to vector<16xf32>
    %48 = vector.shape_cast %47 : vector<16xf32> to vector<16x1xf32>
    %49 = vector.broadcast %48 : vector<16x1xf32> to vector<16x16xf32>
    %50 = arith.divf %46, %49 : vector<16x16xf32>
    %c0_19 = arith.constant 0 : index
    %c0_20 = arith.constant 0 : index
    %51 = vector.load %arg3[%c0_19, %c0_20] : memref<309x32xf32, #tpu.memory_space<vmem>>, vector<32x32xf32>
    %c289 = arith.constant 289 : index
    %c0_21 = arith.constant 0 : index
    %52 = vector.load %arg3[%c289, %c0_21] : memref<309x32xf32, #tpu.memory_space<vmem>>, vector<1x32xf32>
    %cst_22 = arith.constant dense<0.000000e+00> : vector<16x32xf32>
    %53 = tpu.matmul %17, %51, %cst_22 {dimension_numbers = #tpu.dot_dimension_numbers<[1], [0], [0], [1], [0, 0, 1, 1], [], []>} : vector<16x32xf32>, vector<32x32xf32>, vector<16x32xf32> -> vector<16x32xf32>
    %54 = vector.broadcast %52 : vector<1x32xf32> to vector<16x32xf32>
    %55 = arith.addf %53, %54 : vector<16x32xf32>
    %cst_23 = arith.constant dense<0.000000e+00> : vector<16x32xf32>
    %56 = tpu.matmul %50, %55, %cst_23 {dimension_numbers = #tpu.dot_dimension_numbers<[1], [0], [0], [1], [0, 0, 1, 1], [], []>} : vector<16x16xf32>, vector<16x32xf32>, vector<16x32xf32> -> vector<16x32xf32>
    %57 = arith.addf %28, %56 : vector<16x32xf32>
    %c32 = arith.constant 32 : index
    %c0_24 = arith.constant 0 : index
    %58 = vector.load %arg2[%c32, %c0_24] : memref<594x8xf32, #tpu.memory_space<vmem>>, vector<32x8xf32>
    %c577 = arith.constant 577 : index
    %c0_25 = arith.constant 0 : index
    %59 = vector.load %arg2[%c577, %c0_25] : memref<594x8xf32, #tpu.memory_space<vmem>>, vector<1x8xf32>
    %c288_26 = arith.constant 288 : index
    %c0_27 = arith.constant 0 : index
    %60 = vector.load %arg2[%c288_26, %c0_27] : memref<594x8xf32, #tpu.memory_space<vmem>>, vector<32x8xf32>
    %c585 = arith.constant 585 : index
    %c0_28 = arith.constant 0 : index
    %61 = vector.load %arg2[%c585, %c0_28] : memref<594x8xf32, #tpu.memory_space<vmem>>, vector<1x8xf32>
    %cst_29 = arith.constant dense<0.000000e+00> : vector<16x8xf32>
    %62 = tpu.matmul %17, %58, %cst_29 {dimension_numbers = #tpu.dot_dimension_numbers<[1], [0], [0], [1], [0, 0, 1, 1], [], []>} : vector<16x32xf32>, vector<32x8xf32>, vector<16x8xf32> -> vector<16x8xf32>
    %63 = vector.broadcast %59 : vector<1x8xf32> to vector<16x8xf32>
    %64 = arith.addf %62, %63 : vector<16x8xf32>
    %cst_30 = arith.constant dense<0.000000e+00> : vector<16x8xf32>
    %65 = tpu.matmul %17, %60, %cst_30 {dimension_numbers = #tpu.dot_dimension_numbers<[1], [0], [0], [1], [0, 0, 1, 1], [], []>} : vector<16x32xf32>, vector<32x8xf32>, vector<16x8xf32> -> vector<16x8xf32>
    %66 = vector.broadcast %61 : vector<1x8xf32> to vector<16x8xf32>
    %67 = arith.addf %65, %66 : vector<16x8xf32>
    %68 = tpu.transpose %67, [1, 0] : vector<16x8xf32> -> vector<8x16xf32>
    %cst_31 = arith.constant dense<0.000000e+00> : vector<16x16xf32>
    %69 = tpu.matmul %64, %68, %cst_31 {dimension_numbers = #tpu.dot_dimension_numbers<[1], [0], [0], [1], [0, 0, 1, 1], [], []>} : vector<16x8xf32>, vector<8x16xf32>, vector<16x16xf32> -> vector<16x16xf32>
    %70 = arith.addf %69, %27 : vector<16x16xf32>
    %cst_32 = arith.constant dense<0xFF800000> : vector<16xf32>
    %71 = vector.multi_reduction <maximumf>, %70, %cst_32 [1] : vector<16x16xf32> to vector<16xf32>
    %72 = vector.shape_cast %71 : vector<16xf32> to vector<16x1xf32>
    %73 = vector.broadcast %72 : vector<16x1xf32> to vector<16x16xf32>
    %74 = arith.subf %70, %73 : vector<16x16xf32>
    %75 = math.exp %74 : vector<16x16xf32>
    %cst_33 = arith.constant dense<0.000000e+00> : vector<16xf32>
    %76 = vector.multi_reduction <add>, %75, %cst_33 [1] : vector<16x16xf32> to vector<16xf32>
    %77 = vector.shape_cast %76 : vector<16xf32> to vector<16x1xf32>
    %78 = vector.broadcast %77 : vector<16x1xf32> to vector<16x16xf32>
    %79 = arith.divf %75, %78 : vector<16x16xf32>
    %c32_34 = arith.constant 32 : index
    %c0_35 = arith.constant 0 : index
    %80 = vector.load %arg3[%c32_34, %c0_35] : memref<309x32xf32, #tpu.memory_space<vmem>>, vector<32x32xf32>
    %c290 = arith.constant 290 : index
    %c0_36 = arith.constant 0 : index
    %81 = vector.load %arg3[%c290, %c0_36] : memref<309x32xf32, #tpu.memory_space<vmem>>, vector<1x32xf32>
    %cst_37 = arith.constant dense<0.000000e+00> : vector<16x32xf32>
    %82 = tpu.matmul %17, %80, %cst_37 {dimension_numbers = #tpu.dot_dimension_numbers<[1], [0], [0], [1], [0, 0, 1, 1], [], []>} : vector<16x32xf32>, vector<32x32xf32>, vector<16x32xf32> -> vector<16x32xf32>
    %83 = vector.broadcast %81 : vector<1x32xf32> to vector<16x32xf32>
    %84 = arith.addf %82, %83 : vector<16x32xf32>
    %cst_38 = arith.constant dense<0.000000e+00> : vector<16x32xf32>
    %85 = tpu.matmul %79, %84, %cst_38 {dimension_numbers = #tpu.dot_dimension_numbers<[1], [0], [0], [1], [0, 0, 1, 1], [], []>} : vector<16x16xf32>, vector<16x32xf32>, vector<16x32xf32> -> vector<16x32xf32>
    %86 = arith.addf %57, %85 : vector<16x32xf32>
    %c64 = arith.constant 64 : index
    %c0_39 = arith.constant 0 : index
    %87 = vector.load %arg2[%c64, %c0_39] : memref<594x8xf32, #tpu.memory_space<vmem>>, vector<32x8xf32>
    %c578 = arith.constant 578 : index
    %c0_40 = arith.constant 0 : index
    %88 = vector.load %arg2[%c578, %c0_40] : memref<594x8xf32, #tpu.memory_space<vmem>>, vector<1x8xf32>
    %c320 = arith.constant 320 : index
    %c0_41 = arith.constant 0 : index
    %89 = vector.load %arg2[%c320, %c0_41] : memref<594x8xf32, #tpu.memory_space<vmem>>, vector<32x8xf32>
    %c586 = arith.constant 586 : index
    %c0_42 = arith.constant 0 : index
    %90 = vector.load %arg2[%c586, %c0_42] : memref<594x8xf32, #tpu.memory_space<vmem>>, vector<1x8xf32>
    %cst_43 = arith.constant dense<0.000000e+00> : vector<16x8xf32>
    %91 = tpu.matmul %17, %87, %cst_43 {dimension_numbers = #tpu.dot_dimension_numbers<[1], [0], [0], [1], [0, 0, 1, 1], [], []>} : vector<16x32xf32>, vector<32x8xf32>, vector<16x8xf32> -> vector<16x8xf32>
    %92 = vector.broadcast %88 : vector<1x8xf32> to vector<16x8xf32>
    %93 = arith.addf %91, %92 : vector<16x8xf32>
    %cst_44 = arith.constant dense<0.000000e+00> : vector<16x8xf32>
    %94 = tpu.matmul %17, %89, %cst_44 {dimension_numbers = #tpu.dot_dimension_numbers<[1], [0], [0], [1], [0, 0, 1, 1], [], []>} : vector<16x32xf32>, vector<32x8xf32>, vector<16x8xf32> -> vector<16x8xf32>
    %95 = vector.broadcast %90 : vector<1x8xf32> to vector<16x8xf32>
    %96 = arith.addf %94, %95 : vector<16x8xf32>
    %97 = tpu.transpose %96, [1, 0] : vector<16x8xf32> -> vector<8x16xf32>
    %cst_45 = arith.constant dense<0.000000e+00> : vector<16x16xf32>
    %98 = tpu.matmul %93, %97, %cst_45 {dimension_numbers = #tpu.dot_dimension_numbers<[1], [0], [0], [1], [0, 0, 1, 1], [], []>} : vector<16x8xf32>, vector<8x16xf32>, vector<16x16xf32> -> vector<16x16xf32>
    %99 = arith.addf %98, %27 : vector<16x16xf32>
    %cst_46 = arith.constant dense<0xFF800000> : vector<16xf32>
    %100 = vector.multi_reduction <maximumf>, %99, %cst_46 [1] : vector<16x16xf32> to vector<16xf32>
    %101 = vector.shape_cast %100 : vector<16xf32> to vector<16x1xf32>
    %102 = vector.broadcast %101 : vector<16x1xf32> to vector<16x16xf32>
    %103 = arith.subf %99, %102 : vector<16x16xf32>
    %104 = math.exp %103 : vector<16x16xf32>
    %cst_47 = arith.constant dense<0.000000e+00> : vector<16xf32>
    %105 = vector.multi_reduction <add>, %104, %cst_47 [1] : vector<16x16xf32> to vector<16xf32>
    %106 = vector.shape_cast %105 : vector<16xf32> to vector<16x1xf32>
    %107 = vector.broadcast %106 : vector<16x1xf32> to vector<16x16xf32>
    %108 = arith.divf %104, %107 : vector<16x16xf32>
    %c64_48 = arith.constant 64 : index
    %c0_49 = arith.constant 0 : index
    %109 = vector.load %arg3[%c64_48, %c0_49] : memref<309x32xf32, #tpu.memory_space<vmem>>, vector<32x32xf32>
    %c291 = arith.constant 291 : index
    %c0_50 = arith.constant 0 : index
    %110 = vector.load %arg3[%c291, %c0_50] : memref<309x32xf32, #tpu.memory_space<vmem>>, vector<1x32xf32>
    %cst_51 = arith.constant dense<0.000000e+00> : vector<16x32xf32>
    %111 = tpu.matmul %17, %109, %cst_51 {dimension_numbers = #tpu.dot_dimension_numbers<[1], [0], [0], [1], [0, 0, 1, 1], [], []>} : vector<16x32xf32>, vector<32x32xf32>, vector<16x32xf32> -> vector<16x32xf32>
    %112 = vector.broadcast %110 : vector<1x32xf32> to vector<16x32xf32>
    %113 = arith.addf %111, %112 : vector<16x32xf32>
    %cst_52 = arith.constant dense<0.000000e+00> : vector<16x32xf32>
    %114 = tpu.matmul %108, %113, %cst_52 {dimension_numbers = #tpu.dot_dimension_numbers<[1], [0], [0], [1], [0, 0, 1, 1], [], []>} : vector<16x16xf32>, vector<16x32xf32>, vector<16x32xf32> -> vector<16x32xf32>
    %115 = arith.addf %86, %114 : vector<16x32xf32>
    %c96 = arith.constant 96 : index
    %c0_53 = arith.constant 0 : index
    %116 = vector.load %arg2[%c96, %c0_53] : memref<594x8xf32, #tpu.memory_space<vmem>>, vector<32x8xf32>
    %c579 = arith.constant 579 : index
    %c0_54 = arith.constant 0 : index
    %117 = vector.load %arg2[%c579, %c0_54] : memref<594x8xf32, #tpu.memory_space<vmem>>, vector<1x8xf32>
    %c352 = arith.constant 352 : index
    %c0_55 = arith.constant 0 : index
    %118 = vector.load %arg2[%c352, %c0_55] : memref<594x8xf32, #tpu.memory_space<vmem>>, vector<32x8xf32>
    %c587 = arith.constant 587 : index
    %c0_56 = arith.constant 0 : index
    %119 = vector.load %arg2[%c587, %c0_56] : memref<594x8xf32, #tpu.memory_space<vmem>>, vector<1x8xf32>
    %cst_57 = arith.constant dense<0.000000e+00> : vector<16x8xf32>
    %120 = tpu.matmul %17, %116, %cst_57 {dimension_numbers = #tpu.dot_dimension_numbers<[1], [0], [0], [1], [0, 0, 1, 1], [], []>} : vector<16x32xf32>, vector<32x8xf32>, vector<16x8xf32> -> vector<16x8xf32>
    %121 = vector.broadcast %117 : vector<1x8xf32> to vector<16x8xf32>
    %122 = arith.addf %120, %121 : vector<16x8xf32>
    %cst_58 = arith.constant dense<0.000000e+00> : vector<16x8xf32>
    %123 = tpu.matmul %17, %118, %cst_58 {dimension_numbers = #tpu.dot_dimension_numbers<[1], [0], [0], [1], [0, 0, 1, 1], [], []>} : vector<16x32xf32>, vector<32x8xf32>, vector<16x8xf32> -> vector<16x8xf32>
    %124 = vector.broadcast %119 : vector<1x8xf32> to vector<16x8xf32>
    %125 = arith.addf %123, %124 : vector<16x8xf32>
    %126 = tpu.transpose %125, [1, 0] : vector<16x8xf32> -> vector<8x16xf32>
    %cst_59 = arith.constant dense<0.000000e+00> : vector<16x16xf32>
    %127 = tpu.matmul %122, %126, %cst_59 {dimension_numbers = #tpu.dot_dimension_numbers<[1], [0], [0], [1], [0, 0, 1, 1], [], []>} : vector<16x8xf32>, vector<8x16xf32>, vector<16x16xf32> -> vector<16x16xf32>
    %128 = arith.addf %127, %27 : vector<16x16xf32>
    %cst_60 = arith.constant dense<0xFF800000> : vector<16xf32>
    %129 = vector.multi_reduction <maximumf>, %128, %cst_60 [1] : vector<16x16xf32> to vector<16xf32>
    %130 = vector.shape_cast %129 : vector<16xf32> to vector<16x1xf32>
    %131 = vector.broadcast %130 : vector<16x1xf32> to vector<16x16xf32>
    %132 = arith.subf %128, %131 : vector<16x16xf32>
    %133 = math.exp %132 : vector<16x16xf32>
    %cst_61 = arith.constant dense<0.000000e+00> : vector<16xf32>
    %134 = vector.multi_reduction <add>, %133, %cst_61 [1] : vector<16x16xf32> to vector<16xf32>
    %135 = vector.shape_cast %134 : vector<16xf32> to vector<16x1xf32>
    %136 = vector.broadcast %135 : vector<16x1xf32> to vector<16x16xf32>
    %137 = arith.divf %133, %136 : vector<16x16xf32>
    %c96_62 = arith.constant 96 : index
    %c0_63 = arith.constant 0 : index
    %138 = vector.load %arg3[%c96_62, %c0_63] : memref<309x32xf32, #tpu.memory_space<vmem>>, vector<32x32xf32>
    %c292 = arith.constant 292 : index
    %c0_64 = arith.constant 0 : index
    %139 = vector.load %arg3[%c292, %c0_64] : memref<309x32xf32, #tpu.memory_space<vmem>>, vector<1x32xf32>
    %cst_65 = arith.constant dense<0.000000e+00> : vector<16x32xf32>
    %140 = tpu.matmul %17, %138, %cst_65 {dimension_numbers = #tpu.dot_dimension_numbers<[1], [0], [0], [1], [0, 0, 1, 1], [], []>} : vector<16x32xf32>, vector<32x32xf32>, vector<16x32xf32> -> vector<16x32xf32>
    %141 = vector.broadcast %139 : vector<1x32xf32> to vector<16x32xf32>
    %142 = arith.addf %140, %141 : vector<16x32xf32>
    %cst_66 = arith.constant dense<0.000000e+00> : vector<16x32xf32>
    %143 = tpu.matmul %137, %142, %cst_66 {dimension_numbers = #tpu.dot_dimension_numbers<[1], [0], [0], [1], [0, 0, 1, 1], [], []>} : vector<16x16xf32>, vector<16x32xf32>, vector<16x32xf32> -> vector<16x32xf32>
    %144 = arith.addf %115, %143 : vector<16x32xf32>
    %c293 = arith.constant 293 : index
    %c0_67 = arith.constant 0 : index
    %145 = vector.load %arg3[%c293, %c0_67] : memref<309x32xf32, #tpu.memory_space<vmem>>, vector<1x32xf32>
    %146 = vector.broadcast %145 : vector<1x32xf32> to vector<16x32xf32>
    %147 = arith.addf %144, %146 : vector<16x32xf32>
    %148 = arith.addf %17, %147 : vector<16x32xf32>
    %cst_68 = arith.constant dense<0.000000e+00> : vector<16xf32>
    %149 = vector.multi_reduction <add>, %148, %cst_68 [1] : vector<16x32xf32> to vector<16xf32>
    %150 = vector.shape_cast %149 : vector<16xf32> to vector<16x1xf32>
    %cst_69 = arith.constant 3.200000e+01 : f32
    %151 = vector.broadcast %cst_69 : f32 to vector<16x1xf32>
    %152 = arith.divf %150, %151 : vector<16x1xf32>
    %153 = vector.broadcast %152 : vector<16x1xf32> to vector<16x32xf32>
    %154 = arith.subf %148, %153 : vector<16x32xf32>
    %155 = arith.mulf %154, %154 : vector<16x32xf32>
    %cst_70 = arith.constant dense<0.000000e+00> : vector<16xf32>
    %156 = vector.multi_reduction <add>, %155, %cst_70 [1] : vector<16x32xf32> to vector<16xf32>
    %157 = vector.shape_cast %156 : vector<16xf32> to vector<16x1xf32>
    %cst_71 = arith.constant 3.200000e+01 : f32
    %158 = vector.broadcast %cst_71 : f32 to vector<16x1xf32>
    %159 = arith.divf %157, %158 : vector<16x1xf32>
    %160 = vector.broadcast %152 : vector<16x1xf32> to vector<16x32xf32>
    %161 = arith.subf %148, %160 : vector<16x32xf32>
    %cst_72 = arith.constant 9.99999974E-6 : f32
    %162 = vector.broadcast %cst_72 : f32 to vector<16x1xf32>
    %163 = arith.addf %159, %162 : vector<16x1xf32>
    %164 = math.rsqrt %163 : vector<16x1xf32>
    %165 = vector.broadcast %164 : vector<16x1xf32> to vector<16x32xf32>
    %166 = arith.mulf %161, %165 : vector<16x32xf32>
    %c294 = arith.constant 294 : index
    %c0_73 = arith.constant 0 : index
    %167 = vector.load %arg3[%c294, %c0_73] : memref<309x32xf32, #tpu.memory_space<vmem>>, vector<1x32xf32>
    %168 = vector.broadcast %167 : vector<1x32xf32> to vector<16x32xf32>
    %169 = arith.mulf %166, %168 : vector<16x32xf32>
    %c295 = arith.constant 295 : index
    %c0_74 = arith.constant 0 : index
    %170 = vector.load %arg3[%c295, %c0_74] : memref<309x32xf32, #tpu.memory_space<vmem>>, vector<1x32xf32>
    %171 = vector.broadcast %170 : vector<1x32xf32> to vector<16x32xf32>
    %172 = arith.addf %169, %171 : vector<16x32xf32>
    %173 = arith.truncf %172 : vector<16x32xf32> to vector<16x32xbf16>
    %cst_75 = arith.constant 0.000000e+00 : f32
    %174 = vector.broadcast %cst_75 : f32 to vector<16x32xf32>
    %c0_76 = arith.constant 0 : index
    %c0_77 = arith.constant 0 : index
    %c0_78 = arith.constant 0 : index
    %175 = vector.load %arg4[%c0_76, %c0_77, %c0_78] : memref<2x32x2048xbf16, #tpu.memory_space<vmem>>, vector<1x32x512xbf16>
    %176 = vector.shape_cast %175 : vector<1x32x512xbf16> to vector<32x512xbf16>
    %cst_79 = arith.constant dense<0.000000e+00> : vector<16x512xf32>
    %177 = tpu.matmul %173, %176, %cst_79 {dimension_numbers = #tpu.dot_dimension_numbers<[1], [0], [0], [1], [0, 0, 1, 1], [], []>} : vector<16x32xbf16>, vector<32x512xbf16>, vector<16x512xf32> -> vector<16x512xf32>
    %c0_80 = arith.constant 0 : index
    %c0_81 = arith.constant 0 : index
    %c0_82 = arith.constant 0 : index
    %178 = vector.load %arg5[%c0_80, %c0_81, %c0_82] : memref<2x1x2048xf32, #tpu.memory_space<vmem>>, vector<1x1x512xf32>
    %179 = vector.shape_cast %178 : vector<1x1x512xf32> to vector<1x512xf32>
    %180 = vector.broadcast %179 : vector<1x512xf32> to vector<16x512xf32>
    %181 = arith.addf %177, %180 : vector<16x512xf32>
    %cst_83 = arith.constant 0.000000e+00 : f32
    %182 = vector.broadcast %cst_83 : f32 to vector<16x512xf32>
    %183 = arith.maximumf %181, %182 : vector<16x512xf32>
    %184 = arith.truncf %183 : vector<16x512xf32> to vector<16x512xbf16>
    %c0_84 = arith.constant 0 : index
    %c0_85 = arith.constant 0 : index
    %c0_86 = arith.constant 0 : index
    %185 = vector.load %arg6[%c0_84, %c0_85, %c0_86] : memref<2x2048x32xbf16, #tpu.memory_space<vmem>>, vector<1x512x32xbf16>
    %186 = vector.shape_cast %185 : vector<1x512x32xbf16> to vector<512x32xbf16>
    %cst_87 = arith.constant dense<0.000000e+00> : vector<16x32xf32>
    %187 = tpu.matmul %184, %186, %cst_87 {dimension_numbers = #tpu.dot_dimension_numbers<[1], [0], [0], [1], [0, 0, 1, 1], [], []>} : vector<16x512xbf16>, vector<512x32xbf16>, vector<16x32xf32> -> vector<16x32xf32>
    %188 = arith.addf %174, %187 : vector<16x32xf32>
    %c0_88 = arith.constant 0 : index
    %c0_89 = arith.constant 0 : index
    %c512 = arith.constant 512 : index
    %189 = vector.load %arg4[%c0_88, %c0_89, %c512] : memref<2x32x2048xbf16, #tpu.memory_space<vmem>>, vector<1x32x512xbf16>
    %190 = vector.shape_cast %189 : vector<1x32x512xbf16> to vector<32x512xbf16>
    %cst_90 = arith.constant dense<0.000000e+00> : vector<16x512xf32>
    %191 = tpu.matmul %173, %190, %cst_90 {dimension_numbers = #tpu.dot_dimension_numbers<[1], [0], [0], [1], [0, 0, 1, 1], [], []>} : vector<16x32xbf16>, vector<32x512xbf16>, vector<16x512xf32> -> vector<16x512xf32>
    %c0_91 = arith.constant 0 : index
    %c0_92 = arith.constant 0 : index
    %c512_93 = arith.constant 512 : index
    %192 = vector.load %arg5[%c0_91, %c0_92, %c512_93] : memref<2x1x2048xf32, #tpu.memory_space<vmem>>, vector<1x1x512xf32>
    %193 = vector.shape_cast %192 : vector<1x1x512xf32> to vector<1x512xf32>
    %194 = vector.broadcast %193 : vector<1x512xf32> to vector<16x512xf32>
    %195 = arith.addf %191, %194 : vector<16x512xf32>
    %cst_94 = arith.constant 0.000000e+00 : f32
    %196 = vector.broadcast %cst_94 : f32 to vector<16x512xf32>
    %197 = arith.maximumf %195, %196 : vector<16x512xf32>
    %198 = arith.truncf %197 : vector<16x512xf32> to vector<16x512xbf16>
    %c0_95 = arith.constant 0 : index
    %c512_96 = arith.constant 512 : index
    %c0_97 = arith.constant 0 : index
    %199 = vector.load %arg6[%c0_95, %c512_96, %c0_97] : memref<2x2048x32xbf16, #tpu.memory_space<vmem>>, vector<1x512x32xbf16>
    %200 = vector.shape_cast %199 : vector<1x512x32xbf16> to vector<512x32xbf16>
    %cst_98 = arith.constant dense<0.000000e+00> : vector<16x32xf32>
    %201 = tpu.matmul %198, %200, %cst_98 {dimension_numbers = #tpu.dot_dimension_numbers<[1], [0], [0], [1], [0, 0, 1, 1], [], []>} : vector<16x512xbf16>, vector<512x32xbf16>, vector<16x32xf32> -> vector<16x32xf32>
    %202 = arith.addf %188, %201 : vector<16x32xf32>
    %c0_99 = arith.constant 0 : index
    %c0_100 = arith.constant 0 : index
    %c1024 = arith.constant 1024 : index
    %203 = vector.load %arg4[%c0_99, %c0_100, %c1024] : memref<2x32x2048xbf16, #tpu.memory_space<vmem>>, vector<1x32x512xbf16>
    %204 = vector.shape_cast %203 : vector<1x32x512xbf16> to vector<32x512xbf16>
    %cst_101 = arith.constant dense<0.000000e+00> : vector<16x512xf32>
    %205 = tpu.matmul %173, %204, %cst_101 {dimension_numbers = #tpu.dot_dimension_numbers<[1], [0], [0], [1], [0, 0, 1, 1], [], []>} : vector<16x32xbf16>, vector<32x512xbf16>, vector<16x512xf32> -> vector<16x512xf32>
    %c0_102 = arith.constant 0 : index
    %c0_103 = arith.constant 0 : index
    %c1024_104 = arith.constant 1024 : index
    %206 = vector.load %arg5[%c0_102, %c0_103, %c1024_104] : memref<2x1x2048xf32, #tpu.memory_space<vmem>>, vector<1x1x512xf32>
    %207 = vector.shape_cast %206 : vector<1x1x512xf32> to vector<1x512xf32>
    %208 = vector.broadcast %207 : vector<1x512xf32> to vector<16x512xf32>
    %209 = arith.addf %205, %208 : vector<16x512xf32>
    %cst_105 = arith.constant 0.000000e+00 : f32
    %210 = vector.broadcast %cst_105 : f32 to vector<16x512xf32>
    %211 = arith.maximumf %209, %210 : vector<16x512xf32>
    %212 = arith.truncf %211 : vector<16x512xf32> to vector<16x512xbf16>
    %c0_106 = arith.constant 0 : index
    %c1024_107 = arith.constant 1024 : index
    %c0_108 = arith.constant 0 : index
    %213 = vector.load %arg6[%c0_106, %c1024_107, %c0_108] : memref<2x2048x32xbf16, #tpu.memory_space<vmem>>, vector<1x512x32xbf16>
    %214 = vector.shape_cast %213 : vector<1x512x32xbf16> to vector<512x32xbf16>
    %cst_109 = arith.constant dense<0.000000e+00> : vector<16x32xf32>
    %215 = tpu.matmul %212, %214, %cst_109 {dimension_numbers = #tpu.dot_dimension_numbers<[1], [0], [0], [1], [0, 0, 1, 1], [], []>} : vector<16x512xbf16>, vector<512x32xbf16>, vector<16x32xf32> -> vector<16x32xf32>
    %216 = arith.addf %202, %215 : vector<16x32xf32>
    %c0_110 = arith.constant 0 : index
    %c0_111 = arith.constant 0 : index
    %c1536 = arith.constant 1536 : index
    %217 = vector.load %arg4[%c0_110, %c0_111, %c1536] : memref<2x32x2048xbf16, #tpu.memory_space<vmem>>, vector<1x32x512xbf16>
    %218 = vector.shape_cast %217 : vector<1x32x512xbf16> to vector<32x512xbf16>
    %cst_112 = arith.constant dense<0.000000e+00> : vector<16x512xf32>
    %219 = tpu.matmul %173, %218, %cst_112 {dimension_numbers = #tpu.dot_dimension_numbers<[1], [0], [0], [1], [0, 0, 1, 1], [], []>} : vector<16x32xbf16>, vector<32x512xbf16>, vector<16x512xf32> -> vector<16x512xf32>
    %c0_113 = arith.constant 0 : index
    %c0_114 = arith.constant 0 : index
    %c1536_115 = arith.constant 1536 : index
    %220 = vector.load %arg5[%c0_113, %c0_114, %c1536_115] : memref<2x1x2048xf32, #tpu.memory_space<vmem>>, vector<1x1x512xf32>
    %221 = vector.shape_cast %220 : vector<1x1x512xf32> to vector<1x512xf32>
    %222 = vector.broadcast %221 : vector<1x512xf32> to vector<16x512xf32>
    %223 = arith.addf %219, %222 : vector<16x512xf32>
    %cst_116 = arith.constant 0.000000e+00 : f32
    %224 = vector.broadcast %cst_116 : f32 to vector<16x512xf32>
    %225 = arith.maximumf %223, %224 : vector<16x512xf32>
    %226 = arith.truncf %225 : vector<16x512xf32> to vector<16x512xbf16>
    %c0_117 = arith.constant 0 : index
    %c1536_118 = arith.constant 1536 : index
    %c0_119 = arith.constant 0 : index
    %227 = vector.load %arg6[%c0_117, %c1536_118, %c0_119] : memref<2x2048x32xbf16, #tpu.memory_space<vmem>>, vector<1x512x32xbf16>
    %228 = vector.shape_cast %227 : vector<1x512x32xbf16> to vector<512x32xbf16>
    %cst_120 = arith.constant dense<0.000000e+00> : vector<16x32xf32>
    %229 = tpu.matmul %226, %228, %cst_120 {dimension_numbers = #tpu.dot_dimension_numbers<[1], [0], [0], [1], [0, 0, 1, 1], [], []>} : vector<16x512xbf16>, vector<512x32xbf16>, vector<16x32xf32> -> vector<16x32xf32>
    %230 = arith.addf %216, %229 : vector<16x32xf32>
    %c298 = arith.constant 298 : index
    %c0_121 = arith.constant 0 : index
    %231 = vector.load %arg3[%c298, %c0_121] : memref<309x32xf32, #tpu.memory_space<vmem>>, vector<1x32xf32>
    %232 = vector.broadcast %231 : vector<1x32xf32> to vector<16x32xf32>
    %233 = arith.addf %230, %232 : vector<16x32xf32>
    %234 = arith.addf %172, %233 : vector<16x32xf32>
    %cst_122 = arith.constant dense<0.000000e+00> : vector<16xf32>
    %235 = vector.multi_reduction <add>, %234, %cst_122 [1] : vector<16x32xf32> to vector<16xf32>
    %236 = vector.shape_cast %235 : vector<16xf32> to vector<16x1xf32>
    %cst_123 = arith.constant 3.200000e+01 : f32
    %237 = vector.broadcast %cst_123 : f32 to vector<16x1xf32>
    %238 = arith.divf %236, %237 : vector<16x1xf32>
    %239 = vector.broadcast %238 : vector<16x1xf32> to vector<16x32xf32>
    %240 = arith.subf %234, %239 : vector<16x32xf32>
    %241 = arith.mulf %240, %240 : vector<16x32xf32>
    %cst_124 = arith.constant dense<0.000000e+00> : vector<16xf32>
    %242 = vector.multi_reduction <add>, %241, %cst_124 [1] : vector<16x32xf32> to vector<16xf32>
    %243 = vector.shape_cast %242 : vector<16xf32> to vector<16x1xf32>
    %cst_125 = arith.constant 3.200000e+01 : f32
    %244 = vector.broadcast %cst_125 : f32 to vector<16x1xf32>
    %245 = arith.divf %243, %244 : vector<16x1xf32>
    %246 = vector.broadcast %238 : vector<16x1xf32> to vector<16x32xf32>
    %247 = arith.subf %234, %246 : vector<16x32xf32>
    %cst_126 = arith.constant 9.99999974E-6 : f32
    %248 = vector.broadcast %cst_126 : f32 to vector<16x1xf32>
    %249 = arith.addf %245, %248 : vector<16x1xf32>
    %250 = math.rsqrt %249 : vector<16x1xf32>
    %251 = vector.broadcast %250 : vector<16x1xf32> to vector<16x32xf32>
    %252 = arith.mulf %247, %251 : vector<16x32xf32>
    %c296 = arith.constant 296 : index
    %c0_127 = arith.constant 0 : index
    %253 = vector.load %arg3[%c296, %c0_127] : memref<309x32xf32, #tpu.memory_space<vmem>>, vector<1x32xf32>
    %254 = vector.broadcast %253 : vector<1x32xf32> to vector<16x32xf32>
    %255 = arith.mulf %252, %254 : vector<16x32xf32>
    %c297 = arith.constant 297 : index
    %c0_128 = arith.constant 0 : index
    %256 = vector.load %arg3[%c297, %c0_128] : memref<309x32xf32, #tpu.memory_space<vmem>>, vector<1x32xf32>
    %257 = vector.broadcast %256 : vector<1x32xf32> to vector<16x32xf32>
    %258 = arith.addf %255, %257 : vector<16x32xf32>
    %cst_129 = arith.constant 0.000000e+00 : f32
    %259 = vector.broadcast %cst_129 : f32 to vector<16x32xf32>
    %c128 = arith.constant 128 : index
    %c0_130 = arith.constant 0 : index
    %260 = vector.load %arg2[%c128, %c0_130] : memref<594x8xf32, #tpu.memory_space<vmem>>, vector<32x8xf32>
    %c580 = arith.constant 580 : index
    %c0_131 = arith.constant 0 : index
    %261 = vector.load %arg2[%c580, %c0_131] : memref<594x8xf32, #tpu.memory_space<vmem>>, vector<1x8xf32>
    %c384 = arith.constant 384 : index
    %c0_132 = arith.constant 0 : index
    %262 = vector.load %arg2[%c384, %c0_132] : memref<594x8xf32, #tpu.memory_space<vmem>>, vector<32x8xf32>
    %c588 = arith.constant 588 : index
    %c0_133 = arith.constant 0 : index
    %263 = vector.load %arg2[%c588, %c0_133] : memref<594x8xf32, #tpu.memory_space<vmem>>, vector<1x8xf32>
    %cst_134 = arith.constant dense<0.000000e+00> : vector<16x8xf32>
    %264 = tpu.matmul %258, %260, %cst_134 {dimension_numbers = #tpu.dot_dimension_numbers<[1], [0], [0], [1], [0, 0, 1, 1], [], []>} : vector<16x32xf32>, vector<32x8xf32>, vector<16x8xf32> -> vector<16x8xf32>
    %265 = vector.broadcast %261 : vector<1x8xf32> to vector<16x8xf32>
    %266 = arith.addf %264, %265 : vector<16x8xf32>
    %cst_135 = arith.constant dense<0.000000e+00> : vector<16x8xf32>
    %267 = tpu.matmul %258, %262, %cst_135 {dimension_numbers = #tpu.dot_dimension_numbers<[1], [0], [0], [1], [0, 0, 1, 1], [], []>} : vector<16x32xf32>, vector<32x8xf32>, vector<16x8xf32> -> vector<16x8xf32>
    %268 = vector.broadcast %263 : vector<1x8xf32> to vector<16x8xf32>
    %269 = arith.addf %267, %268 : vector<16x8xf32>
    %270 = tpu.transpose %269, [1, 0] : vector<16x8xf32> -> vector<8x16xf32>
    %cst_136 = arith.constant dense<0.000000e+00> : vector<16x16xf32>
    %271 = tpu.matmul %266, %270, %cst_136 {dimension_numbers = #tpu.dot_dimension_numbers<[1], [0], [0], [1], [0, 0, 1, 1], [], []>} : vector<16x8xf32>, vector<8x16xf32>, vector<16x16xf32> -> vector<16x16xf32>
    %272 = arith.addf %271, %27 : vector<16x16xf32>
    %cst_137 = arith.constant dense<0xFF800000> : vector<16xf32>
    %273 = vector.multi_reduction <maximumf>, %272, %cst_137 [1] : vector<16x16xf32> to vector<16xf32>
    %274 = vector.shape_cast %273 : vector<16xf32> to vector<16x1xf32>
    %275 = vector.broadcast %274 : vector<16x1xf32> to vector<16x16xf32>
    %276 = arith.subf %272, %275 : vector<16x16xf32>
    %277 = math.exp %276 : vector<16x16xf32>
    %cst_138 = arith.constant dense<0.000000e+00> : vector<16xf32>
    %278 = vector.multi_reduction <add>, %277, %cst_138 [1] : vector<16x16xf32> to vector<16xf32>
    %279 = vector.shape_cast %278 : vector<16xf32> to vector<16x1xf32>
    %280 = vector.broadcast %279 : vector<16x1xf32> to vector<16x16xf32>
    %281 = arith.divf %277, %280 : vector<16x16xf32>
    %c128_139 = arith.constant 128 : index
    %c0_140 = arith.constant 0 : index
    %282 = vector.load %arg3[%c128_139, %c0_140] : memref<309x32xf32, #tpu.memory_space<vmem>>, vector<32x32xf32>
    %c299 = arith.constant 299 : index
    %c0_141 = arith.constant 0 : index
    %283 = vector.load %arg3[%c299, %c0_141] : memref<309x32xf32, #tpu.memory_space<vmem>>, vector<1x32xf32>
    %cst_142 = arith.constant dense<0.000000e+00> : vector<16x32xf32>
    %284 = tpu.matmul %258, %282, %cst_142 {dimension_numbers = #tpu.dot_dimension_numbers<[1], [0], [0], [1], [0, 0, 1, 1], [], []>} : vector<16x32xf32>, vector<32x32xf32>, vector<16x32xf32> -> vector<16x32xf32>
    %285 = vector.broadcast %283 : vector<1x32xf32> to vector<16x32xf32>
    %286 = arith.addf %284, %285 : vector<16x32xf32>
    %cst_143 = arith.constant dense<0.000000e+00> : vector<16x32xf32>
    %287 = tpu.matmul %281, %286, %cst_143 {dimension_numbers = #tpu.dot_dimension_numbers<[1], [0], [0], [1], [0, 0, 1, 1], [], []>} : vector<16x16xf32>, vector<16x32xf32>, vector<16x32xf32> -> vector<16x32xf32>
    %288 = arith.addf %259, %287 : vector<16x32xf32>
    %c160 = arith.constant 160 : index
    %c0_144 = arith.constant 0 : index
    %289 = vector.load %arg2[%c160, %c0_144] : memref<594x8xf32, #tpu.memory_space<vmem>>, vector<32x8xf32>
    %c581 = arith.constant 581 : index
    %c0_145 = arith.constant 0 : index
    %290 = vector.load %arg2[%c581, %c0_145] : memref<594x8xf32, #tpu.memory_space<vmem>>, vector<1x8xf32>
    %c416 = arith.constant 416 : index
    %c0_146 = arith.constant 0 : index
    %291 = vector.load %arg2[%c416, %c0_146] : memref<594x8xf32, #tpu.memory_space<vmem>>, vector<32x8xf32>
    %c589 = arith.constant 589 : index
    %c0_147 = arith.constant 0 : index
    %292 = vector.load %arg2[%c589, %c0_147] : memref<594x8xf32, #tpu.memory_space<vmem>>, vector<1x8xf32>
    %cst_148 = arith.constant dense<0.000000e+00> : vector<16x8xf32>
    %293 = tpu.matmul %258, %289, %cst_148 {dimension_numbers = #tpu.dot_dimension_numbers<[1], [0], [0], [1], [0, 0, 1, 1], [], []>} : vector<16x32xf32>, vector<32x8xf32>, vector<16x8xf32> -> vector<16x8xf32>
    %294 = vector.broadcast %290 : vector<1x8xf32> to vector<16x8xf32>
    %295 = arith.addf %293, %294 : vector<16x8xf32>
    %cst_149 = arith.constant dense<0.000000e+00> : vector<16x8xf32>
    %296 = tpu.matmul %258, %291, %cst_149 {dimension_numbers = #tpu.dot_dimension_numbers<[1], [0], [0], [1], [0, 0, 1, 1], [], []>} : vector<16x32xf32>, vector<32x8xf32>, vector<16x8xf32> -> vector<16x8xf32>
    %297 = vector.broadcast %292 : vector<1x8xf32> to vector<16x8xf32>
    %298 = arith.addf %296, %297 : vector<16x8xf32>
    %299 = tpu.transpose %298, [1, 0] : vector<16x8xf32> -> vector<8x16xf32>
    %cst_150 = arith.constant dense<0.000000e+00> : vector<16x16xf32>
    %300 = tpu.matmul %295, %299, %cst_150 {dimension_numbers = #tpu.dot_dimension_numbers<[1], [0], [0], [1], [0, 0, 1, 1], [], []>} : vector<16x8xf32>, vector<8x16xf32>, vector<16x16xf32> -> vector<16x16xf32>
    %301 = arith.addf %300, %27 : vector<16x16xf32>
    %cst_151 = arith.constant dense<0xFF800000> : vector<16xf32>
    %302 = vector.multi_reduction <maximumf>, %301, %cst_151 [1] : vector<16x16xf32> to vector<16xf32>
    %303 = vector.shape_cast %302 : vector<16xf32> to vector<16x1xf32>
    %304 = vector.broadcast %303 : vector<16x1xf32> to vector<16x16xf32>
    %305 = arith.subf %301, %304 : vector<16x16xf32>
    %306 = math.exp %305 : vector<16x16xf32>
    %cst_152 = arith.constant dense<0.000000e+00> : vector<16xf32>
    %307 = vector.multi_reduction <add>, %306, %cst_152 [1] : vector<16x16xf32> to vector<16xf32>
    %308 = vector.shape_cast %307 : vector<16xf32> to vector<16x1xf32>
    %309 = vector.broadcast %308 : vector<16x1xf32> to vector<16x16xf32>
    %310 = arith.divf %306, %309 : vector<16x16xf32>
    %c160_153 = arith.constant 160 : index
    %c0_154 = arith.constant 0 : index
    %311 = vector.load %arg3[%c160_153, %c0_154] : memref<309x32xf32, #tpu.memory_space<vmem>>, vector<32x32xf32>
    %c300 = arith.constant 300 : index
    %c0_155 = arith.constant 0 : index
    %312 = vector.load %arg3[%c300, %c0_155] : memref<309x32xf32, #tpu.memory_space<vmem>>, vector<1x32xf32>
    %cst_156 = arith.constant dense<0.000000e+00> : vector<16x32xf32>
    %313 = tpu.matmul %258, %311, %cst_156 {dimension_numbers = #tpu.dot_dimension_numbers<[1], [0], [0], [1], [0, 0, 1, 1], [], []>} : vector<16x32xf32>, vector<32x32xf32>, vector<16x32xf32> -> vector<16x32xf32>
    %314 = vector.broadcast %312 : vector<1x32xf32> to vector<16x32xf32>
    %315 = arith.addf %313, %314 : vector<16x32xf32>
    %cst_157 = arith.constant dense<0.000000e+00> : vector<16x32xf32>
    %316 = tpu.matmul %310, %315, %cst_157 {dimension_numbers = #tpu.dot_dimension_numbers<[1], [0], [0], [1], [0, 0, 1, 1], [], []>} : vector<16x16xf32>, vector<16x32xf32>, vector<16x32xf32> -> vector<16x32xf32>
    %317 = arith.addf %288, %316 : vector<16x32xf32>
    %c192 = arith.constant 192 : index
    %c0_158 = arith.constant 0 : index
    %318 = vector.load %arg2[%c192, %c0_158] : memref<594x8xf32, #tpu.memory_space<vmem>>, vector<32x8xf32>
    %c582 = arith.constant 582 : index
    %c0_159 = arith.constant 0 : index
    %319 = vector.load %arg2[%c582, %c0_159] : memref<594x8xf32, #tpu.memory_space<vmem>>, vector<1x8xf32>
    %c448 = arith.constant 448 : index
    %c0_160 = arith.constant 0 : index
    %320 = vector.load %arg2[%c448, %c0_160] : memref<594x8xf32, #tpu.memory_space<vmem>>, vector<32x8xf32>
    %c590 = arith.constant 590 : index
    %c0_161 = arith.constant 0 : index
    %321 = vector.load %arg2[%c590, %c0_161] : memref<594x8xf32, #tpu.memory_space<vmem>>, vector<1x8xf32>
    %cst_162 = arith.constant dense<0.000000e+00> : vector<16x8xf32>
    %322 = tpu.matmul %258, %318, %cst_162 {dimension_numbers = #tpu.dot_dimension_numbers<[1], [0], [0], [1], [0, 0, 1, 1], [], []>} : vector<16x32xf32>, vector<32x8xf32>, vector<16x8xf32> -> vector<16x8xf32>
    %323 = vector.broadcast %319 : vector<1x8xf32> to vector<16x8xf32>
    %324 = arith.addf %322, %323 : vector<16x8xf32>
    %cst_163 = arith.constant dense<0.000000e+00> : vector<16x8xf32>
    %325 = tpu.matmul %258, %320, %cst_163 {dimension_numbers = #tpu.dot_dimension_numbers<[1], [0], [0], [1], [0, 0, 1, 1], [], []>} : vector<16x32xf32>, vector<32x8xf32>, vector<16x8xf32> -> vector<16x8xf32>
    %326 = vector.broadcast %321 : vector<1x8xf32> to vector<16x8xf32>
    %327 = arith.addf %325, %326 : vector<16x8xf32>
    %328 = tpu.transpose %327, [1, 0] : vector<16x8xf32> -> vector<8x16xf32>
    %cst_164 = arith.constant dense<0.000000e+00> : vector<16x16xf32>
    %329 = tpu.matmul %324, %328, %cst_164 {dimension_numbers = #tpu.dot_dimension_numbers<[1], [0], [0], [1], [0, 0, 1, 1], [], []>} : vector<16x8xf32>, vector<8x16xf32>, vector<16x16xf32> -> vector<16x16xf32>
    %330 = arith.addf %329, %27 : vector<16x16xf32>
    %cst_165 = arith.constant dense<0xFF800000> : vector<16xf32>
    %331 = vector.multi_reduction <maximumf>, %330, %cst_165 [1] : vector<16x16xf32> to vector<16xf32>
    %332 = vector.shape_cast %331 : vector<16xf32> to vector<16x1xf32>
    %333 = vector.broadcast %332 : vector<16x1xf32> to vector<16x16xf32>
    %334 = arith.subf %330, %333 : vector<16x16xf32>
    %335 = math.exp %334 : vector<16x16xf32>
    %cst_166 = arith.constant dense<0.000000e+00> : vector<16xf32>
    %336 = vector.multi_reduction <add>, %335, %cst_166 [1] : vector<16x16xf32> to vector<16xf32>
    %337 = vector.shape_cast %336 : vector<16xf32> to vector<16x1xf32>
    %338 = vector.broadcast %337 : vector<16x1xf32> to vector<16x16xf32>
    %339 = arith.divf %335, %338 : vector<16x16xf32>
    %c192_167 = arith.constant 192 : index
    %c0_168 = arith.constant 0 : index
    %340 = vector.load %arg3[%c192_167, %c0_168] : memref<309x32xf32, #tpu.memory_space<vmem>>, vector<32x32xf32>
    %c301 = arith.constant 301 : index
    %c0_169 = arith.constant 0 : index
    %341 = vector.load %arg3[%c301, %c0_169] : memref<309x32xf32, #tpu.memory_space<vmem>>, vector<1x32xf32>
    %cst_170 = arith.constant dense<0.000000e+00> : vector<16x32xf32>
    %342 = tpu.matmul %258, %340, %cst_170 {dimension_numbers = #tpu.dot_dimension_numbers<[1], [0], [0], [1], [0, 0, 1, 1], [], []>} : vector<16x32xf32>, vector<32x32xf32>, vector<16x32xf32> -> vector<16x32xf32>
    %343 = vector.broadcast %341 : vector<1x32xf32> to vector<16x32xf32>
    %344 = arith.addf %342, %343 : vector<16x32xf32>
    %cst_171 = arith.constant dense<0.000000e+00> : vector<16x32xf32>
    %345 = tpu.matmul %339, %344, %cst_171 {dimension_numbers = #tpu.dot_dimension_numbers<[1], [0], [0], [1], [0, 0, 1, 1], [], []>} : vector<16x16xf32>, vector<16x32xf32>, vector<16x32xf32> -> vector<16x32xf32>
    %346 = arith.addf %317, %345 : vector<16x32xf32>
    %c224 = arith.constant 224 : index
    %c0_172 = arith.constant 0 : index
    %347 = vector.load %arg2[%c224, %c0_172] : memref<594x8xf32, #tpu.memory_space<vmem>>, vector<32x8xf32>
    %c583 = arith.constant 583 : index
    %c0_173 = arith.constant 0 : index
    %348 = vector.load %arg2[%c583, %c0_173] : memref<594x8xf32, #tpu.memory_space<vmem>>, vector<1x8xf32>
    %c480 = arith.constant 480 : index
    %c0_174 = arith.constant 0 : index
    %349 = vector.load %arg2[%c480, %c0_174] : memref<594x8xf32, #tpu.memory_space<vmem>>, vector<32x8xf32>
    %c591 = arith.constant 591 : index
    %c0_175 = arith.constant 0 : index
    %350 = vector.load %arg2[%c591, %c0_175] : memref<594x8xf32, #tpu.memory_space<vmem>>, vector<1x8xf32>
    %cst_176 = arith.constant dense<0.000000e+00> : vector<16x8xf32>
    %351 = tpu.matmul %258, %347, %cst_176 {dimension_numbers = #tpu.dot_dimension_numbers<[1], [0], [0], [1], [0, 0, 1, 1], [], []>} : vector<16x32xf32>, vector<32x8xf32>, vector<16x8xf32> -> vector<16x8xf32>
    %352 = vector.broadcast %348 : vector<1x8xf32> to vector<16x8xf32>
    %353 = arith.addf %351, %352 : vector<16x8xf32>
    %cst_177 = arith.constant dense<0.000000e+00> : vector<16x8xf32>
    %354 = tpu.matmul %258, %349, %cst_177 {dimension_numbers = #tpu.dot_dimension_numbers<[1], [0], [0], [1], [0, 0, 1, 1], [], []>} : vector<16x32xf32>, vector<32x8xf32>, vector<16x8xf32> -> vector<16x8xf32>
    %355 = vector.broadcast %350 : vector<1x8xf32> to vector<16x8xf32>
    %356 = arith.addf %354, %355 : vector<16x8xf32>
    %357 = tpu.transpose %356, [1, 0] : vector<16x8xf32> -> vector<8x16xf32>
    %cst_178 = arith.constant dense<0.000000e+00> : vector<16x16xf32>
    %358 = tpu.matmul %353, %357, %cst_178 {dimension_numbers = #tpu.dot_dimension_numbers<[1], [0], [0], [1], [0, 0, 1, 1], [], []>} : vector<16x8xf32>, vector<8x16xf32>, vector<16x16xf32> -> vector<16x16xf32>
    %359 = arith.addf %358, %27 : vector<16x16xf32>
    %cst_179 = arith.constant dense<0xFF800000> : vector<16xf32>
    %360 = vector.multi_reduction <maximumf>, %359, %cst_179 [1] : vector<16x16xf32> to vector<16xf32>
    %361 = vector.shape_cast %360 : vector<16xf32> to vector<16x1xf32>
    %362 = vector.broadcast %361 : vector<16x1xf32> to vector<16x16xf32>
    %363 = arith.subf %359, %362 : vector<16x16xf32>
    %364 = math.exp %363 : vector<16x16xf32>
    %cst_180 = arith.constant dense<0.000000e+00> : vector<16xf32>
    %365 = vector.multi_reduction <add>, %364, %cst_180 [1] : vector<16x16xf32> to vector<16xf32>
    %366 = vector.shape_cast %365 : vector<16xf32> to vector<16x1xf32>
    %367 = vector.broadcast %366 : vector<16x1xf32> to vector<16x16xf32>
    %368 = arith.divf %364, %367 : vector<16x16xf32>
    %c224_181 = arith.constant 224 : index
    %c0_182 = arith.constant 0 : index
    %369 = vector.load %arg3[%c224_181, %c0_182] : memref<309x32xf32, #tpu.memory_space<vmem>>, vector<32x32xf32>
    %c302 = arith.constant 302 : index
    %c0_183 = arith.constant 0 : index
    %370 = vector.load %arg3[%c302, %c0_183] : memref<309x32xf32, #tpu.memory_space<vmem>>, vector<1x32xf32>
    %cst_184 = arith.constant dense<0.000000e+00> : vector<16x32xf32>
    %371 = tpu.matmul %258, %369, %cst_184 {dimension_numbers = #tpu.dot_dimension_numbers<[1], [0], [0], [1], [0, 0, 1, 1], [], []>} : vector<16x32xf32>, vector<32x32xf32>, vector<16x32xf32> -> vector<16x32xf32>
    %372 = vector.broadcast %370 : vector<1x32xf32> to vector<16x32xf32>
    %373 = arith.addf %371, %372 : vector<16x32xf32>
    %cst_185 = arith.constant dense<0.000000e+00> : vector<16x32xf32>
    %374 = tpu.matmul %368, %373, %cst_185 {dimension_numbers = #tpu.dot_dimension_numbers<[1], [0], [0], [1], [0, 0, 1, 1], [], []>} : vector<16x16xf32>, vector<16x32xf32>, vector<16x32xf32> -> vector<16x32xf32>
    %375 = arith.addf %346, %374 : vector<16x32xf32>
    %c303 = arith.constant 303 : index
    %c0_186 = arith.constant 0 : index
    %376 = vector.load %arg3[%c303, %c0_186] : memref<309x32xf32, #tpu.memory_space<vmem>>, vector<1x32xf32>
    %377 = vector.broadcast %376 : vector<1x32xf32> to vector<16x32xf32>
    %378 = arith.addf %375, %377 : vector<16x32xf32>
    %379 = arith.addf %258, %378 : vector<16x32xf32>
    %cst_187 = arith.constant dense<0.000000e+00> : vector<16xf32>
    %380 = vector.multi_reduction <add>, %379, %cst_187 [1] : vector<16x32xf32> to vector<16xf32>
    %381 = vector.shape_cast %380 : vector<16xf32> to vector<16x1xf32>
    %cst_188 = arith.constant 3.200000e+01 : f32
    %382 = vector.broadcast %cst_188 : f32 to vector<16x1xf32>
    %383 = arith.divf %381, %382 : vector<16x1xf32>
    %384 = vector.broadcast %383 : vector<16x1xf32> to vector<16x32xf32>
    %385 = arith.subf %379, %384 : vector<16x32xf32>
    %386 = arith.mulf %385, %385 : vector<16x32xf32>
    %cst_189 = arith.constant dense<0.000000e+00> : vector<16xf32>
    %387 = vector.multi_reduction <add>, %386, %cst_189 [1] : vector<16x32xf32> to vector<16xf32>
    %388 = vector.shape_cast %387 : vector<16xf32> to vector<16x1xf32>
    %cst_190 = arith.constant 3.200000e+01 : f32
    %389 = vector.broadcast %cst_190 : f32 to vector<16x1xf32>
    %390 = arith.divf %388, %389 : vector<16x1xf32>
    %391 = vector.broadcast %383 : vector<16x1xf32> to vector<16x32xf32>
    %392 = arith.subf %379, %391 : vector<16x32xf32>
    %cst_191 = arith.constant 9.99999974E-6 : f32
    %393 = vector.broadcast %cst_191 : f32 to vector<16x1xf32>
    %394 = arith.addf %390, %393 : vector<16x1xf32>
    %395 = math.rsqrt %394 : vector<16x1xf32>
    %396 = vector.broadcast %395 : vector<16x1xf32> to vector<16x32xf32>
    %397 = arith.mulf %392, %396 : vector<16x32xf32>
    %c304 = arith.constant 304 : index
    %c0_192 = arith.constant 0 : index
    %398 = vector.load %arg3[%c304, %c0_192] : memref<309x32xf32, #tpu.memory_space<vmem>>, vector<1x32xf32>
    %399 = vector.broadcast %398 : vector<1x32xf32> to vector<16x32xf32>
    %400 = arith.mulf %397, %399 : vector<16x32xf32>
    %c305 = arith.constant 305 : index
    %c0_193 = arith.constant 0 : index
    %401 = vector.load %arg3[%c305, %c0_193] : memref<309x32xf32, #tpu.memory_space<vmem>>, vector<1x32xf32>
    %402 = vector.broadcast %401 : vector<1x32xf32> to vector<16x32xf32>
    %403 = arith.addf %400, %402 : vector<16x32xf32>
    %404 = arith.truncf %403 : vector<16x32xf32> to vector<16x32xbf16>
    %cst_194 = arith.constant 0.000000e+00 : f32
    %405 = vector.broadcast %cst_194 : f32 to vector<16x32xf32>
    %c1 = arith.constant 1 : index
    %c0_195 = arith.constant 0 : index
    %c0_196 = arith.constant 0 : index
    %406 = vector.load %arg4[%c1, %c0_195, %c0_196] : memref<2x32x2048xbf16, #tpu.memory_space<vmem>>, vector<1x32x512xbf16>
    %407 = vector.shape_cast %406 : vector<1x32x512xbf16> to vector<32x512xbf16>
    %cst_197 = arith.constant dense<0.000000e+00> : vector<16x512xf32>
    %408 = tpu.matmul %404, %407, %cst_197 {dimension_numbers = #tpu.dot_dimension_numbers<[1], [0], [0], [1], [0, 0, 1, 1], [], []>} : vector<16x32xbf16>, vector<32x512xbf16>, vector<16x512xf32> -> vector<16x512xf32>
    %c1_198 = arith.constant 1 : index
    %c0_199 = arith.constant 0 : index
    %c0_200 = arith.constant 0 : index
    %409 = vector.load %arg5[%c1_198, %c0_199, %c0_200] : memref<2x1x2048xf32, #tpu.memory_space<vmem>>, vector<1x1x512xf32>
    %410 = vector.shape_cast %409 : vector<1x1x512xf32> to vector<1x512xf32>
    %411 = vector.broadcast %410 : vector<1x512xf32> to vector<16x512xf32>
    %412 = arith.addf %408, %411 : vector<16x512xf32>
    %cst_201 = arith.constant 0.000000e+00 : f32
    %413 = vector.broadcast %cst_201 : f32 to vector<16x512xf32>
    %414 = arith.maximumf %412, %413 : vector<16x512xf32>
    %415 = arith.truncf %414 : vector<16x512xf32> to vector<16x512xbf16>
    %c1_202 = arith.constant 1 : index
    %c0_203 = arith.constant 0 : index
    %c0_204 = arith.constant 0 : index
    %416 = vector.load %arg6[%c1_202, %c0_203, %c0_204] : memref<2x2048x32xbf16, #tpu.memory_space<vmem>>, vector<1x512x32xbf16>
    %417 = vector.shape_cast %416 : vector<1x512x32xbf16> to vector<512x32xbf16>
    %cst_205 = arith.constant dense<0.000000e+00> : vector<16x32xf32>
    %418 = tpu.matmul %415, %417, %cst_205 {dimension_numbers = #tpu.dot_dimension_numbers<[1], [0], [0], [1], [0, 0, 1, 1], [], []>} : vector<16x512xbf16>, vector<512x32xbf16>, vector<16x32xf32> -> vector<16x32xf32>
    %419 = arith.addf %405, %418 : vector<16x32xf32>
    %c1_206 = arith.constant 1 : index
    %c0_207 = arith.constant 0 : index
    %c512_208 = arith.constant 512 : index
    %420 = vector.load %arg4[%c1_206, %c0_207, %c512_208] : memref<2x32x2048xbf16, #tpu.memory_space<vmem>>, vector<1x32x512xbf16>
    %421 = vector.shape_cast %420 : vector<1x32x512xbf16> to vector<32x512xbf16>
    %cst_209 = arith.constant dense<0.000000e+00> : vector<16x512xf32>
    %422 = tpu.matmul %404, %421, %cst_209 {dimension_numbers = #tpu.dot_dimension_numbers<[1], [0], [0], [1], [0, 0, 1, 1], [], []>} : vector<16x32xbf16>, vector<32x512xbf16>, vector<16x512xf32> -> vector<16x512xf32>
    %c1_210 = arith.constant 1 : index
    %c0_211 = arith.constant 0 : index
    %c512_212 = arith.constant 512 : index
    %423 = vector.load %arg5[%c1_210, %c0_211, %c512_212] : memref<2x1x2048xf32, #tpu.memory_space<vmem>>, vector<1x1x512xf32>
    %424 = vector.shape_cast %423 : vector<1x1x512xf32> to vector<1x512xf32>
    %425 = vector.broadcast %424 : vector<1x512xf32> to vector<16x512xf32>
    %426 = arith.addf %422, %425 : vector<16x512xf32>
    %cst_213 = arith.constant 0.000000e+00 : f32
    %427 = vector.broadcast %cst_213 : f32 to vector<16x512xf32>
    %428 = arith.maximumf %426, %427 : vector<16x512xf32>
    %429 = arith.truncf %428 : vector<16x512xf32> to vector<16x512xbf16>
    %c1_214 = arith.constant 1 : index
    %c512_215 = arith.constant 512 : index
    %c0_216 = arith.constant 0 : index
    %430 = vector.load %arg6[%c1_214, %c512_215, %c0_216] : memref<2x2048x32xbf16, #tpu.memory_space<vmem>>, vector<1x512x32xbf16>
    %431 = vector.shape_cast %430 : vector<1x512x32xbf16> to vector<512x32xbf16>
    %cst_217 = arith.constant dense<0.000000e+00> : vector<16x32xf32>
    %432 = tpu.matmul %429, %431, %cst_217 {dimension_numbers = #tpu.dot_dimension_numbers<[1], [0], [0], [1], [0, 0, 1, 1], [], []>} : vector<16x512xbf16>, vector<512x32xbf16>, vector<16x32xf32> -> vector<16x32xf32>
    %433 = arith.addf %419, %432 : vector<16x32xf32>
    %c1_218 = arith.constant 1 : index
    %c0_219 = arith.constant 0 : index
    %c1024_220 = arith.constant 1024 : index
    %434 = vector.load %arg4[%c1_218, %c0_219, %c1024_220] : memref<2x32x2048xbf16, #tpu.memory_space<vmem>>, vector<1x32x512xbf16>
    %435 = vector.shape_cast %434 : vector<1x32x512xbf16> to vector<32x512xbf16>
    %cst_221 = arith.constant dense<0.000000e+00> : vector<16x512xf32>
    %436 = tpu.matmul %404, %435, %cst_221 {dimension_numbers = #tpu.dot_dimension_numbers<[1], [0], [0], [1], [0, 0, 1, 1], [], []>} : vector<16x32xbf16>, vector<32x512xbf16>, vector<16x512xf32> -> vector<16x512xf32>
    %c1_222 = arith.constant 1 : index
    %c0_223 = arith.constant 0 : index
    %c1024_224 = arith.constant 1024 : index
    %437 = vector.load %arg5[%c1_222, %c0_223, %c1024_224] : memref<2x1x2048xf32, #tpu.memory_space<vmem>>, vector<1x1x512xf32>
    %438 = vector.shape_cast %437 : vector<1x1x512xf32> to vector<1x512xf32>
    %439 = vector.broadcast %438 : vector<1x512xf32> to vector<16x512xf32>
    %440 = arith.addf %436, %439 : vector<16x512xf32>
    %cst_225 = arith.constant 0.000000e+00 : f32
    %441 = vector.broadcast %cst_225 : f32 to vector<16x512xf32>
    %442 = arith.maximumf %440, %441 : vector<16x512xf32>
    %443 = arith.truncf %442 : vector<16x512xf32> to vector<16x512xbf16>
    %c1_226 = arith.constant 1 : index
    %c1024_227 = arith.constant 1024 : index
    %c0_228 = arith.constant 0 : index
    %444 = vector.load %arg6[%c1_226, %c1024_227, %c0_228] : memref<2x2048x32xbf16, #tpu.memory_space<vmem>>, vector<1x512x32xbf16>
    %445 = vector.shape_cast %444 : vector<1x512x32xbf16> to vector<512x32xbf16>
    %cst_229 = arith.constant dense<0.000000e+00> : vector<16x32xf32>
    %446 = tpu.matmul %443, %445, %cst_229 {dimension_numbers = #tpu.dot_dimension_numbers<[1], [0], [0], [1], [0, 0, 1, 1], [], []>} : vector<16x512xbf16>, vector<512x32xbf16>, vector<16x32xf32> -> vector<16x32xf32>
    %447 = arith.addf %433, %446 : vector<16x32xf32>
    %c1_230 = arith.constant 1 : index
    %c0_231 = arith.constant 0 : index
    %c1536_232 = arith.constant 1536 : index
    %448 = vector.load %arg4[%c1_230, %c0_231, %c1536_232] : memref<2x32x2048xbf16, #tpu.memory_space<vmem>>, vector<1x32x512xbf16>
    %449 = vector.shape_cast %448 : vector<1x32x512xbf16> to vector<32x512xbf16>
    %cst_233 = arith.constant dense<0.000000e+00> : vector<16x512xf32>
    %450 = tpu.matmul %404, %449, %cst_233 {dimension_numbers = #tpu.dot_dimension_numbers<[1], [0], [0], [1], [0, 0, 1, 1], [], []>} : vector<16x32xbf16>, vector<32x512xbf16>, vector<16x512xf32> -> vector<16x512xf32>
    %c1_234 = arith.constant 1 : index
    %c0_235 = arith.constant 0 : index
    %c1536_236 = arith.constant 1536 : index
    %451 = vector.load %arg5[%c1_234, %c0_235, %c1536_236] : memref<2x1x2048xf32, #tpu.memory_space<vmem>>, vector<1x1x512xf32>
    %452 = vector.shape_cast %451 : vector<1x1x512xf32> to vector<1x512xf32>
    %453 = vector.broadcast %452 : vector<1x512xf32> to vector<16x512xf32>
    %454 = arith.addf %450, %453 : vector<16x512xf32>
    %cst_237 = arith.constant 0.000000e+00 : f32
    %455 = vector.broadcast %cst_237 : f32 to vector<16x512xf32>
    %456 = arith.maximumf %454, %455 : vector<16x512xf32>
    %457 = arith.truncf %456 : vector<16x512xf32> to vector<16x512xbf16>
    %c1_238 = arith.constant 1 : index
    %c1536_239 = arith.constant 1536 : index
    %c0_240 = arith.constant 0 : index
    %458 = vector.load %arg6[%c1_238, %c1536_239, %c0_240] : memref<2x2048x32xbf16, #tpu.memory_space<vmem>>, vector<1x512x32xbf16>
    %459 = vector.shape_cast %458 : vector<1x512x32xbf16> to vector<512x32xbf16>
    %cst_241 = arith.constant dense<0.000000e+00> : vector<16x32xf32>
    %460 = tpu.matmul %457, %459, %cst_241 {dimension_numbers = #tpu.dot_dimension_numbers<[1], [0], [0], [1], [0, 0, 1, 1], [], []>} : vector<16x512xbf16>, vector<512x32xbf16>, vector<16x32xf32> -> vector<16x32xf32>
    %461 = arith.addf %447, %460 : vector<16x32xf32>
    %c308 = arith.constant 308 : index
    %c0_242 = arith.constant 0 : index
    %462 = vector.load %arg3[%c308, %c0_242] : memref<309x32xf32, #tpu.memory_space<vmem>>, vector<1x32xf32>
    %463 = vector.broadcast %462 : vector<1x32xf32> to vector<16x32xf32>
    %464 = arith.addf %461, %463 : vector<16x32xf32>
    %465 = arith.addf %403, %464 : vector<16x32xf32>
    %cst_243 = arith.constant dense<0.000000e+00> : vector<16xf32>
    %466 = vector.multi_reduction <add>, %465, %cst_243 [1] : vector<16x32xf32> to vector<16xf32>
    %467 = vector.shape_cast %466 : vector<16xf32> to vector<16x1xf32>
    %cst_244 = arith.constant 3.200000e+01 : f32
    %468 = vector.broadcast %cst_244 : f32 to vector<16x1xf32>
    %469 = arith.divf %467, %468 : vector<16x1xf32>
    %470 = vector.broadcast %469 : vector<16x1xf32> to vector<16x32xf32>
    %471 = arith.subf %465, %470 : vector<16x32xf32>
    %472 = arith.mulf %471, %471 : vector<16x32xf32>
    %cst_245 = arith.constant dense<0.000000e+00> : vector<16xf32>
    %473 = vector.multi_reduction <add>, %472, %cst_245 [1] : vector<16x32xf32> to vector<16xf32>
    %474 = vector.shape_cast %473 : vector<16xf32> to vector<16x1xf32>
    %cst_246 = arith.constant 3.200000e+01 : f32
    %475 = vector.broadcast %cst_246 : f32 to vector<16x1xf32>
    %476 = arith.divf %474, %475 : vector<16x1xf32>
    %477 = vector.broadcast %469 : vector<16x1xf32> to vector<16x32xf32>
    %478 = arith.subf %465, %477 : vector<16x32xf32>
    %cst_247 = arith.constant 9.99999974E-6 : f32
    %479 = vector.broadcast %cst_247 : f32 to vector<16x1xf32>
    %480 = arith.addf %476, %479 : vector<16x1xf32>
    %481 = math.rsqrt %480 : vector<16x1xf32>
    %482 = vector.broadcast %481 : vector<16x1xf32> to vector<16x32xf32>
    %483 = arith.mulf %478, %482 : vector<16x32xf32>
    %c306 = arith.constant 306 : index
    %c0_248 = arith.constant 0 : index
    %484 = vector.load %arg3[%c306, %c0_248] : memref<309x32xf32, #tpu.memory_space<vmem>>, vector<1x32xf32>
    %485 = vector.broadcast %484 : vector<1x32xf32> to vector<16x32xf32>
    %486 = arith.mulf %483, %485 : vector<16x32xf32>
    %c307 = arith.constant 307 : index
    %c0_249 = arith.constant 0 : index
    %487 = vector.load %arg3[%c307, %c0_249] : memref<309x32xf32, #tpu.memory_space<vmem>>, vector<1x32xf32>
    %488 = vector.broadcast %487 : vector<1x32xf32> to vector<16x32xf32>
    %489 = arith.addf %486, %488 : vector<16x32xf32>
    %c512_250 = arith.constant 512 : index
    %c0_251 = arith.constant 0 : index
    %490 = vector.load %arg2[%c512_250, %c0_251] : memref<594x8xf32, #tpu.memory_space<vmem>>, vector<32x8xf32>
    %c592 = arith.constant 592 : index
    %c0_252 = arith.constant 0 : index
    %491 = vector.load %arg2[%c592, %c0_252] : memref<594x8xf32, #tpu.memory_space<vmem>>, vector<1x8xf32>
    %c544 = arith.constant 544 : index
    %c0_253 = arith.constant 0 : index
    %492 = vector.load %arg2[%c544, %c0_253] : memref<594x8xf32, #tpu.memory_space<vmem>>, vector<32x8xf32>
    %c593 = arith.constant 593 : index
    %c0_254 = arith.constant 0 : index
    %493 = vector.load %arg2[%c593, %c0_254] : memref<594x8xf32, #tpu.memory_space<vmem>>, vector<1x8xf32>
    %cst_255 = arith.constant dense<0.000000e+00> : vector<16x8xf32>
    %494 = tpu.matmul %489, %490, %cst_255 {dimension_numbers = #tpu.dot_dimension_numbers<[1], [0], [0], [1], [0, 0, 1, 1], [], []>} : vector<16x32xf32>, vector<32x8xf32>, vector<16x8xf32> -> vector<16x8xf32>
    %495 = vector.broadcast %491 : vector<1x8xf32> to vector<16x8xf32>
    %496 = arith.addf %494, %495 : vector<16x8xf32>
    %cst_256 = arith.constant dense<0.000000e+00> : vector<16x8xf32>
    %497 = tpu.matmul %489, %492, %cst_256 {dimension_numbers = #tpu.dot_dimension_numbers<[1], [0], [0], [1], [0, 0, 1, 1], [], []>} : vector<16x32xf32>, vector<32x8xf32>, vector<16x8xf32> -> vector<16x8xf32>
    %498 = vector.broadcast %493 : vector<1x8xf32> to vector<16x8xf32>
    %499 = arith.addf %497, %498 : vector<16x8xf32>
    %500 = math.tanh %499 : vector<16x8xf32>
    %cst_257 = arith.constant 1.000000e+00 : f32
    %501 = vector.broadcast %cst_257 : f32 to vector<16x8xf32>
    %502 = arith.addf %500, %501 : vector<16x8xf32>
    %cst_258 = arith.constant 3.500000e+00 : f32
    %503 = vector.broadcast %cst_258 : f32 to vector<16x8xf32>
    %504 = arith.mulf %503, %502 : vector<16x8xf32>
    %cst_259 = arith.constant -5.000000e+00 : f32
    %505 = vector.broadcast %cst_259 : f32 to vector<16x8xf32>
    %506 = arith.addf %505, %504 : vector<16x8xf32>
    %507 = math.exp %506 : vector<16x8xf32>
    %c0_260 = arith.constant 0 : index
    %c0_261 = arith.constant 0 : index
    %508 = vector.load %arg1[%c0_260, %c0_261] : memref<16x8xf32, #tpu.memory_space<vmem>>, vector<16x8xf32>
    %509 = arith.mulf %507, %508 : vector<16x8xf32>
    %510 = arith.addf %496, %509 : vector<16x8xf32>
    %511 = math.tanh %510 : vector<16x8xf32>
    %cst_262 = arith.constant -5.000000e-01 : f32
    %512 = vector.broadcast %cst_262 : f32 to vector<16x8xf32>
    %513 = arith.mulf %512, %508 : vector<16x8xf32>
    %514 = arith.mulf %513, %508 : vector<16x8xf32>
    %515 = arith.subf %514, %506 : vector<16x8xf32>
    %cst_263 = arith.constant 0.918938517 : f32
    %516 = vector.broadcast %cst_263 : f32 to vector<16x8xf32>
    %517 = arith.subf %515, %516 : vector<16x8xf32>
    %cst_264 = arith.constant -2.000000e+00 : f32
    %518 = vector.broadcast %cst_264 : f32 to vector<16x8xf32>
    %519 = arith.mulf %518, %510 : vector<16x8xf32>
    %cst_265 = arith.constant 0.000000e+00 : f32
    %520 = vector.broadcast %cst_265 : f32 to vector<16x8xf32>
    %521 = arith.maximumf %519, %520 : vector<16x8xf32>
    %522 = math.absf %519 : vector<16x8xf32>
    %cst_266 = arith.constant 0.000000e+00 : f32
    %523 = vector.broadcast %cst_266 : f32 to vector<16x8xf32>
    %524 = arith.subf %523, %522 : vector<16x8xf32>
    %525 = math.exp %524 : vector<16x8xf32>
    %526 = math.log1p %525 : vector<16x8xf32>
    %527 = arith.addf %521, %526 : vector<16x8xf32>
    %cst_267 = arith.constant 0.693147182 : f32
    %528 = vector.broadcast %cst_267 : f32 to vector<16x8xf32>
    %529 = arith.subf %528, %510 : vector<16x8xf32>
    %530 = arith.subf %529, %527 : vector<16x8xf32>
    %cst_268 = arith.constant 2.000000e+00 : f32
    %531 = vector.broadcast %cst_268 : f32 to vector<16x8xf32>
    %532 = arith.mulf %531, %530 : vector<16x8xf32>
    %533 = arith.subf %517, %532 : vector<16x8xf32>
    %cst_269 = arith.constant dense<0.000000e+00> : vector<16xf32>
    %534 = vector.multi_reduction <add>, %533, %cst_269 [1] : vector<16x8xf32> to vector<16xf32>
    %535 = vector.shape_cast %534 : vector<16xf32> to vector<16x1xf32>
    %536 = math.tanh %496 : vector<16x8xf32>
    %c0_270 = arith.constant 0 : index
    %c0_271 = arith.constant 0 : index
    %537 = vector.load %arg7[%c0_270, %c0_271] : memref<16x17xf32, #tpu.memory_space<vmem>>, vector<16x8xf32>
    tpu.vector_store %arg7[%c0_270, %c0_271], %536 {strides = array<i32>} : memref<16x17xf32, #tpu.memory_space<vmem>>, vector<16x8xf32>,
    %c0_272 = arith.constant 0 : index
    %c8 = arith.constant 8 : index
    %538 = vector.load %arg7[%c0_272, %c8] : memref<16x17xf32, #tpu.memory_space<vmem>>, vector<16x8xf32>
    tpu.vector_store %arg7[%c0_272, %c8], %511 {strides = array<i32>} : memref<16x17xf32, #tpu.memory_space<vmem>>, vector<16x8xf32>,
    %c0_273 = arith.constant 0 : index
    %c16 = arith.constant 16 : index
    %539 = vector.load %arg7[%c0_273, %c16] : memref<16x17xf32, #tpu.memory_space<vmem>>, vector<16x1xf32>
    tpu.vector_store %arg7[%c0_273, %c16], %535 {strides = array<i32>} : memref<16x17xf32, #tpu.memory_space<vmem>>, vector<16x1xf32>,
    return
  }
}

</mosaic_0001>

<bundles_post_ra>
// kernel: transformer_actor_forward.1
= control target key start
LH: loop header
LB: loop body
LE: loop exit
PB: predicated region body
PF: predicated region fallthrough
CT: control target
= control target key end

     0   :  { %v10344_v0 = vmov 0.0   ;;  %vm10345_vm0 = vmmov 0   ;;  %vm35_vm1 = vcmask 130048   ;;  %v109_v13 = vlaneseq  ;;  %s12332_s3 = inlined_call_operand.vmem [shape: f32[309,32], index: 3, kind: input, shape index: {}]   ;;  %s12333_s0 = inlined_call_operand.vmem [shape: f32[2,16], index: 0, kind: input, shape index: {}]   ;;  %s12334_s2 = inlined_call_operand.vmem [shape: f32[594,8], index: 2, kind: input, shape index: {}]   ;;  %s12335_s4 = inlined_call_operand.vmem [shape: bf16[2,32,2048], index: 4, kind: input, shape index: {}]   ;;  %s12336_s6 = inlined_call_operand.vmem [shape: bf16[2,2048,32], index: 6, kind: input, shape index: {}]   ;;  %s12337_s5 = inlined_call_operand.vmem [shape: f32[2,1,2048], index: 5, kind: input, shape index: {}]   ;;  %s12338_s7 = inlined_call_operand.vmem [shape: f32[16,17], index: 7, kind: output, shape index: {}]   ;;  %s12339_s1 = inlined_call_operand.vmem [shape: f32[16,8], index: 1, kind: input, shape index: {}]  }
   0x1   :  { %9574 = vmatprep.subr.mxu0 %v10344_v0  ;;  %v28_v1 = vld [vmem:[%s12332_s3 + $0x108] sm:$0xff]  ;;  %v27_v2 = vld [vmem:[%s12332_s3 + $0x100] sm:$0xff]  ;;  %9578 = vmatprep.mubr.msk.f32.mxu0 %vm10345_vm0, %v10344_v0  ;;  %v145_v4 = vld [vmem:[%s12334_s2 + $0x118] sm:$0xff]  ;;  %vm151_vm2 = vcmask 261120   ;;  %vm312_vm3 = vcmask 64512   ;;  %vm8219_vm8 = vcmask 130112  }
   0x2   :  { %9575 = vmatpush3.msra.mxu0 %v28_v1  ;;  %v30_v3 = vld [vmem:[%s12333_s0] sm:$0x3]  ;;  %v140_v5 = vld [vmem:[%s12334_s2 + $0x18] sm:$0xff]  ;;  %v144_v6 = vld [vmem:[%s12334_s2 + $0x110] sm:$0xff]  ;;  %v10427_v14 = vshrl.u32 %v109_v13, 7  ;;  %vm8222_vm9 = vcmask 138368  }
   0x3   :  { %9576 = vmatprep.subr.mxu0 %v10344_v0  ;;  %9581 = vmatprep.subr.mxu1 %v140_v5  ;;  %v139_v7 = vld [vmem:[%s12334_s2 + $0x10] sm:$0xff]  ;;  %v143_v8 = vld [vmem:[%s12334_s2 + $0x108] sm:$0xff]  ;;  %v142_v10 = vld [vmem:[%s12334_s2 + $0x100] sm:$0xff] }
   0x4   :  { %9577 = vmatpush3.msra.mxu0 %v27_v2  ;;  %9582 = vmatpush3.msra.mxu1 %v140_v5  ;;  %v138_v9 = vld [vmem:[%s12334_s2 + $0x8] sm:$0xff]  ;;  %v137_v11 = vld [vmem:[%s12334_s2] sm:$0xff]  ;;  %v425_v12 = vld [vmem:[%s12332_s3 + $0x18] sm:$0xff]  ;;  %v10433_v16 = vsub.s32 0, %v10427_v14  ;;  %v10436_v17 = vsub.s32 1, %v10427_v14  ;;  %v111_v1 = vadd.s32 8, %v10427_v14 }
   0x5   :  { %9579 = vmatmul.mubr.msk.f32.vlgmr.msra.gmra.mxu0 %vm35_vm1, %v30_v3  ;;  %9592 = vmatprep.subr.mxu0 %v145_v4  ;;  %v8229_v15 = vld [vmem:[%s12332_s3 + $0x120] ss:$0 sm:$0xff]  ;;  %v124_v20 = vld [vmem:[%s12332_s3 + $0x110] sm:$0xff]  ;;  %v125_v21 = vld [vmem:[%s12332_s3 + $0x118] sm:$0xff]  ;;  %v129_v2 = vand.u32 127, %v109_v13  ;;  %v130_v3 = vand.u32 7, %v10427_v14 }
   0x6   :  { %9593 = vmatpush3.msra.mxu0 %v145_v4  ;;  %9583 = vmatprep.subr.mxu1 %v139_v7  ;;  %v424_v27 = vld [vmem:[%s12332_s3 + $0x10] sm:$0xff]  ;;  %v423_v28 = vld [vmem:[%s12332_s3 + $0x8] sm:$0xff]  ;;  %v422_v29 = vld [vmem:[%s12332_s3] sm:$0xff]  ;;  %v131_v4 = vand.u32 7, %v111_v1 }
   0x7   :  { %9594 = vmatprep.subr.mxu0 %v144_v6  ;;  %9584 = vmatpush3.msra.mxu1 %v139_v7  ;;  %v514_v30 = vld [vmem:[%s12334_s2 + $0x138] sm:$0xff]  ;;  %v513_v31 = vld [vmem:[%s12334_s2 + $0x130] sm:$0xff]  ;;  %v512_v32 = vld [vmem:[%s12334_s2 + $0x128] sm:$0xff]  ;;  %v132_v5 = vand.u32 7, %v129_v2  ;;  %v10346_v7 = vmov -1e+30  }
   0x8   :  { %9595 = vmatpush3.msra.mxu0 %v144_v6  ;;  %9585 = vmatprep.subr.mxu1 %v138_v9  ;;  %v511_v33 = vld [vmem:[%s12334_s2 + $0x120] sm:$0xff]  ;;  %v786_v34 = vld [vmem:[%s12332_s3 + $0x38] sm:$0xff]  ;;  %v785_v35 = vld [vmem:[%s12332_s3 + $0x30] sm:$0xff] }
   0x9   :  { %9596 = vmatprep.subr.mxu0 %v143_v8  ;;  %9586 = vmatpush3.msra.mxu1 %v138_v9  ;;  %v784_v36 = vld [vmem:[%s12332_s3 + $0x28] sm:$0xff]  ;;  %v783_v37 = vld [vmem:[%s12332_s3 + $0x20] sm:$0xff]  ;;  %v509_v48 = vld [vmem:[%s12334_s2 + $0x38] sm:$0xff]  ;;  %vm133_vm4 = vcmp.eq.s32.totalorder %v130_v3, %v132_v5  ;;  %vm134_vm5 = vcmp.eq.s32.totalorder %v131_v4, %v132_v5 }
   0xa   :  { %9597 = vmatpush3.msra.mxu0 %v143_v8  ;;  %9587 = vmatprep.subr.mxu1 %v137_v11  ;;  %v8234_v38 = vld [vmem:[%s12334_s2 + $0x248] ss:$0 sm:$0xff]  ;;  %v8231_v42 = vld [vmem:[%s12334_s2 + $0x240] ss:$0 sm:$0xff]  ;;  %v8241_v47 = vld [vmem:[%s12332_s3 + $0x121] ss:$0 sm:$0xff] }
   0xb   :  { %9598 = vmatprep.subr.mxu0 %v142_v10  ;;  %9588 = vmatpush3.msra.mxu1 %v137_v11  ;;  %v508_v54 = vld [vmem:[%s12334_s2 + $0x30] sm:$0xff]  ;;  %v507_v55 = vld [vmem:[%s12334_s2 + $0x28] sm:$0xff]  ;;  %v506_v57 = vld [vmem:[%s12334_s2 + $0x20] sm:$0xff]  ;;  %v10547_v8 = vsel %vm133_vm4, 0.0, %v10346_v7  ;;  %v10549_v9 = vsel %vm134_vm5, 0.0, %v10346_v7 }
   0xc   :  { %9599 = vmatpush3.msra.mxu0 %v142_v10  ;;  %v8247_v56 = vld [vmem:[%s12334_s2 + $0x249] ss:$0 sm:$0xff]  ;;  %v8254_v62 = vld [vmem:[%s12332_s3 + $0x122] ss:$0 sm:$0xff]  ;;  %v1476_v3 = vld [vmem:[%s12334_s2 + $0x78] sm:$0xff] }
   0xd   :  { %9610 = vmatprep.subr.mxu0 %v425_v12  ;;  %v1307_v1 = vld [vmem:[%s12332_s3 + $0x48] sm:$0xff]  ;;  %v1306_v2 = vld [vmem:[%s12332_s3 + $0x40] sm:$0xff]  ;;  %v1475_v4 = vld [vmem:[%s12334_s2 + $0x70] sm:$0xff] }
   0xe   :  { %v1474_v5 = vld [vmem:[%s12334_s2 + $0x68] sm:$0xff]  ;;  %v1032_v7 = vld [vmem:[%s12334_s2 + $0x58] sm:$0xff] }
  0xc5   :  { %v105_v18 = vpop.f32.mrf.mxu0 }
  0xc6   :  { %v106_v19 = vadd.f32 %v8229_v15, %v105_v18 }
  0xc7   :  { %v9580_v22 = vpop.f32.mrf.mxu0 }
  0xc8   :  { %v115_v23 = vrot.slane %v106_v19, %v10433_v16  ;;  %v121_v24 = vrot.slane %v106_v19, %v10436_v17  ;;  %v8244_v19 = vld [vmem:[%s12334_s2 + $0x241] ss:$0 sm:$0xff] }
  0xca   :  { %v10446_v25 = vadd.f32 %v124_v20, %v115_v23  ;;  %v10448_v26 = vadd.f32 %v125_v21, %v121_v24 }
  0xcc   :  { %9589 = vmatprep.mubr.msk.f32.mxu1 %vm151_vm2, %v10446_v25  ;;  %9600 = vmatprep.mubr.msk.f32.mxu0 %vm151_vm2, %v10446_v25 }
  0xcd   :  { %9590 = vmatmul.mubr.msk.f32.vlgmr.msra.gmra.mxu1 %vm151_vm2, %v10448_v26  ;;  %9601 = vmatmul.mubr.msk.f32.vlgmr.msra.gmra.mxu0 %vm151_vm2, %v10448_v26 }
  0xce   :  { %9611 = vmatpush3.msra.mxu0 %v425_v12  ;;  %9618 = vmatprep.mubr.msk.f32.mxu0 %vm151_vm2, %v10446_v25 }
  0xcf   :  { %9612 = vmatprep.subr.mxu0 %v424_v27 }
  0xd0   :  { %9613 = vmatpush3.msra.mxu0 %v424_v27 }
  0xd1   :  { %9614 = vmatprep.subr.mxu0 %v423_v28 }
  0xd2   :  { %9615 = vmatpush3.msra.mxu0 %v423_v28 }
  0xd3   :  { %9616 = vmatprep.subr.mxu0 %v422_v29 }
  0xd4   :  { %9617 = vmatpush3.msra.mxu0 %v422_v29 }
  0xd5   :  { %9619 = vmatmul.mubr.msk.f32.vlgmr.msra.gmra.mxu0 %vm151_vm2, %v10448_v26  ;;  %9632 = vmatprep.subr.mxu0 %v514_v30 }
  0xd6   :  { %9633 = vmatpush3.msra.mxu0 %v514_v30  ;;  %9640 = vmatprep.mubr.msk.f32.mxu0 %vm151_vm2, %v10446_v25 }
  0xd7   :  { %9634 = vmatprep.subr.mxu0 %v513_v31 }
  0xd8   :  { %9635 = vmatpush3.msra.mxu0 %v513_v31 }
  0xd9   :  { %9636 = vmatprep.subr.mxu0 %v512_v32 }
  0xda   :  { %9637 = vmatpush3.msra.mxu0 %v512_v32 }
  0xdb   :  { %9638 = vmatprep.subr.mxu0 %v511_v33 }
  0xdc   :  { %9639 = vmatpush3.msra.mxu0 %v511_v33 }
  0xdd   :  { %9641 = vmatmul.mubr.msk.f32.vlgmr.msra.gmra.mxu0 %vm151_vm2, %v10448_v26  ;;  %9650 = vmatprep.subr.mxu0 %v786_v34 }
  0xde   :  { %9651 = vmatpush3.msra.mxu0 %v786_v34  ;;  %9658 = vmatprep.mubr.msk.f32.mxu0 %vm151_vm2, %v10446_v25 }
  0xdf   :  { %9652 = vmatprep.subr.mxu0 %v785_v35 }
  0xe0   :  { %9653 = vmatpush3.msra.mxu0 %v785_v35 }
  0xe1   :  { %9654 = vmatprep.subr.mxu0 %v784_v36 }
  0xe2   :  { %9655 = vmatpush3.msra.mxu0 %v784_v36 }
  0xe3   :  { %9656 = vmatprep.subr.mxu0 %v783_v37 }
  0xe4   :  { %9657 = vmatpush3.msra.mxu0 %v783_v37 }
  0xe5   :  { %9659 = vmatmul.mubr.msk.f32.vlgmr.msra.gmra.mxu0 %vm151_vm2, %v10448_v26 }
 0x18d   :  { %v9591_v39 = vpop.f32.mrf.mxu1  ;;  %v9602_v40 = vpop.f32.mrf.mxu0 }
 0x18e   :  { %v309_v41 = vadd.f32 %v9602_v40, %v8234_v38  ;;  %v230_v50 = vadd.f32 %v9591_v39, %v8231_v42 }
 0x18f   :  { %v224_v43 = vpop.f32.mrf.mxu1  ;;  %v303_v44 = vpop.f32.mrf.mxu0 }
 0x190   :  { %v225_v45 = vadd.f32 %v8231_v42, %v224_v43  ;;  %v304_v46 = vadd.f32 %v8234_v38, %v303_v44  ;;  %9603 = vmatprep.subr.msk.mxu1 %vm312_vm3, %v309_v41  ;;  %v1037_v43 = vld [vmem:[%s12334_s2 + $0x158] sm:$0xff] }
 0x191   :  { %9604 = vmatpush3.xpose.msk.msra.mxu1 %vm312_vm3, %v309_v41 }
 0x192   :  { %9605 = vmatprep.subr.msk.mxu1 %vm312_vm3, %v304_v46  ;;  %9607 = vmatprep.mubr.msk.f32.mxu1 %vm312_vm3, %v225_v45 }
 0x195   :  { %v9620_v49 = vpop.f32.mrf.mxu0  ;;  %9606 = vmatpush3.xpose.msk.msra.mxu1 %vm312_vm3, %v304_v46 }
 0x196   :  { %v503_v51 = vadd.f32 %v9620_v49, %v8241_v47  ;;  %9621 = vmatprep.subr.mxu1 %v509_v48 }
 0x197   :  { %v497_v52 = vpop.f32.mrf.mxu0 }
 0x198   :  { %v498_v53 = vadd.f32 %v8241_v47, %v497_v52  ;;  %9668 = vmatprep.subr.mxu0 %v503_v51  ;;  %9608 = vmatmul.mubr.msk.f32.vlgmr.msra.gmra.mxu1 %vm312_vm3, %v230_v50 }
 0x199   :  { %9669 = vmatpush3.msra.mxu0 %v503_v51  ;;  %9622 = vmatpush3.msra.mxu1 %v509_v48 }
 0x19a   :  { %9629 = vmatprep.mubr.msk.f32.mxu1 %vm151_vm2, %v10446_v25  ;;  %9670 = vmatprep.subr.mxu0 %v498_v53 }
 0x19b   :  { %9623 = vmatprep.subr.mxu1 %v508_v54  ;;  %9671 = vmatpush3.msra.mxu0 %v498_v53 }
 0x19c   :  { %9624 = vmatpush3.msra.mxu1 %v508_v54  ;;  %9686 = vmatprep.subr.mxu0 %v1037_v43 }
 0x19d   :  { %9625 = vmatprep.subr.mxu1 %v507_v55  ;;  %v9642_v58 = vpop.f32.mrf.mxu0 }
 0x19e   :  { %v671_v59 = vadd.f32 %v9642_v58, %v8247_v56  ;;  %9626 = vmatpush3.msra.mxu1 %v507_v55 }
 0x19f   :  { %9627 = vmatprep.subr.mxu1 %v506_v57  ;;  %v665_v60 = vpop.f32.mrf.mxu0 }
 0x1a0   :  { %v666_v61 = vadd.f32 %v8247_v56, %v665_v60  ;;  %9628 = vmatpush3.msra.mxu1 %v506_v57  ;;  %v1036_v60 = vld [vmem:[%s12334_s2 + $0x150] sm:$0xff] }
 0x1a1   :  { %9630 = vmatmul.mubr.msk.f32.vlgmr.msra.gmra.mxu1 %vm151_vm2, %v10448_v26  ;;  %9643 = vmatprep.subr.msk.mxu1 %vm312_vm3, %v671_v59 }
 0x1a2   :  { %9644 = vmatpush3.xpose.msk.msra.mxu1 %vm312_vm3, %v671_v59 }
 0x1a3   :  { %9645 = vmatprep.subr.msk.mxu1 %vm312_vm3, %v666_v61 }
 0x1a5   :  { %v9660_v63 = vpop.f32.mrf.mxu0 }
 0x1a6   :  { %v864_v0 = vadd.f32 %v9660_v63, %v8254_v62  ;;  %9646 = vmatpush3.xpose.msk.msra.mxu1 %vm312_vm3, %v666_v61  ;;  %v1035_v61 = vld [vmem:[%s12334_s2 + $0x148] sm:$0xff]  ;;  %v1309_v63 = vld [vmem:[%s12332_s3 + $0x58] sm:$0xff] }
 0x1a7   :  { %v858_v21 = vpop.f32.mrf.mxu0 }
 0x1a8   :  { %9661 = vmatprep.subr.mxu1 %v864_v0  ;;  %v859_v24 = vadd.f32 %v8254_v62, %v858_v21  ;;  %v1034_v62 = vld [vmem:[%s12334_s2 + $0x140] sm:$0xff] }
 0x1a9   :  { %v1029_v21 = vld [vmem:[%s12334_s2 + $0x40] sm:$0xff] }
 0x258   :  { %v9609_v6 = vpop.f32.mrf.mxu1 }
 0x259   :  { %v397_v12 = vadd.f32 %v9609_v6, %v10549_v9  ;;  %v1473_v6 = vld [vmem:[%s12334_s2 + $0x60] sm:$0xff] }
 0x25a   :  { %v391_v10 = vpop.f32.mrf.mxu1 }
 0x25b   :  { %v392_v11 = vadd.f32 %v391_v10, %v10547_v8  ;;  %v403_v18 = vsel %vm35_vm1, %v397_v12, -inf }
 0x25d   :  { %v400_v15 = vsel %vm35_vm1, %v392_v11, -inf }
 0x25e   :  { %401 = vmax.xlane.f32.xlu0 %v400_v15 }
 0x261   :  { %v9631_v13 = vpop.f32.mrf.mxu1 }
 0x262   :  { %404 = vmax.xlane.f32.xlu0 %v403_v18  ;;  %v592_v23 = vadd.f32 %v9631_v13, %v8244_v19 }
 0x263   :  { %v586_v20 = vpop.f32.mrf.mxu1 }
 0x264   :  { %v587_v22 = vadd.f32 %v8244_v19, %v586_v20  ;;  %v1031_v19 = vld [vmem:[%s12334_s2 + $0x50] sm:$0xff]  ;;  %v1030_v20 = vld [vmem:[%s12334_s2 + $0x48] sm:$0xff] }
 0x266   :  { %9647 = vmatprep.mubr.msk.f32.mxu1 %vm312_vm3, %v587_v22 }
 0x267   :  { %9648 = vmatmul.mubr.msk.f32.vlgmr.msra.gmra.mxu1 %vm312_vm3, %v592_v23 }
 0x268   :  { %9662 = vmatpush3.msra.mxu1 %v864_v0  ;;  %v1308_v0 = vld [vmem:[%s12332_s3 + $0x50] sm:$0xff] }
 0x269   :  { %9663 = vmatprep.subr.mxu1 %v859_v24 }
 0x26a   :  { %9664 = vmatpush3.msra.mxu1 %v859_v24  ;;  %v8264_v24 = vld [vmem:[%s12334_s2 + $0x24a] ss:$0 sm:$0xff] }
 0x26b   :  { %9675 = vmatprep.subr.mxu1 %v1032_v7 }
 0x2e7   :  { %v402_v27 = vpop.xlane.xlu0 %401 }
 0x2e8   :  { %v406_v28 = vsub.f32 %v392_v11, %v402_v27 }
 0x2ea   :  { %v408_v29 = vmul.f32 1.442695, %v406_v28 }
 0x2eb   :  { %v405_v32 = vpop.xlane.xlu0 %404 }
 0x2ec   :  { %10240 = vpow2.f32 %v408_v29  ;;  %v407_v33 = vsub.f32 %v397_v12, %v405_v32 }
 0x2ee   :  { %v410_v34 = vmul.f32 1.442695, %v407_v33 }
 0x2f0   :  { %10242 = vpow2.f32 %v410_v34 }
 0x2f9   :  { %v10241_v30 = vpop.eup %10240 }
 0x2fa   :  { %v412_v31 = vsel %vm35_vm1, %v10241_v30, 0.0 }
 0x2fb   :  { %413 = vadd.xlane.f32.xlu0 %v412_v31  ;;  %v8271_v31 = vld [vmem:[%s12332_s3 + $0x123] ss:$0 sm:$0xff] }
 0x2fd   :  { %v10243_v41 = vpop.eup %10242 }
 0x2fe   :  { %v415_v42 = vsel %vm35_vm1, %v10243_v41, 0.0 }
 0x327   :  { %v9649_v35 = vpop.f32.mrf.mxu1 }
 0x328   :  { %v758_v38 = vadd.f32 %v9649_v35, %v10549_v9 }
 0x329   :  { %v752_v36 = vpop.f32.mrf.mxu1 }
 0x32a   :  { %v753_v37 = vadd.f32 %v752_v36, %v10547_v8  ;;  %v764_v40 = vsel %vm35_vm1, %v758_v38, -inf  ;;  %v8276_v36 = vld [vmem:[%s12334_s2 + $0x243] ss:$0 sm:$0xff] }
 0x32c   :  { %v761_v39 = vsel %vm35_vm1, %v753_v37, -inf }
 0x32d   :  { %762 = vmax.xlane.f32.xlu1 %v761_v39 }
 0x331   :  { %765 = vmax.xlane.f32.xlu1 %v764_v40 }
 0x335   :  { %416 = vadd.xlane.f32.xlu1 %v415_v42 }
 0x384   :  { %v414_v44 = vpop.xlane.xlu0 %413 }
 0x385   :  { %10244 = vrcp.f32 %v414_v44  ;;  %v8261_v44 = vld [vmem:[%s12334_s2 + $0x242] ss:$0 sm:$0xff] }
 0x392   :  { %v10245_v45 = vpop.eup %10244 }
 0x393   :  { %v419_v46 = vmul.f32 %v10245_v45, %v10241_v30 }
 0x395   :  { %9672 = vmatprep.mubr.msk.f32.mxu0 %vm35_vm1, %v419_v46 }
 0x3b6   :  { %v763_v47 = vpop.xlane.xlu1 %762 }
 0x3b7   :  { %v767_v48 = vsub.f32 %v753_v37, %v763_v47 }
 0x3b9   :  { %v769_v49 = vmul.f32 1.442695, %v767_v48 }
 0x3ba   :  { %v766_v50 = vpop.xlane.xlu1 %765 }
 0x3bb   :  { %10246 = vpow2.f32 %v769_v49  ;;  %v768_v51 = vsub.f32 %v758_v38, %v766_v50 }
 0x3bd   :  { %v771_v52 = vmul.f32 1.442695, %v768_v51 }
 0x3be   :  { %v417_v53 = vpop.xlane.xlu1 %416 }
 0x3bf   :  { %10248 = vpow2.f32 %v771_v52 }
 0x3c0   :  { %10250 = vrcp.f32 %v417_v53 }
 0x3c8   :  { %v10247_v54 = vpop.eup %10246 }
 0x3c9   :  { %v773_v55 = vsel %vm35_vm1, %v10247_v54, 0.0 }
 0x3ca   :  { %774 = vadd.xlane.f32.xlu0 %v773_v55 }
 0x3cc   :  { %v10249_v56 = vpop.eup %10248 }
 0x3cd   :  { %v10251_v57 = vpop.eup %10250  ;;  %v776_v58 = vsel %vm35_vm1, %v10249_v56, 0.0 }
 0x3ce   :  { %777 = vadd.xlane.f32.xlu1 %v776_v58  ;;  %v421_v59 = vmul.f32 %v10251_v57, %v10243_v41 }
 0x3d0   :  { %9673 = vmatmul.mubr.msk.f32.vlgmr.msra.gmra.mxu0 %vm35_vm1, %v421_v59 }
 0x3d1   :  { %9687 = vmatpush3.msra.mxu0 %v1037_v43  ;;  %9694 = vmatprep.mubr.msk.f32.mxu0 %vm151_vm2, %v10446_v25 }
 0x3d2   :  { %9688 = vmatprep.subr.mxu0 %v1036_v60 }
 0x3d3   :  { %9689 = vmatpush3.msra.mxu0 %v1036_v60 }
 0x3d4   :  { %9690 = vmatprep.subr.mxu0 %v1035_v61 }
 0x3d5   :  { %9691 = vmatpush3.msra.mxu0 %v1035_v61 }
 0x3d6   :  { %9692 = vmatprep.subr.mxu0 %v1034_v62 }
 0x3d7   :  { %9693 = vmatpush3.msra.mxu0 %v1034_v62 }
 0x3d8   :  { %9695 = vmatmul.mubr.msk.f32.vlgmr.msra.gmra.mxu0 %vm151_vm2, %v10448_v26  ;;  %9704 = vmatprep.subr.mxu0 %v1309_v63 }
 0x3d9   :  { %9705 = vmatpush3.msra.mxu0 %v1309_v63  ;;  %9712 = vmatprep.mubr.msk.f32.mxu0 %vm151_vm2, %v10446_v25 }
 0x3da   :  { %9706 = vmatprep.subr.mxu0 %v1308_v0 }
 0x3db   :  { %9707 = vmatpush3.msra.mxu0 %v1308_v0  ;;  %v1481_v0 = vld [vmem:[%s12334_s2 + $0x178] sm:$0xff] }
 0x3dc   :  { %9708 = vmatprep.subr.mxu0 %v1307_v1 }
 0x3dd   :  { %9709 = vmatpush3.msra.mxu0 %v1307_v1 }
 0x3de   :  { %9710 = vmatprep.subr.mxu0 %v1306_v2 }
 0x3df   :  { %9711 = vmatpush3.msra.mxu0 %v1306_v2 }
 0x3e0   :  { %9713 = vmatmul.mubr.msk.f32.vlgmr.msra.gmra.mxu0 %vm151_vm2, %v10448_v26  ;;  %9722 = vmatprep.subr.mxu0 %v1476_v3 }
 0x3e1   :  { %9723 = vmatpush3.msra.mxu0 %v1476_v3  ;;  %9730 = vmatprep.mubr.msk.f32.mxu0 %vm151_vm2, %v10446_v25 }
 0x3e2   :  { %9724 = vmatprep.subr.mxu0 %v1475_v4 }
 0x3e3   :  { %9725 = vmatpush3.msra.mxu0 %v1475_v4 }
 0x3e4   :  { %9726 = vmatprep.subr.mxu0 %v1474_v5 }
 0x3e5   :  { %9727 = vmatpush3.msra.mxu0 %v1474_v5 }
 0x3e6   :  { %9728 = vmatprep.subr.mxu0 %v1473_v6 }
 0x3e7   :  { %9729 = vmatpush3.msra.mxu0 %v1473_v6 }
 0x3e8   :  { %9731 = vmatmul.mubr.msk.f32.vlgmr.msra.gmra.mxu0 %vm151_vm2, %v10448_v26 }
 0x453   :  { %v775_v10 = vpop.xlane.xlu0 %774 }
 0x454   :  { %10252 = vrcp.f32 %v775_v10  ;;  %v1479_v10 = vld [vmem:[%s12334_s2 + $0x168] sm:$0xff] }
 0x457   :  { %v778_v11 = vpop.xlane.xlu1 %777 }
 0x458   :  { %10254 = vrcp.f32 %v778_v11  ;;  %v1478_v11 = vld [vmem:[%s12334_s2 + $0x160] sm:$0xff] }
 0x461   :  { %v10253_v12 = vpop.eup %10252 }
 0x462   :  { %v780_v15 = vmul.f32 %v10253_v12, %v10247_v54  ;;  %v1753_v12 = vld [vmem:[%s12332_s3 + $0x78] sm:$0xff] }
 0x464   :  { %9665 = vmatprep.mubr.msk.f32.mxu1 %vm35_vm1, %v780_v15  ;;  %v1752_v15 = vld [vmem:[%s12332_s3 + $0x70] sm:$0xff] }
 0x465   :  { %v10255_v13 = vpop.eup %10254 }
 0x466   :  { %v782_v18 = vmul.f32 %v10255_v13, %v10249_v56  ;;  %v1751_v13 = vld [vmem:[%s12332_s3 + $0x68] sm:$0xff] }
 0x468   :  { %9666 = vmatmul.mubr.msk.f32.vlgmr.msra.gmra.mxu1 %vm35_vm1, %v782_v18  ;;  %v1750_v18 = vld [vmem:[%s12332_s3 + $0x60] sm:$0xff] }
 0x469   :  { %9676 = vmatpush3.msra.mxu1 %v1032_v7  ;;  %9683 = vmatprep.mubr.msk.f32.mxu1 %vm151_vm2, %v10446_v25  ;;  %v1480_v7 = vld [vmem:[%s12334_s2 + $0x170] sm:$0xff] }
 0x46a   :  { %9677 = vmatprep.subr.mxu1 %v1031_v19 }
 0x46b   :  { %9678 = vmatpush3.msra.mxu1 %v1031_v19 }
 0x46c   :  { %9679 = vmatprep.subr.mxu1 %v1030_v20 }
 0x46d   :  { %9680 = vmatpush3.msra.mxu1 %v1030_v20 }
 0x46e   :  { %9681 = vmatprep.subr.mxu1 %v1029_v21 }
 0x46f   :  { %9682 = vmatpush3.msra.mxu1 %v1029_v21 }
 0x470   :  { %9684 = vmatmul.mubr.msk.f32.vlgmr.msra.gmra.mxu1 %vm151_vm2, %v10448_v26 }
 0x490   :  { %v10636_v22 = vpop.f32.mrf.mxu0 }
 0x492   :  { %v10638_v23 = vpop.f32.mrf.mxu0 }
 0x498   :  { %v9696_v27 = vpop.f32.mrf.mxu0 }
 0x499   :  { %v1194_v28 = vadd.f32 %v9696_v27, %v8264_v24 }
 0x49a   :  { %v1188_v29 = vpop.f32.mrf.mxu0 }
 0x49b   :  { %v1189_v30 = vadd.f32 %v8264_v24, %v1188_v29  ;;  %9697 = vmatprep.subr.msk.mxu1 %vm312_vm3, %v1194_v28  ;;  %v8279_v29 = vld [vmem:[%s12334_s2 + $0x24b] ss:$0 sm:$0xff] }
 0x49c   :  { %9698 = vmatpush3.xpose.msk.msra.mxu1 %vm312_vm3, %v1194_v28 }
 0x49d   :  { %9699 = vmatprep.subr.msk.mxu1 %vm312_vm3, %v1189_v30 }
 0x4a0   :  { %9700 = vmatpush3.xpose.msk.msra.mxu1 %vm312_vm3, %v1189_v30  ;;  %v9714_v32 = vpop.f32.mrf.mxu0 }
 0x4a1   :  { %v1387_v33 = vadd.f32 %v9714_v32, %v8271_v31 }
 0x4a2   :  { %v1381_v34 = vpop.f32.mrf.mxu0 }
 0x4a3   :  { %v1382_v35 = vadd.f32 %v8271_v31, %v1381_v34  ;;  %9715 = vmatprep.subr.mxu1 %v1387_v33 }
 0x4a8   :  { %v9732_v37 = vpop.f32.mrf.mxu0 }
 0x4a9   :  { %v10653_v38 = vadd.f32 %v9732_v37, %v8276_v36 }
 0x4aa   :  { %v1553_v39 = vpop.f32.mrf.mxu0 }
 0x4ab   :  { %v1554_v40 = vadd.f32 %v8276_v36, %v1553_v39 }
 0x4ad   :  { %9748 = vmatprep.mubr.msk.f32.mxu0 %vm312_vm3, %v1554_v40 }
 0x528   :  { %v10656_v41 = vpop.f32.mrf.mxu1 }
 0x529   :  { %v1026_v19 = vadd.f32 %v10636_v22, %v10656_v41  ;;  %v8286_v22 = vld [vmem:[%s12332_s3 + $0x124] ss:$0 sm:$0xff] }
 0x52a   :  { %v10658_v42 = vpop.f32.mrf.mxu1 }
 0x52b   :  { %v1021_v21 = vadd.f32 %v10638_v23, %v10658_v42 }
 0x530   :  { %v9685_v43 = vpop.f32.mrf.mxu1 }
 0x531   :  { %v1115_v47 = vadd.f32 %v9685_v43, %v8261_v44 }
 0x532   :  { %v1109_v45 = vpop.f32.mrf.mxu1 }
 0x533   :  { %v1110_v46 = vadd.f32 %v8261_v44, %v1109_v45 }
 0x535   :  { %9701 = vmatprep.mubr.msk.f32.mxu1 %vm312_vm3, %v1110_v46 }
 0x536   :  { %9702 = vmatmul.mubr.msk.f32.vlgmr.msra.gmra.mxu1 %vm312_vm3, %v1115_v47 }
 0x537   :  { %9716 = vmatpush3.msra.mxu1 %v1387_v33 }
 0x538   :  { %9717 = vmatprep.subr.mxu1 %v1382_v35 }
 0x539   :  { %9718 = vmatpush3.msra.mxu1 %v1382_v35 }
 0x53a   :  { %9733 = vmatprep.subr.mxu1 %v1481_v0 }
 0x5f6   :  { %v9703_v48 = vpop.f32.mrf.mxu1 }
 0x5f7   :  { %v1281_v49 = vadd.f32 %v9703_v48, %v10549_v9 }
 0x5f8   :  { %v1275_v50 = vpop.f32.mrf.mxu1 }
 0x5f9   :  { %v1276_v51 = vadd.f32 %v1275_v50, %v10547_v8  ;;  %v1287_v52 = vsel %vm35_vm1, %v1281_v49, -inf }
 0x5fa   :  { %1288 = vmax.xlane.f32.xlu1 %v1287_v52 }
 0x5fb   :  { %v1284_v53 = vsel %vm35_vm1, %v1276_v51, -inf }
 0x5fc   :  { %1285 = vmax.xlane.f32.xlu0 %v1284_v53 }
 0x683   :  { %v1289_v54 = vpop.xlane.xlu1 %1288 }
 0x684   :  { %v1291_v55 = vsub.f32 %v1281_v49, %v1289_v54 }
 0x685   :  { %v1286_v56 = vpop.xlane.xlu0 %1285 }
 0x686   :  { %v1294_v57 = vmul.f32 1.442695, %v1291_v55  ;;  %v1290_v58 = vsub.f32 %v1276_v51, %v1286_v56 }
 0x688   :  { %10256 = vpow2.f32 %v1294_v57  ;;  %v1292_v59 = vmul.f32 1.442695, %v1290_v58 }
 0x68a   :  { %10258 = vpow2.f32 %v1292_v59 }
 0x695   :  { %v10257_v60 = vpop.eup %10256 }
 0x696   :  { %v1299_v61 = vsel %vm35_vm1, %v10257_v60, 0.0 }
 0x697   :  { %v10259_v62 = vpop.eup %10258  ;;  %1300 = vadd.xlane.f32.xlu1 %v1299_v61 }
 0x698   :  { %v1296_v63 = vsel %vm35_vm1, %v10259_v62, 0.0 }
 0x699   :  { %1297 = vadd.xlane.f32.xlu0 %v1296_v63 }
 0x720   :  { %v1301_v1 = vpop.xlane.xlu1 %1300 }
 0x721   :  { %10260 = vrcp.f32 %v1301_v1 }
 0x722   :  { %v1298_v2 = vpop.xlane.xlu0 %1297 }
 0x723   :  { %10262 = vrcp.f32 %v1298_v2 }
 0x72e   :  { %v10261_v3 = vpop.eup %10260 }
 0x72f   :  { %v1305_v6 = vmul.f32 %v10261_v3, %v10257_v60  ;;  %v8291_v60 = vld [vmem:[%s12332_s3 + $0x125] ss:$0 sm:$0xff] }
 0x730   :  { %v10263_v4 = vpop.eup %10262 }
 0x731   :  { %v1303_v5 = vmul.f32 %v10263_v4, %v10259_v62 }
 0x733   :  { %9719 = vmatprep.mubr.msk.f32.mxu1 %vm35_vm1, %v1303_v5 }
 0x734   :  { %9720 = vmatmul.mubr.msk.f32.vlgmr.msra.gmra.mxu1 %vm35_vm1, %v1305_v6 }
 0x735   :  { %9734 = vmatpush3.msra.mxu1 %v1481_v0  ;;  %9741 = vmatprep.mubr.msk.f32.mxu1 %vm151_vm2, %v10446_v25 }
 0x736   :  { %9735 = vmatprep.subr.mxu1 %v1480_v7 }
 0x737   :  { %9736 = vmatpush3.msra.mxu1 %v1480_v7 }
 0x738   :  { %9737 = vmatprep.subr.mxu1 %v1479_v10 }
 0x739   :  { %9738 = vmatpush3.msra.mxu1 %v1479_v10 }
 0x73a   :  { %9739 = vmatprep.subr.mxu1 %v1478_v11 }
 0x73b   :  { %9740 = vmatpush3.msra.mxu1 %v1478_v11 }
 0x73c   :  { %9742 = vmatmul.mubr.msk.f32.vlgmr.msra.gmra.mxu1 %vm151_vm2, %v10448_v26  ;;  %9751 = vmatprep.subr.mxu1 %v1753_v12 }
 0x73d   :  { %9752 = vmatpush3.msra.mxu1 %v1753_v12  ;;  %9759 = vmatprep.mubr.msk.f32.mxu1 %vm151_vm2, %v10446_v25 }
 0x73e   :  { %9753 = vmatprep.subr.mxu1 %v1752_v15 }
 0x73f   :  { %9754 = vmatpush3.msra.mxu1 %v1752_v15 }
 0x740   :  { %9755 = vmatprep.subr.mxu1 %v1751_v13 }
 0x741   :  { %9756 = vmatpush3.msra.mxu1 %v1751_v13 }
 0x742   :  { %9757 = vmatprep.subr.mxu1 %v1750_v18 }
 0x743   :  { %9758 = vmatpush3.msra.mxu1 %v1750_v18 }
 0x744   :  { %9760 = vmatmul.mubr.msk.f32.vlgmr.msra.gmra.mxu1 %vm151_vm2, %v10448_v26 }
 0x7f4   :  { %v9721_v20 = vpop.f32.mrf.mxu1 }
 0x7f5   :  { %v1472_v24 = vadd.f32 %v9721_v20, %v1026_v19  ;;  %v1974_v20 = vld [vmem:[%s12335_s4 + $0xc0] sm:$0xff] }
 0x7f6   :  { %v1462_v27 = vpop.f32.mrf.mxu1 }
 0x7f7   :  { %v1471_v28 = vadd.f32 %v1462_v27, %v1021_v21  ;;  %v1973_v21 = vld [vmem:[%s12335_s4 + $0x88] sm:$0xff] }
 0x7f8   :  { %v1975_v27 = vld [vmem:[%s12335_s4 + $0xc8] sm:$0xff] }
 0x7fc   :  { %v9743_v30 = vpop.f32.mrf.mxu1 }
 0x7fd   :  { %v1638_v31 = vadd.f32 %v9743_v30, %v8279_v29  ;;  %v8301_v30 = vcombine.high %v1973_v21, %v1975_v27 }
 0x7fe   :  { %v1632_v32 = vpop.f32.mrf.mxu1 }
 0x7ff   :  { %v1633_v33 = vadd.f32 %v8279_v29, %v1632_v32  ;;  %9744 = vmatprep.subr.msk.mxu0 %vm312_vm3, %v1638_v31  ;;  %v8300_v29 = vcombine.low %v1973_v21, %v1975_v27  ;;  %v1970_v32 = vld [vmem:[%s12335_s4 + $0x40] sm:$0xff]  ;;  %v9995_v21 = vld [vmem:[%s12336_s6 + $0x1a8] sm:$0xff]  }
 0x800   :  { %9745 = vmatpush3.xpose.msk.msra.mxu0 %vm312_vm3, %v1638_v31  ;;  %v1968_v31 = vld [vmem:[%s12335_s4] sm:$0xff] }
 0x801   :  { %9746 = vmatprep.subr.msk.mxu0 %vm312_vm3, %v1633_v33  ;;  %v9997_v27 = vld [vmem:[%s12336_s6 + $0x1e0] sm:$0xff]  }
 0x804   :  { %9747 = vmatpush3.xpose.msk.msra.mxu0 %vm312_vm3, %v1633_v33  ;;  %v9761_v23 = vpop.f32.mrf.mxu1  ;;  %v1969_v33 = vld [vmem:[%s12335_s4 + $0x8] sm:$0xff] }
 0x805   :  { %v1831_v34 = vadd.f32 %v9761_v23, %v8286_v22  ;;  %v1971_v23 = vld [vmem:[%s12335_s4 + $0x48] sm:$0xff] }
 0x806   :  { %v1825_v35 = vpop.f32.mrf.mxu1 }
 0x807   :  { %v1826_v36 = vadd.f32 %v8286_v22, %v1825_v35  ;;  %9749 = vmatmul.mubr.msk.f32.vlgmr.msra.gmra.mxu0 %vm312_vm3, %v10653_v38  ;;  %9762 = vmatprep.subr.mxu0 %v1831_v34  ;;  %v8295_v22 = vcombine.high %v1968_v31, %v1970_v32  ;;  %v8296_v35 = vcombine.low %v1969_v33, %v1971_v23 }
 0x808   :  { %9763 = vmatpush3.msra.mxu0 %v1831_v34  ;;  %v8294_v34 = vcombine.low %v1968_v31, %v1970_v32  ;;  %v10001_v31 = vld [vmem:[%s12336_s6 + $0x1d8] sm:$0xff]  }
 0x809   :  { %9764 = vmatprep.subr.mxu0 %v1826_v36  ;;  %v10002_v32 = vld [vmem:[%s12336_s6 + $0x118] sm:$0xff]  }
 0x80a   :  { %9765 = vmatpush3.msra.mxu0 %v1826_v36  ;;  %v8297_v36 = vcombine.high %v1969_v33, %v1971_v23  ;;  %v10003_v33 = vld [vmem:[%s12336_s6 + $0x198] sm:$0xff]   ;;  %v10005_v23 = vld [vmem:[%s12336_s6 + $0x1d0] sm:$0xff]  }
 0x80b   :  { %2096 = vmatprep.subr.bf16.mxu0 %v8301_v30  ;;  %v10000_v30 = vld [vmem:[%s12336_s6 + $0x158] sm:$0xff]  }
 0x8c7   :  { %v9750_v37 = vpop.f32.mrf.mxu0 }
 0x8c8   :  { %v1725_v39 = vadd.f32 %v9750_v37, %v10549_v9  ;;  %v2207_v37 = vld [vmem:[%s12335_s4 + $0x90] sm:$0xff] }
 0x8c9   :  { %v1719_v40 = vpop.f32.mrf.mxu0 }
 0x8ca   :  { %v1720_v41 = vadd.f32 %v1719_v40, %v10547_v8  ;;  %v1731_v42 = vsel %vm35_vm1, %v1725_v39, -inf  ;;  %v2208_v40 = vld [vmem:[%s12335_s4 + $0x98] sm:$0xff] }
 0x8cb   :  { %1732 = vmax.xlane.f32.xlu1 %v1731_v42  ;;  %v2210_v42 = vld [vmem:[%s12335_s4 + $0xd8] sm:$0xff] }
 0x8cc   :  { %v1728_v43 = vsel %vm35_vm1, %v1720_v41, -inf }
 0x8cd   :  { %1729 = vmax.xlane.f32.xlu0 %v1728_v43  ;;  %v10347_v43 = vmov 0  }
 0x8ce   :  { %2073 = vmatprep.mubr.bf16.mxu1 %v10347_v43 }
 0x954   :  { %v1733_v44 = vpop.xlane.xlu1 %1732 }
 0x955   :  { %v1735_v45 = vsub.f32 %v1725_v39, %v1733_v44  ;;  %v2209_v39 = vld [vmem:[%s12335_s4 + $0xd0] sm:$0xff] }
 0x956   :  { %v1730_v46 = vpop.xlane.xlu0 %1729  ;;  %v8308_v44 = vcombine.low %v2207_v37, %v2209_v39 }
 0x957   :  { %v1738_v38 = vmul.f32 1.442695, %v1735_v45  ;;  %v1734_v47 = vsub.f32 %v1720_v41, %v1730_v46  ;;  %v8309_v41 = vcombine.high %v2207_v37, %v2209_v39  ;;  %v8310_v45 = vcombine.low %v2208_v40, %v2210_v42  ;;  %v10009_v37 = vld [vmem:[%s12336_s6 + $0x1c8] sm:$0xff]  }
 0x958   :  { %v8311_v46 = vcombine.high %v2208_v40, %v2210_v42  ;;  %v10010_v39 = vld [vmem:[%s12336_s6 + $0x108] sm:$0xff]   ;;  %v10013_v42 = vld [vmem:[%s12336_s6 + $0x1c0] sm:$0xff]  }
 0x959   :  { %10264 = vpow2.f32 %v1738_v38  ;;  %v1736_v48 = vmul.f32 1.442695, %v1734_v47  ;;  %v10011_v40 = vld [vmem:[%s12336_s6 + $0x188] sm:$0xff]  }
 0x95b   :  { %10266 = vpow2.f32 %v1736_v48 }
 0x966   :  { %v10265_v49 = vpop.eup %10264 }
 0x967   :  { %v1743_v50 = vsel %vm35_vm1, %v10265_v49, 0.0 }
 0x968   :  { %v10267_v51 = vpop.eup %10266  ;;  %1744 = vadd.xlane.f32.xlu1 %v1743_v50 }
 0x969   :  { %v1740_v52 = vsel %vm35_vm1, %v10267_v51, 0.0 }
 0x96a   :  { %1741 = vadd.xlane.f32.xlu0 %v1740_v52  ;;  %v8292_v52 = vld [vmem:[%s12332_s3 + $0x126] ss:$0 sm:$0xff] }
 0x9f1   :  { %v1745_v53 = vpop.xlane.xlu1 %1744 }
 0x9f2   :  { %10268 = vrcp.f32 %v1745_v53 }
 0x9f3   :  { %v1742_v54 = vpop.xlane.xlu0 %1741 }
 0x9f4   :  { %10270 = vrcp.f32 %v1742_v54 }
 0x9ff   :  { %v10269_v55 = vpop.eup %10268 }
 0xa00   :  { %v1749_v58 = vmul.f32 %v10269_v55, %v10265_v49 }
 0xa01   :  { %v10271_v56 = vpop.eup %10270 }
 0xa02   :  { %v1747_v57 = vmul.f32 %v10271_v56, %v10267_v51  ;;  %v8293_v56 = vld [vmem:[%s12332_s3 + $0x127] ss:$0 sm:$0xff] }
 0xa04   :  { %9766 = vmatprep.mubr.msk.f32.mxu0 %vm35_vm1, %v1747_v57 }
 0xa05   :  { %9767 = vmatmul.mubr.msk.f32.vlgmr.msra.gmra.mxu0 %vm35_vm1, %v1749_v58 }
 0xa06   :  { %2097 = vmatpush1.bf16.msra.mxu0 %v8300_v29  ;;  %2116 = vmatprep.mubr.bf16.mxu0 %v10347_v43  ;;  %v9999_v29 = vld [vmem:[%s12336_s6 + $0x1a0] sm:$0xff]  }
 0xa07   :  { %2098 = vmatprep.subr.bf16.mxu0 %v8297_v36  ;;  %v10008_v36 = vld [vmem:[%s12336_s6 + $0x148] sm:$0xff]  }
 0xa0a   :  { %2099 = vmatpush1.bf16.msra.mxu0 %v8296_v35  ;;  %v10007_v35 = vld [vmem:[%s12336_s6 + $0x190] sm:$0xff]  }
 0xa0b   :  { %2328 = vmatprep.subr.bf16.mxu0 %v8311_v46  ;;  %v10016_v46 = vld [vmem:[%s12336_s6 + $0x78] sm:$0xff]  }
 0xac5   :  { %v9768_v59 = vpop.f32.mrf.mxu0 }
 0xac6   :  { %v1916_v61 = vadd.f32 %v9768_v59, %v1472_v24  ;;  %v2203_v59 = vld [vmem:[%s12335_s4 + $0x10] sm:$0xff] }
 0xac7   :  { %v1906_v62 = vpop.f32.mrf.mxu0 }
 0xac8   :  { %v1923_v63 = vadd.f32 %v8291_v60, %v1916_v61  ;;  %v1915_v0 = vadd.f32 %v1906_v62, %v1471_v28  ;;  %v2204_v61 = vld [vmem:[%s12335_s4 + $0x18] sm:$0xff] }
 0xac9   :  { %v2206_v62 = vld [vmem:[%s12335_s4 + $0x58] sm:$0xff] }
 0xaca   :  { %v1922_v1 = vadd.f32 %v8291_v60, %v1915_v0  ;;  %v1925_v2 = vadd.f32 %v1923_v63, %v10448_v26  ;;  %v2205_v60 = vld [vmem:[%s12335_s4 + $0x50] sm:$0xff] }
 0xacc   :  { %v1929_v3 = vsel %vm151_vm2, %v1925_v2, 0.0  ;;  %v1924_v4 = vadd.f32 %v1922_v1, %v10446_v25  ;;  %v1972_v25 = vld [vmem:[%s12335_s4 + $0x80] sm:$0xff] }
 0xacd   :  { %1930 = vadd.xlane.f32.xlu1 %v1929_v3  ;;  %v8299_v24 = vcombine.high %v1972_v25, %v1974_v20  ;;  %v8298_v28 = vcombine.low %v1972_v25, %v1974_v20  ;;  %v8305_v3 = vcombine.high %v2203_v59, %v2205_v60  ;;  %v9993_v25 = vld [vmem:[%s12336_s6 + $0x1e8] sm:$0xff]  }
 0xace   :  { %v1926_v5 = vsel %vm151_vm2, %v1924_v4, 0.0  ;;  %v9994_v20 = vld [vmem:[%s12336_s6 + $0x128] sm:$0xff]  }
 0xacf   :  { %1927 = vadd.xlane.f32.xlu0 %v1926_v5  ;;  %2053 = vmatprep.subr.bf16.mxu1 %v8299_v24  ;;  %v9984_v5 = vld [vmem:[%s12336_s6 + $0x178] sm:$0xff]   ;;  %v9996_v24 = vld [vmem:[%s12336_s6 + $0x160] sm:$0xff]  }
 0xad0   :  { %2054 = vmatpush1.bf16.msra.mxu1 %v8298_v28  ;;  %v9998_v28 = vld [vmem:[%s12336_s6 + $0x120] sm:$0xff]  }
 0xad1   :  { %2055 = vmatprep.subr.bf16.mxu1 %v8295_v22  ;;  %v10004_v22 = vld [vmem:[%s12336_s6 + $0x150] sm:$0xff]  }
 0xad4   :  { %2056 = vmatpush1.bf16.msra.mxu1 %v8294_v34  ;;  %v10006_v34 = vld [vmem:[%s12336_s6 + $0x110] sm:$0xff]  }
 0xad5   :  { %2285 = vmatprep.subr.bf16.mxu1 %v8309_v41  ;;  %v10012_v41 = vld [vmem:[%s12336_s6 + $0x140] sm:$0xff]  }
 0xb56   :  { %v1931_v6 = vpop.xlane.xlu1 %1930 }
 0xb57   :  { %v1934_v7 = vmul.f32 0.03125, %v1931_v6  ;;  %v9985_v6 = vld [vmem:[%s12336_s6 + $0x1f8] sm:$0xff]  }
 0xb58   :  { %v1928_v10 = vpop.xlane.xlu0 %1927 }
 0xb59   :  { %v1936_v11 = vsub.f32 %v1925_v2, %v1934_v7  ;;  %v1933_v12 = vmul.f32 0.03125, %v1928_v10  ;;  %v8304_v7 = vcombine.low %v2203_v59, %v2205_v60  ;;  %v8306_v10 = vcombine.low %v2204_v61, %v2206_v62 }
 0xb5b   :  { %v1935_v15 = vsub.f32 %v1924_v4, %v1933_v12  ;;  %v1938_v13 = vmul.f32 %v1936_v11, %v1936_v11  ;;  %v8307_v4 = vcombine.high %v2204_v61, %v2206_v62  ;;  %v9987_v12 = vld [vmem:[%s12336_s6 + $0x1b8] sm:$0xff]  }
 0xb5d   :  { %v1942_v18 = vsel %vm151_vm2, %v1938_v13, 0.0  ;;  %v1937_v19 = vmul.f32 %v1935_v15, %v1935_v15  ;;  %v9989_v13 = vld [vmem:[%s12336_s6 + $0x1f0] sm:$0xff]  }
 0xb5e   :  { %1943 = vadd.xlane.f32.xlu1 %v1942_v18  ;;  %v9990_v18 = vld [vmem:[%s12336_s6 + $0x130] sm:$0xff]  }
 0xb5f   :  { %v1939_v26 = vsel %vm151_vm2, %v1937_v19, 0.0  ;;  %v9991_v19 = vld [vmem:[%s12336_s6 + $0x1b0] sm:$0xff]  }
 0xb60   :  { %1940 = vadd.xlane.f32.xlu0 %v1939_v26  ;;  %v9992_v26 = vld [vmem:[%s12336_s6 + $0x168] sm:$0xff]  }
 0xbe7   :  { %v1944_v38 = vpop.xlane.xlu1 %1943 }
 0xbe8   :  { %v1946_v47 = vmul.f32 0.03125, %v1944_v38  ;;  %v10017_v38 = vld [vmem:[%s12336_s6 + $0xf8] sm:$0xff]  }
 0xbe9   :  { %v1941_v48 = vpop.xlane.xlu0 %1940 }
 0xbea   :  { %v1948_v49 = vadd.f32 1e-05, %v1946_v47  ;;  %v1945_v50 = vmul.f32 0.03125, %v1941_v48 }
 0xbec   :  { %10272 = vrsqrt.f32 %v1948_v49  ;;  %v1947_v51 = vadd.f32 1e-05, %v1945_v50 }
 0xbee   :  { %10274 = vrsqrt.f32 %v1947_v51 }
 0xbf9   :  { %v10273_v53 = vpop.eup %10272 }
 0xbfa   :  { %v1952_v54 = vmul.f32 %v10273_v53, %v1936_v11  ;;  %v9986_v11 = vld [vmem:[%s12336_s6 + $0x138] sm:$0xff]  }
 0xbfb   :  { %v10275_v55 = vpop.eup %10274 }
 0xbfc   :  { %v1959_v57 = vmul.f32 %v8292_v52, %v1952_v54  ;;  %v1951_v58 = vmul.f32 %v10275_v55, %v1935_v15  ;;  %v9988_v15 = vld [vmem:[%s12336_s6 + $0x170] sm:$0xff]   ;;  %v10923_v55 = vsub.s32 3, %v10427_v14 }
 0xbfe   :  { %v1958_v63 = vmul.f32 %v8292_v52, %v1951_v58  ;;  %v10794_v0 = vadd.f32 %v8293_v56, %v1959_v57  ;;  %v10929_v57 = vsub.s32 2, %v10427_v14 }
 0xc00   :  { %v10796_v1 = vadd.f32 %v8293_v56, %v1958_v63  ;;  %v2211_v56 = vld [vmem:[%s12337_s5 + $0x4] sm:$0xf] }
 0xc01   :  { %v2220_v60 = vrot.slane %v2211_v56, %v10436_v17  ;;  %v2228_v61 = vrot.slane %v2211_v56, %v10923_v55  ;;  %v2216_v62 = vrot.slane %v2211_v56, %v10433_v16  ;;  %v2224_v63 = vrot.slane %v2211_v56, %v10929_v57  ;;  %v10022_v56 = vld [vmem:[%s12336_s6 + $0x30] sm:$0xff]  }
 0xc02   :  { %v10800_v2 = vpack.c.bf16 %v10794_v0, %v10796_v1 }
 0xc04   :  { %8302 = vmatmul.mubr.msk.bf16.vlgmr.msra.gmra.mxu1 %vm151_vm2, %v10800_v2  ;;  %8303 = vmatmul.mubr.msk.bf16.vlgmr.msra.gmra.mxu0 %vm151_vm2, %v10800_v2 }
 0xc05   :  { %2286 = vmatpush1.bf16.msra.mxu1 %v8308_v44  ;;  %2329 = vmatpush1.bf16.msra.mxu0 %v8310_v45  ;;  %v10014_v44 = vld [vmem:[%s12336_s6 + $0x100] sm:$0xff]  }
 0xc06   :  { %2287 = vmatprep.subr.bf16.mxu1 %v8305_v3  ;;  %2330 = vmatprep.subr.bf16.mxu0 %v8307_v4  ;;  %v10015_v45 = vld [vmem:[%s12336_s6 + $0x180] sm:$0xff]  }
 0xc07   :  { %2305 = vmatprep.mubr.bf16.mxu1 %v10347_v43  ;;  %2348 = vmatprep.mubr.bf16.mxu0 %v10347_v43 }
 0xc09   :  { %2288 = vmatpush1.bf16.msra.mxu1 %v8304_v7  ;;  %2331 = vmatpush1.bf16.msra.mxu0 %v8306_v10 }
 0xc0a   :  { %9106 = vmatprep.subr.bf16.mxu1 %v9984_v5  ;;  %9128 = vmatprep.subr.bf16.mxu0 %v9985_v6  ;;  %v10938_v5 = vld [vmem:[%s12337_s5] sm:$0xf] }
 0xc0b   :  { %v1985_v14 = vrot.slane %v10938_v5, %v10436_v17  ;;  %v1993_v6 = vrot.slane %v10938_v5, %v10923_v55 }
 0xc0c   :  { %8312 = vmatmul.mubr.msk.bf16.vlgmr.msra.gmra.mxu1 %vm151_vm2, %v10800_v2  ;;  %8313 = vmatmul.mubr.msk.bf16.vlgmr.msra.gmra.mxu0 %vm151_vm2, %v10800_v2 }
 0xc0d   :  { %9107 = vmatpush3.bf16.msra.mxu1 %v9986_v11  ;;  %9129 = vmatpush3.bf16.msra.mxu0 %v9987_v12 }
 0xc0e   :  { %9108 = vmatprep.subr.bf16.mxu1 %v9988_v15  ;;  %9130 = vmatprep.subr.bf16.mxu0 %v9989_v13 }
 0xc11   :  { %9109 = vmatpush3.bf16.msra.mxu1 %v9990_v18  ;;  %9131 = vmatpush3.bf16.msra.mxu0 %v9991_v19 }
 0xc12   :  { %9110 = vmatprep.subr.bf16.mxu1 %v9992_v26  ;;  %9132 = vmatprep.subr.bf16.mxu0 %v9993_v25 }
 0xc15   :  { %9111 = vmatpush3.bf16.msra.mxu1 %v9994_v20  ;;  %9133 = vmatpush3.bf16.msra.mxu0 %v9995_v21 }
 0xc16   :  { %9112 = vmatprep.subr.bf16.mxu1 %v9996_v24  ;;  %9134 = vmatprep.subr.bf16.mxu0 %v9997_v27 }
 0xc19   :  { %9113 = vmatpush3.bf16.msra.mxu1 %v9998_v28  ;;  %9135 = vmatpush3.bf16.msra.mxu0 %v9999_v29 }
 0xc1a   :  { %9114 = vmatprep.subr.bf16.mxu1 %v10000_v30  ;;  %9136 = vmatprep.subr.bf16.mxu0 %v10001_v31 }
 0xc1d   :  { %9115 = vmatpush3.bf16.msra.mxu1 %v10002_v32  ;;  %9137 = vmatpush3.bf16.msra.mxu0 %v10003_v33 }
 0xc1e   :  { %9116 = vmatprep.subr.bf16.mxu1 %v10004_v22  ;;  %9138 = vmatprep.subr.bf16.mxu0 %v10005_v23 }
 0xc21   :  { %9117 = vmatpush3.bf16.msra.mxu1 %v10006_v34  ;;  %9139 = vmatpush3.bf16.msra.mxu0 %v10007_v35 }
 0xc22   :  { %9118 = vmatprep.subr.bf16.mxu1 %v10008_v36  ;;  %9140 = vmatprep.subr.bf16.mxu0 %v10009_v37 }
 0xc25   :  { %9119 = vmatpush3.bf16.msra.mxu1 %v10010_v39  ;;  %9141 = vmatpush3.bf16.msra.mxu0 %v10011_v40 }
 0xc26   :  { %9120 = vmatprep.subr.bf16.mxu1 %v10012_v41  ;;  %9142 = vmatprep.subr.bf16.mxu0 %v10013_v42  ;;  %v10018_v41 = vld [vmem:[%s12336_s6 + $0x38] sm:$0xff]  }
 0xc27   :  { %v10019_v42 = vld [vmem:[%s12336_s6 + $0xb8] sm:$0xff]  }
 0xc29   :  { %9121 = vmatpush3.bf16.msra.mxu1 %v10014_v44  ;;  %9143 = vmatpush3.bf16.msra.mxu0 %v10015_v45 }
 0xc2a   :  { %9150 = vmatprep.subr.bf16.mxu1 %v10016_v46  ;;  %9172 = vmatprep.subr.bf16.mxu0 %v10017_v38 }
 0xcc4   :  { %v10914_v47 = vpop.f32.mrf.mxu1  ;;  %v10916_v48 = vpop.f32.mrf.mxu0 }
 0xcc6   :  { %v2077_v49 = vpop.f32.mrf.mxu1  ;;  %v2120_v50 = vpop.f32.mrf.mxu0 }
 0xcc7   :  { %v2078_v28 = vadd.f32 %v2077_v49, %v1985_v14  ;;  %v2121_v29 = vadd.f32 %v2120_v50, %v1993_v6  ;;  %v10020_v49 = vld [vmem:[%s12336_s6 + $0x70] sm:$0xff]  }
 0xcc8   :  { %v10918_v51 = vpop.f32.mrf.mxu1  ;;  %v10920_v52 = vpop.f32.mrf.mxu0  ;;  %v10021_v50 = vld [vmem:[%s12336_s6 + $0xf0] sm:$0xff]  }
 0xcc9   :  { %v2128_v44 = vmax.f32 %v2078_v28, 0.0  ;;  %v2130_v45 = vmax.f32 %v2121_v29, 0.0  ;;  %v10045_v29 = vld [vmem:[%s12336_s6 + $0xc0] sm:$0xff]  }
 0xcca   :  { %v2081_v53 = vpop.f32.mrf.mxu1  ;;  %v2124_v54 = vpop.f32.mrf.mxu0 }
 0xccb   :  { %v2082_v18 = vadd.f32 %v2081_v53, %v1985_v14  ;;  %v2125_v19 = vadd.f32 %v2124_v54, %v1993_v6  ;;  %v10031_v14 = vld [vmem:[%s12336_s6 + $0xa0] sm:$0xff]   ;;  %v10032_v6 = vld [vmem:[%s12336_s6 + $0x58] sm:$0xff]  }
 0xccc   :  { %v2307_v58 = vpop.f32.mrf.mxu1  ;;  %v2350_v59 = vpop.f32.mrf.mxu0 }
 0xccd   :  { %v2308_v26 = vadd.f32 %v2307_v58, %v2216_v62  ;;  %v2351_v25 = vadd.f32 %v2350_v59, %v2224_v63  ;;  %v2132_v34 = vmax.f32 %v2082_v18, 0.0  ;;  %v2134_v35 = vmax.f32 %v2125_v19, 0.0  ;;  %v10023_v58 = vld [vmem:[%s12336_s6 + $0xb0] sm:$0xff]   ;;  %v10024_v59 = vld [vmem:[%s12336_s6 + $0x68] sm:$0xff]  }
 0xcce   :  { %v2309_v3 = vpop.f32.mrf.mxu1  ;;  %v2352_v4 = vpop.f32.mrf.mxu0  ;;  %v10039_v18 = vld [vmem:[%s12336_s6 + $0x90] sm:$0xff]   ;;  %v10040_v19 = vld [vmem:[%s12336_s6 + $0x48] sm:$0xff]  }
 0xccf   :  { %v2310_v11 = vadd.f32 %v2309_v3, %v2220_v60  ;;  %v2353_v12 = vadd.f32 %v2352_v4, %v2228_v61  ;;  %v2359_v36 = vmax.f32 %v2308_v26, 0.0  ;;  %v2361_v37 = vmax.f32 %v2351_v25, 0.0  ;;  %v10029_v3 = vld [vmem:[%s12336_s6 + $0xe0] sm:$0xff]   ;;  %v10041_v26 = vld [vmem:[%s12336_s6 + $0xc8] sm:$0xff]  }
 0xcd0   :  { %v2311_v7 = vpop.f32.mrf.mxu1  ;;  %v2354_v10 = vpop.f32.mrf.mxu0  ;;  %v2136_v53 = vpack.c.bf16 %v2132_v34, %v2128_v44  ;;  %v2138_v54 = vpack.c.bf16 %v2134_v35, %v2130_v45  ;;  %v10030_v4 = vld [vmem:[%s12336_s6 + $0x20] sm:$0xff]   ;;  %v1981_v25 = vrot.slane %v10938_v5, %v10433_v16 }
 0xcd1   :  { %v2312_v15 = vadd.f32 %v2311_v7, %v2216_v62  ;;  %v2355_v13 = vadd.f32 %v2354_v10, %v2224_v63  ;;  %v2360_v32 = vmax.f32 %v2310_v11, 0.0  ;;  %v2362_v33 = vmax.f32 %v2353_v12, 0.0  ;;  %v10027_v62 = vld [vmem:[%s12336_s6 + $0xa8] sm:$0xff]   ;;  %v10028_v63 = vld [vmem:[%s12336_s6 + $0x60] sm:$0xff]   ;;  %v10033_v7 = vld [vmem:[%s12336_s6 + $0xd8] sm:$0xff]  }
 0xcd2   :  { %v2313_v20 = vpop.f32.mrf.mxu1  ;;  %v2356_v21 = vpop.f32.mrf.mxu0  ;;  %v10034_v10 = vld [vmem:[%s12336_s6 + $0x18] sm:$0xff]   ;;  %v10036_v12 = vld [vmem:[%s12336_s6 + $0x50] sm:$0xff]  }
 0xcd3   :  { %v2314_v24 = vadd.f32 %v2313_v20, %v2220_v60  ;;  %v2357_v27 = vadd.f32 %v2356_v21, %v2228_v61  ;;  %v2363_v30 = vmax.f32 %v2312_v15, 0.0  ;;  %v2365_v31 = vmax.f32 %v2355_v13, 0.0  ;;  %v10025_v60 = vld [vmem:[%s12336_s6 + $0xe8] sm:$0xff]   ;;  %v10035_v11 = vld [vmem:[%s12336_s6 + $0x98] sm:$0xff]   ;;  %v10037_v15 = vld [vmem:[%s12336_s6 + $0xd0] sm:$0xff]  }
 0xcd4   :  { %v10026_v61 = vld [vmem:[%s12336_s6 + $0x28] sm:$0xff]   ;;  %v10038_v13 = vld [vmem:[%s12336_s6 + $0x10] sm:$0xff]   ;;  %v1989_v20 = vrot.slane %v10938_v5, %v10929_v57  ;;  %v10044_v5 = vld [vmem:[%s12336_s6 + $0x40] sm:$0xff]  }
 0xcd5   :  { %v2364_v22 = vmax.f32 %v2314_v24, 0.0  ;;  %v2366_v23 = vmax.f32 %v2357_v27, 0.0  ;;  %v2367_v46 = vpack.c.bf16 %v2363_v30, %v2359_v36  ;;  %v2369_v38 = vpack.c.bf16 %v2365_v31, %v2361_v37  ;;  %v10042_v21 = vld [vmem:[%s12336_s6 + $0x8] sm:$0xff]   ;;  %v2987_v30 = vld [vmem:[%s12335_s4 + $0xa0] sm:$0xff] }
 0xcd6   :  { %v10043_v24 = vld [vmem:[%s12336_s6 + $0x88] sm:$0xff]   ;;  %v2080_v27 = vadd.f32 %v10918_v51, %v1981_v25  ;;  %v2123_v28 = vadd.f32 %v10920_v52, %v1989_v20  ;;  %v2989_v51 = vld [vmem:[%s12335_s4 + $0xe0] sm:$0xff] }
 0xcd7   :  { %v2368_v39 = vpack.c.bf16 %v2364_v22, %v2360_v32  ;;  %v2370_v40 = vpack.c.bf16 %v2366_v23, %v2362_v33  ;;  %v2988_v52 = vld [vmem:[%s12335_s4 + $0xa8] sm:$0xff]  ;;  %v2076_v32 = vadd.f32 %v10914_v47, %v1981_v25  ;;  %v2119_v33 = vadd.f32 %v10916_v48, %v1989_v20  ;;  %v10046_v22 = vld [vmem:[%s12336_s6] sm:$0xff]   ;;  %v10068_v25 = vld [vmem:[%s12336_s6 + $0x250] sm:$0xff]  }
 0xcd8   :  { %v2990_v31 = vld [vmem:[%s12335_s4 + $0xe8] sm:$0xff]  ;;  %v10047_v23 = vld [vmem:[%s12336_s6 + $0x80] sm:$0xff]   ;;  %v2131_v34 = vmax.f32 %v2080_v27, 0.0  ;;  %v2133_v35 = vmax.f32 %v2123_v28, 0.0  ;;  %v8383_v36 = vcombine.high %v2987_v30, %v2989_v51  ;;  %v8382_v44 = vcombine.low %v2987_v30, %v2989_v51  ;;  %v10069_v20 = vld [vmem:[%s12336_s6 + $0x2d0] sm:$0xff]  }
 0xcd9   :  { %2659 = vmatprep.mubr.bf16.mxu1 %v2368_v39  ;;  %2700 = vmatprep.mubr.bf16.mxu0 %v2370_v40  ;;  %v8385_v37 = vcombine.high %v2988_v52, %v2990_v31  ;;  %v2983_v47 = vld [vmem:[%s12335_s4 + $0x20] sm:$0xff]  ;;  %v2984_v39 = vld [vmem:[%s12335_s4 + $0x28] sm:$0xff]  ;;  %v8384_v45 = vcombine.low %v2988_v52, %v2990_v31 }
 0xcda   :  { %2660 = vmatmul.mubr.bf16.vlgmr.msra.gmra.mxu1 %v2367_v46  ;;  %2701 = vmatmul.mubr.bf16.vlgmr.msra.gmra.mxu0 %v2369_v38  ;;  %v2985_v48 = vld [vmem:[%s12335_s4 + $0x60] sm:$0xff]  ;;  %v2986_v40 = vld [vmem:[%s12335_s4 + $0x68] sm:$0xff] }
 0xcdb   :  { %9151 = vmatpush3.bf16.msra.mxu1 %v10018_v41  ;;  %9173 = vmatpush3.bf16.msra.mxu0 %v10019_v42  ;;  %v2127_v41 = vmax.f32 %v2076_v32, 0.0  ;;  %v2129_v42 = vmax.f32 %v2119_v33, 0.0  ;;  %v8379_v46 = vcombine.high %v2983_v47, %v2985_v48  ;;  %v10072_v27 = vld [vmem:[%s12336_s6 + $0x248] sm:$0xff]   ;;  %v10076_v30 = vld [vmem:[%s12336_s6 + $0x240] sm:$0xff]   ;;  %v11171_v32 = vld [vmem:[%s12335_s4 + $0xb0] sm:$0xff] }
 0xcdc   :  { %2933 = vmatprep.mubr.bf16.mxu1 %v2136_v53  ;;  %2974 = vmatprep.mubr.bf16.mxu0 %v2138_v54  ;;  %v8378_v53 = vcombine.low %v2983_v47, %v2985_v48  ;;  %v8380_v54 = vcombine.low %v2984_v39, %v2986_v40  ;;  %v10073_v28 = vld [vmem:[%s12336_s6 + $0x2c8] sm:$0xff]   ;;  %v10077_v51 = vld [vmem:[%s12336_s6 + $0x2c0] sm:$0xff]   ;;  %v11176_v33 = vld [vmem:[%s12335_s4 + $0xf0] sm:$0xff] }
 0xcdd   :  { %9152 = vmatprep.subr.bf16.mxu1 %v10020_v49  ;;  %9174 = vmatprep.subr.bf16.mxu0 %v10021_v50  ;;  %v2135_v38 = vpack.c.bf16 %v2131_v34, %v2127_v41  ;;  %v2137_v49 = vpack.c.bf16 %v2133_v35, %v2129_v42  ;;  %v8381_v50 = vcombine.high %v2984_v39, %v2986_v40  ;;  %v10078_v52 = vld [vmem:[%s12336_s6 + $0x200] sm:$0xff]   ;;  %v11188_v34 = vld [vmem:[%s12335_s4 + $0xf8] sm:$0xff] }
 0xcde   :  { %v10079_v31 = vld [vmem:[%s12336_s6 + $0x280] sm:$0xff]   ;;  %v8424_v35 = vcombine.low %v11171_v32, %v11176_v33 }
 0xcdf   :  { %9153 = vmatpush3.bf16.msra.mxu1 %v10022_v56  ;;  %9175 = vmatpush3.bf16.msra.mxu0 %v10023_v58  ;;  %v10048_v56 = vld [vmem:[%s12336_s6 + $0x278] sm:$0xff]  }
 0xce0   :  { %9154 = vmatprep.subr.bf16.mxu1 %v10024_v59  ;;  %9176 = vmatprep.subr.bf16.mxu0 %v10025_v60  ;;  %v10049_v58 = vld [vmem:[%s12336_s6 + $0x2f8] sm:$0xff]  }
 0xce1   :  { %v10050_v59 = vld [vmem:[%s12336_s6 + $0x238] sm:$0xff]  }
 0xce2   :  { %v10051_v60 = vld [vmem:[%s12336_s6 + $0x2b8] sm:$0xff]  }
 0xce3   :  { %9155 = vmatpush3.bf16.msra.mxu1 %v10026_v61  ;;  %9177 = vmatpush3.bf16.msra.mxu0 %v10027_v62  ;;  %v10052_v61 = vld [vmem:[%s12336_s6 + $0x270] sm:$0xff]  }
 0xce4   :  { %9156 = vmatprep.subr.bf16.mxu1 %v10028_v63  ;;  %9178 = vmatprep.subr.bf16.mxu0 %v10029_v3  ;;  %v10053_v62 = vld [vmem:[%s12336_s6 + $0x2f0] sm:$0xff]  }
 0xce5   :  { %v10054_v63 = vld [vmem:[%s12336_s6 + $0x230] sm:$0xff]  }
 0xce6   :  { %v10055_v3 = vld [vmem:[%s12336_s6 + $0x2b0] sm:$0xff]  }
 0xce7   :  { %9157 = vmatpush3.bf16.msra.mxu1 %v10030_v4  ;;  %9179 = vmatpush3.bf16.msra.mxu0 %v10031_v14  ;;  %v10056_v4 = vld [vmem:[%s12336_s6 + $0x268] sm:$0xff]  }
 0xce8   :  { %9158 = vmatprep.subr.bf16.mxu1 %v10032_v6  ;;  %9180 = vmatprep.subr.bf16.mxu0 %v10033_v7  ;;  %v10057_v14 = vld [vmem:[%s12336_s6 + $0x2e8] sm:$0xff]  }
 0xce9   :  { %v10058_v6 = vld [vmem:[%s12336_s6 + $0x228] sm:$0xff]  }
 0xcea   :  { %v10059_v7 = vld [vmem:[%s12336_s6 + $0x2a8] sm:$0xff]  }
 0xceb   :  { %9159 = vmatpush3.bf16.msra.mxu1 %v10034_v10  ;;  %9181 = vmatpush3.bf16.msra.mxu0 %v10035_v11  ;;  %v10060_v10 = vld [vmem:[%s12336_s6 + $0x260] sm:$0xff]  }
 0xcec   :  { %9160 = vmatprep.subr.bf16.mxu1 %v10036_v12  ;;  %9182 = vmatprep.subr.bf16.mxu0 %v10037_v15  ;;  %v10061_v11 = vld [vmem:[%s12336_s6 + $0x2e0] sm:$0xff]  }
 0xced   :  { %v10062_v12 = vld [vmem:[%s12336_s6 + $0x220] sm:$0xff]  }
 0xcee   :  { %v10063_v15 = vld [vmem:[%s12336_s6 + $0x2a0] sm:$0xff]  }
 0xcef   :  { %9161 = vmatpush3.bf16.msra.mxu1 %v10038_v13  ;;  %9183 = vmatpush3.bf16.msra.mxu0 %v10039_v18  ;;  %v10064_v13 = vld [vmem:[%s12336_s6 + $0x258] sm:$0xff]  }
 0xcf0   :  { %9162 = vmatprep.subr.bf16.mxu1 %v10040_v19  ;;  %9184 = vmatprep.subr.bf16.mxu0 %v10041_v26  ;;  %v10065_v18 = vld [vmem:[%s12336_s6 + $0x2d8] sm:$0xff]  }
 0xcf1   :  { %v10066_v19 = vld [vmem:[%s12336_s6 + $0x218] sm:$0xff]  }
 0xcf2   :  { %v10067_v26 = vld [vmem:[%s12336_s6 + $0x298] sm:$0xff]  }
 0xcf3   :  { %9163 = vmatpush3.bf16.msra.mxu1 %v10042_v21  ;;  %9185 = vmatpush3.bf16.msra.mxu0 %v10043_v24  ;;  %v10070_v21 = vld [vmem:[%s12336_s6 + $0x210] sm:$0xff]  }
 0xcf4   :  { %9164 = vmatprep.subr.bf16.mxu1 %v10044_v5  ;;  %9186 = vmatprep.subr.bf16.mxu0 %v10045_v29  ;;  %v10071_v24 = vld [vmem:[%s12336_s6 + $0x290] sm:$0xff]   ;;  %v10074_v5 = vld [vmem:[%s12336_s6 + $0x208] sm:$0xff]  }
 0xcf5   :  { %v10075_v29 = vld [vmem:[%s12336_s6 + $0x288] sm:$0xff]  }
 0xcf7   :  { %9165 = vmatpush3.bf16.msra.mxu1 %v10046_v22  ;;  %9187 = vmatpush3.bf16.msra.mxu0 %v10047_v23  ;;  %v11181_v22 = vld [vmem:[%s12335_s4 + $0xb8] sm:$0xff]  ;;  %v8425_v23 = vcombine.high %v11171_v32, %v11176_v33 }
 0xcf8   :  { %3065 = vmatprep.subr.bf16.mxu1 %v8383_v36  ;;  %3108 = vmatprep.subr.bf16.mxu0 %v8385_v37  ;;  %v8426_v36 = vcombine.low %v11181_v22, %v11188_v34  ;;  %v8427_v37 = vcombine.high %v11181_v22, %v11188_v34  ;;  %v10082_v32 = vld [vmem:[%s12336_s6 + $0x338] sm:$0xff]   ;;  %v10084_v22 = vld [vmem:[%s12336_s6 + $0x370] sm:$0xff]  }
 0xcf9   :  { %v10083_v33 = vld [vmem:[%s12336_s6 + $0x3b8] sm:$0xff]   ;;  %v10085_v34 = vld [vmem:[%s12336_s6 + $0x3f0] sm:$0xff]  }
 0xcfa   :  { %2934 = vmatmul.mubr.bf16.vlgmr.msra.gmra.mxu1 %v2135_v38  ;;  %2975 = vmatmul.mubr.bf16.vlgmr.msra.gmra.mxu0 %v2137_v49 }
 0xcfb   :  { %3066 = vmatpush1.bf16.msra.mxu1 %v8382_v44  ;;  %3109 = vmatpush1.bf16.msra.mxu0 %v8384_v45 }
 0xcfc   :  { %3067 = vmatprep.subr.bf16.mxu1 %v8379_v46  ;;  %3110 = vmatprep.subr.bf16.mxu0 %v8381_v50 }
 0xcfd   :  { %3085 = vmatprep.mubr.bf16.mxu1 %v10347_v43  ;;  %3128 = vmatprep.mubr.bf16.mxu0 %v10347_v43 }
 0xcff   :  { %3068 = vmatpush1.bf16.msra.mxu1 %v8378_v53  ;;  %3111 = vmatpush1.bf16.msra.mxu0 %v8380_v54 }
 0xd00   :  { %9194 = vmatprep.subr.bf16.mxu1 %v10048_v56  ;;  %9216 = vmatprep.subr.bf16.mxu0 %v10049_v58 }
 0xd02   :  { %8386 = vmatmul.mubr.msk.bf16.vlgmr.msra.gmra.mxu1 %vm151_vm2, %v10800_v2  ;;  %8387 = vmatmul.mubr.msk.bf16.vlgmr.msra.gmra.mxu0 %vm151_vm2, %v10800_v2 }
 0xd03   :  { %9195 = vmatpush3.bf16.msra.mxu1 %v10050_v59  ;;  %9217 = vmatpush3.bf16.msra.mxu0 %v10051_v60 }
 0xd04   :  { %9196 = vmatprep.subr.bf16.mxu1 %v10052_v61  ;;  %9218 = vmatprep.subr.bf16.mxu0 %v10053_v62 }
 0xd07   :  { %9197 = vmatpush3.bf16.msra.mxu1 %v10054_v63  ;;  %9219 = vmatpush3.bf16.msra.mxu0 %v10055_v3 }
 0xd08   :  { %9198 = vmatprep.subr.bf16.mxu1 %v10056_v4  ;;  %9220 = vmatprep.subr.bf16.mxu0 %v10057_v14 }
 0xd0b   :  { %9199 = vmatpush3.bf16.msra.mxu1 %v10058_v6  ;;  %9221 = vmatpush3.bf16.msra.mxu0 %v10059_v7 }
 0xd0c   :  { %9200 = vmatprep.subr.bf16.mxu1 %v10060_v10  ;;  %9222 = vmatprep.subr.bf16.mxu0 %v10061_v11 }
 0xd0f   :  { %9201 = vmatpush3.bf16.msra.mxu1 %v10062_v12  ;;  %9223 = vmatpush3.bf16.msra.mxu0 %v10063_v15  ;;  %v2991_v12 = vld [vmem:[%s12337_s5 + $0x8] sm:$0xf] }
 0xd10   :  { %9202 = vmatprep.subr.bf16.mxu1 %v10064_v13  ;;  %9224 = vmatprep.subr.bf16.mxu0 %v10065_v18 }
 0xd13   :  { %9203 = vmatpush3.bf16.msra.mxu1 %v10066_v19  ;;  %9225 = vmatpush3.bf16.msra.mxu0 %v10067_v26  ;;  %v3000_v19 = vrot.slane %v2991_v12, %v10436_v17  ;;  %v3008_v26 = vrot.slane %v2991_v12, %v10923_v55 }
 0xd14   :  { %9204 = vmatprep.subr.bf16.mxu1 %v10068_v25  ;;  %9226 = vmatprep.subr.bf16.mxu0 %v10069_v20  ;;  %v2996_v25 = vrot.slane %v2991_v12, %v10433_v16  ;;  %v3004_v20 = vrot.slane %v2991_v12, %v10929_v57  ;;  %v10091_v12 = vld [vmem:[%s12336_s6 + $0x3a8] sm:$0xff]  }
 0xd17   :  { %9205 = vmatpush3.bf16.msra.mxu1 %v10070_v21  ;;  %9227 = vmatpush3.bf16.msra.mxu0 %v10071_v24 }
 0xd18   :  { %9206 = vmatprep.subr.bf16.mxu1 %v10072_v27  ;;  %9228 = vmatprep.subr.bf16.mxu0 %v10073_v28 }
 0xd1b   :  { %9207 = vmatpush3.bf16.msra.mxu1 %v10074_v5  ;;  %9229 = vmatpush3.bf16.msra.mxu0 %v10075_v29 }
 0xd1c   :  { %9208 = vmatprep.subr.bf16.mxu1 %v10076_v30  ;;  %9230 = vmatprep.subr.bf16.mxu0 %v10077_v51 }
 0xd1f   :  { %9209 = vmatpush3.bf16.msra.mxu1 %v10078_v52  ;;  %9231 = vmatpush3.bf16.msra.mxu0 %v10079_v31 }
 0xd20   :  { %3573 = vmatprep.subr.bf16.mxu1 %v8425_v23  ;;  %3616 = vmatprep.subr.bf16.mxu0 %v8427_v37 }
 0xd9a   :  { %v9122_v47 = vpop.f32.mrf.mxu1  ;;  %v9144_v48 = vpop.f32.mrf.mxu0 }
 0xd9c   :  { %v9123_v39 = vpop.f32.mrf.mxu1  ;;  %v9145_v40 = vpop.f32.mrf.mxu0 }
 0xd9d   :  { %v9124_v41 = vadd.f32 %v9123_v39, %v9122_v47  ;;  %v9146_v42 = vadd.f32 %v9145_v40, %v9144_v48 }
 0xd9e   :  { %v9125_v44 = vpop.f32.mrf.mxu1  ;;  %v9147_v45 = vpop.f32.mrf.mxu0 }
 0xd9f   :  { %v2703_v46 = vadd.f32 %v9146_v42, %v9124_v41  ;;  %v3491_v42 = vld [vmem:[%s12335_s4 + $0x30] sm:$0xff] }
 0xda0   :  { %v9126_v38 = vpop.f32.mrf.mxu1  ;;  %v9148_v49 = vpop.f32.mrf.mxu0 }
 0xda1   :  { %v9127_v50 = vadd.f32 %v9126_v38, %v9125_v44  ;;  %v9149_v53 = vadd.f32 %v9148_v49, %v9147_v45  ;;  %v3493_v44 = vld [vmem:[%s12335_s4 + $0x70] sm:$0xff] }
 0xda3   :  { %v2706_v54 = vadd.f32 %v9149_v53, %v9127_v50  ;;  %v3492_v50 = vld [vmem:[%s12335_s4 + $0x38] sm:$0xff] }
 0xda4   :  { %v3494_v53 = vld [vmem:[%s12335_s4 + $0x78] sm:$0xff] }
 0xdba   :  { %v9166_v56 = vpop.f32.mrf.mxu1  ;;  %v9188_v58 = vpop.f32.mrf.mxu0 }
 0xdbc   :  { %v9167_v59 = vpop.f32.mrf.mxu1  ;;  %v9189_v60 = vpop.f32.mrf.mxu0 }
 0xdbd   :  { %v9168_v61 = vadd.f32 %v9167_v59, %v9166_v56  ;;  %v9190_v62 = vadd.f32 %v9189_v60, %v9188_v58 }
 0xdbe   :  { %v9169_v63 = vpop.f32.mrf.mxu1  ;;  %v9191_v3 = vpop.f32.mrf.mxu0 }
 0xdbf   :  { %v2936_v4 = vadd.f32 %v9168_v61, %v2703_v46 }
 0xdc0   :  { %v9170_v14 = vpop.f32.mrf.mxu1  ;;  %v9192_v6 = vpop.f32.mrf.mxu0 }
 0xdc1   :  { %v11196_v7 = vadd.f32 %v9190_v62, %v2936_v4  ;;  %v9171_v10 = vadd.f32 %v9170_v14, %v9169_v63  ;;  %v9193_v11 = vadd.f32 %v9192_v6, %v9191_v3  ;;  %v8421_v62 = vcombine.high %v3491_v42, %v3493_v44  ;;  %v10080_v14 = vld [vmem:[%s12336_s6 + $0x378] sm:$0xff]  }
 0xdc2   :  { %v3087_v15 = vpop.f32.mrf.mxu1  ;;  %v3130_v13 = vpop.f32.mrf.mxu0  ;;  %v8423_v63 = vcombine.high %v3492_v50, %v3494_v53  ;;  %v8420_v3 = vcombine.low %v3491_v42, %v3493_v44  ;;  %v8422_v4 = vcombine.low %v3492_v50, %v3494_v53  ;;  %v10081_v6 = vld [vmem:[%s12336_s6 + $0x3f8] sm:$0xff]  }
 0xdc3   :  { %v2939_v18 = vadd.f32 %v9171_v10, %v2706_v54  ;;  %v3088_v31 = vadd.f32 %v3087_v15, %v2996_v25  ;;  %v3131_v23 = vadd.f32 %v3130_v13, %v3004_v20  ;;  %v10088_v10 = vld [vmem:[%s12336_s6 + $0x368] sm:$0xff]   ;;  %v10092_v15 = vld [vmem:[%s12336_s6 + $0x360] sm:$0xff]  }
 0xdc4   :  { %v3089_v21 = vpop.f32.mrf.mxu1  ;;  %v3132_v24 = vpop.f32.mrf.mxu0  ;;  %v10093_v13 = vld [vmem:[%s12336_s6 + $0x3e0] sm:$0xff]  }
 0xdc5   :  { %v11205_v27 = vadd.f32 %v9193_v11, %v2939_v18  ;;  %v3090_v29 = vadd.f32 %v3089_v21, %v3000_v19  ;;  %v3133_v30 = vadd.f32 %v3132_v24, %v3008_v26  ;;  %v3139_v54 = vmax.f32 %v3088_v31, 0.0  ;;  %v10090_v11 = vld [vmem:[%s12336_s6 + $0x328] sm:$0xff]   ;;  %v10094_v18 = vld [vmem:[%s12336_s6 + $0x320] sm:$0xff]   ;;  %v10099_v21 = vld [vmem:[%s12336_s6 + $0x398] sm:$0xff]  }
 0xdc6   :  { %v3091_v28 = vpop.f32.mrf.mxu1  ;;  %v3134_v5 = vpop.f32.mrf.mxu0  ;;  %v3141_v56 = vmax.f32 %v3131_v23, 0.0  ;;  %v10100_v24 = vld [vmem:[%s12336_s6 + $0x350] sm:$0xff]   ;;  %v10107_v31 = vld [vmem:[%s12336_s6 + $0x388] sm:$0xff]   ;;  %v10108_v23 = vld [vmem:[%s12336_s6 + $0x340] sm:$0xff]  }
 0xdc7   :  { %v3092_v51 = vadd.f32 %v3091_v28, %v2996_v25  ;;  %v3135_v52 = vadd.f32 %v3134_v5, %v3004_v20  ;;  %v3140_v45 = vmax.f32 %v3090_v29, 0.0  ;;  %v3142_v46 = vmax.f32 %v3133_v30, 0.0  ;;  %v10097_v25 = vld [vmem:[%s12336_s6 + $0x3d8] sm:$0xff]   ;;  %v10101_v28 = vld [vmem:[%s12336_s6 + $0x3d0] sm:$0xff]   ;;  %v10104_v30 = vld [vmem:[%s12336_s6 + $0x348] sm:$0xff]  }
 0xdc8   :  { %v3093_v37 = vpop.f32.mrf.mxu1  ;;  %v3136_v47 = vpop.f32.mrf.mxu0  ;;  %v10098_v20 = vld [vmem:[%s12336_s6 + $0x318] sm:$0xff]   ;;  %v10102_v5 = vld [vmem:[%s12336_s6 + $0x310] sm:$0xff]  }
 0xdc9   :  { %v3094_v48 = vadd.f32 %v3093_v37, %v3000_v19  ;;  %v3137_v39 = vadd.f32 %v3136_v47, %v3008_v26  ;;  %v3143_v40 = vmax.f32 %v3092_v51, 0.0  ;;  %v3145_v41 = vmax.f32 %v3135_v52, 0.0  ;;  %v10095_v19 = vld [vmem:[%s12336_s6 + $0x3a0] sm:$0xff]   ;;  %v10096_v26 = vld [vmem:[%s12336_s6 + $0x358] sm:$0xff]   ;;  %v10103_v29 = vld [vmem:[%s12336_s6 + $0x390] sm:$0xff]  }
 0xdca   :  { %v10105_v51 = vld [vmem:[%s12336_s6 + $0x3c8] sm:$0xff]   ;;  %v10109_v37 = vld [vmem:[%s12336_s6 + $0x3c0] sm:$0xff]  }
 0xdcb   :  { %v3144_v38 = vmax.f32 %v3094_v48, 0.0  ;;  %v3146_v49 = vmax.f32 %v3137_v39, 0.0  ;;  %v3147_v60 = vpack.c.bf16 %v3143_v40, %v3139_v54  ;;  %v3149_v61 = vpack.c.bf16 %v3145_v41, %v3141_v56  ;;  %v10106_v52 = vld [vmem:[%s12336_s6 + $0x308] sm:$0xff]   ;;  %v10110_v47 = vld [vmem:[%s12336_s6 + $0x300] sm:$0xff]  }
 0xdcc   :  { %v10111_v48 = vld [vmem:[%s12336_s6 + $0x380] sm:$0xff]  }
 0xdcd   :  { %v3148_v58 = vpack.c.bf16 %v3144_v38, %v3140_v45  ;;  %v3150_v59 = vpack.c.bf16 %v3146_v49, %v3142_v46 }
 0xdcf   :  { %3439 = vmatprep.mubr.bf16.mxu1 %v3148_v58  ;;  %3480 = vmatprep.mubr.bf16.mxu0 %v3150_v59  ;;  %v3499_v59 = vld [vmem:[%s12337_s5 + $0xc] sm:$0xf] }
 0xdd0   :  { %3440 = vmatmul.mubr.bf16.vlgmr.msra.gmra.mxu1 %v3147_v60  ;;  %3481 = vmatmul.mubr.bf16.vlgmr.msra.gmra.mxu0 %v3149_v61 }
 0xdd1   :  { %3574 = vmatpush1.bf16.msra.mxu1 %v8424_v35  ;;  %3617 = vmatpush1.bf16.msra.mxu0 %v8426_v36  ;;  %v10086_v35 = vld [vmem:[%s12336_s6 + $0x330] sm:$0xff]  }
 0xdd2   :  { %3575 = vmatprep.subr.bf16.mxu1 %v8421_v62  ;;  %3618 = vmatprep.subr.bf16.mxu0 %v8423_v63  ;;  %v10087_v36 = vld [vmem:[%s12336_s6 + $0x3b0] sm:$0xff]   ;;  %v3508_v63 = vrot.slane %v3499_v59, %v10436_v17 }
 0xdd3   :  { %3593 = vmatprep.mubr.bf16.mxu1 %v10347_v43  ;;  %3636 = vmatprep.mubr.bf16.mxu0 %v10347_v43 }
 0xdd5   :  { %3576 = vmatpush1.bf16.msra.mxu1 %v8420_v3  ;;  %3619 = vmatpush1.bf16.msra.mxu0 %v8422_v4  ;;  %v3516_v3 = vrot.slane %v3499_v59, %v10923_v55  ;;  %v3504_v4 = vrot.slane %v3499_v59, %v10433_v16 }
 0xdd6   :  { %9238 = vmatprep.subr.bf16.mxu1 %v10080_v14  ;;  %9260 = vmatprep.subr.bf16.mxu0 %v10081_v6  ;;  %v3512_v14 = vrot.slane %v3499_v59, %v10929_v57 }
 0xdd8   :  { %8428 = vmatmul.mubr.msk.bf16.vlgmr.msra.gmra.mxu1 %vm151_vm2, %v10800_v2  ;;  %8429 = vmatmul.mubr.msk.bf16.vlgmr.msra.gmra.mxu0 %vm151_vm2, %v10800_v2  ;;  %v10089_v2 = vld [vmem:[%s12336_s6 + $0x3e8] sm:$0xff]  }
 0xdd9   :  { %9239 = vmatpush3.bf16.msra.mxu1 %v10082_v32  ;;  %9261 = vmatpush3.bf16.msra.mxu0 %v10083_v33 }
 0xdda   :  { %9240 = vmatprep.subr.bf16.mxu1 %v10084_v22  ;;  %9262 = vmatprep.subr.bf16.mxu0 %v10085_v34 }
 0xddd   :  { %9241 = vmatpush3.bf16.msra.mxu1 %v10086_v35  ;;  %9263 = vmatpush3.bf16.msra.mxu0 %v10087_v36 }
 0xdde   :  { %9242 = vmatprep.subr.bf16.mxu1 %v10088_v10  ;;  %9264 = vmatprep.subr.bf16.mxu0 %v10089_v2 }
 0xde1   :  { %9243 = vmatpush3.bf16.msra.mxu1 %v10090_v11  ;;  %9265 = vmatpush3.bf16.msra.mxu0 %v10091_v12 }
 0xde2   :  { %9244 = vmatprep.subr.bf16.mxu1 %v10092_v15  ;;  %9266 = vmatprep.subr.bf16.mxu0 %v10093_v13 }
 0xde5   :  { %9245 = vmatpush3.bf16.msra.mxu1 %v10094_v18  ;;  %9267 = vmatpush3.bf16.msra.mxu0 %v10095_v19 }
 0xde6   :  { %9246 = vmatprep.subr.bf16.mxu1 %v10096_v26  ;;  %9268 = vmatprep.subr.bf16.mxu0 %v10097_v25 }
 0xde9   :  { %9247 = vmatpush3.bf16.msra.mxu1 %v10098_v20  ;;  %9269 = vmatpush3.bf16.msra.mxu0 %v10099_v21 }
 0xdea   :  { %9248 = vmatprep.subr.bf16.mxu1 %v10100_v24  ;;  %9270 = vmatprep.subr.bf16.mxu0 %v10101_v28 }
 0xded   :  { %9249 = vmatpush3.bf16.msra.mxu1 %v10102_v5  ;;  %9271 = vmatpush3.bf16.msra.mxu0 %v10103_v29 }
 0xdee   :  { %9250 = vmatprep.subr.bf16.mxu1 %v10104_v30  ;;  %9272 = vmatprep.subr.bf16.mxu0 %v10105_v51 }
 0xdf1   :  { %9251 = vmatpush3.bf16.msra.mxu1 %v10106_v52  ;;  %9273 = vmatpush3.bf16.msra.mxu0 %v10107_v31 }
 0xdf2   :  { %9252 = vmatprep.subr.bf16.mxu1 %v10108_v23  ;;  %9274 = vmatprep.subr.bf16.mxu0 %v10109_v37 }
 0xdf5   :  { %9253 = vmatpush3.bf16.msra.mxu1 %v10110_v47  ;;  %9275 = vmatpush3.bf16.msra.mxu0 %v10111_v48 }
 0xe90   :  { %v9210_v39 = vpop.f32.mrf.mxu1  ;;  %v9232_v40 = vpop.f32.mrf.mxu0 }
 0xe92   :  { %v9211_v41 = vpop.f32.mrf.mxu1  ;;  %v9233_v42 = vpop.f32.mrf.mxu0 }
 0xe93   :  { %v9212_v44 = vadd.f32 %v9211_v41, %v9210_v39  ;;  %v9234_v45 = vadd.f32 %v9233_v42, %v9232_v40 }
 0xe94   :  { %v9213_v46 = vpop.f32.mrf.mxu1  ;;  %v9235_v38 = vpop.f32.mrf.mxu0 }
 0xe95   :  { %v3483_v49 = vadd.f32 %v9234_v45, %v9212_v44  ;;  %v8462_v45 = vld [vmem:[%s12332_s3 + $0x12a] ss:$0 sm:$0xff] }
 0xe96   :  { %v9214_v50 = vpop.f32.mrf.mxu1  ;;  %v9236_v53 = vpop.f32.mrf.mxu0 }
 0xe97   :  { %v3489_v54 = vadd.f32 %v3483_v49, %v11196_v7  ;;  %v9215_v56 = vadd.f32 %v9214_v50, %v9213_v46  ;;  %v9237_v58 = vadd.f32 %v9236_v53, %v9235_v38 }
 0xe98   :  { %v3595_v60 = vpop.f32.mrf.mxu1  ;;  %v3638_v61 = vpop.f32.mrf.mxu0 }
 0xe99   :  { %v3486_v62 = vadd.f32 %v9237_v58, %v9215_v56  ;;  %v3596_v2 = vadd.f32 %v3595_v60, %v3504_v4  ;;  %v3639_v11 = vadd.f32 %v3638_v61, %v3512_v14 }
 0xe9a   :  { %v3597_v6 = vpop.f32.mrf.mxu1  ;;  %v3640_v32 = vpop.f32.mrf.mxu0 }
 0xe9b   :  { %v3490_v7 = vadd.f32 %v3486_v62, %v11205_v27  ;;  %v3598_v34 = vadd.f32 %v3597_v6, %v3508_v63  ;;  %v3641_v35 = vadd.f32 %v3640_v32, %v3516_v3  ;;  %v3647_v28 = vmax.f32 %v3596_v2, 0.0  ;;  %v4053_v2 = vld [vmem:[%s12334_s2 + $0x180] sm:$0xff] }
 0xe9c   :  { %v3599_v33 = vpop.f32.mrf.mxu1  ;;  %v3642_v22 = vpop.f32.mrf.mxu0  ;;  %v3649_v27 = vmax.f32 %v3639_v11, 0.0  ;;  %v4048_v11 = vld [vmem:[%s12334_s2 + $0x80] sm:$0xff] }
 0xe9d   :  { %v3600_v36 = vadd.f32 %v3599_v33, %v3504_v4  ;;  %v3643_v10 = vadd.f32 %v3642_v22, %v3512_v14  ;;  %v3648_v25 = vmax.f32 %v3598_v34, 0.0  ;;  %v3650_v20 = vmax.f32 %v3641_v35, 0.0  ;;  %v4051_v22 = vld [vmem:[%s12334_s2 + $0x98] sm:$0xff]  ;;  %v4055_v34 = vld [vmem:[%s12334_s2 + $0x190] sm:$0xff] }
 0xe9e   :  { %v3601_v12 = vpop.f32.mrf.mxu1  ;;  %v3644_v15 = vpop.f32.mrf.mxu0  ;;  %9769 = vmatprep.subr.mxu1 %v4051_v22  ;;  %v4050_v35 = vld [vmem:[%s12334_s2 + $0x90] sm:$0xff] }
 0xe9f   :  { %v3602_v13 = vadd.f32 %v3601_v12, %v3508_v63  ;;  %v3645_v18 = vadd.f32 %v3644_v15, %v3516_v3  ;;  %v3651_v19 = vmax.f32 %v3600_v36, 0.0  ;;  %v3653_v26 = vmax.f32 %v3643_v10, 0.0  ;;  %v4054_v36 = vld [vmem:[%s12334_s2 + $0x188] sm:$0xff]  ;;  %v4334_v12 = vld [vmem:[%s12332_s3 + $0x98] sm:$0xff] }
 0xea0   :  { %v4049_v10 = vld [vmem:[%s12334_s2 + $0x88] sm:$0xff] }
 0xea1   :  { %v3652_v21 = vmax.f32 %v3602_v13, 0.0  ;;  %v3654_v24 = vmax.f32 %v3645_v18, 0.0  ;;  %v3655_v30 = vpack.c.bf16 %v3651_v19, %v3647_v28  ;;  %v3657_v51 = vpack.c.bf16 %v3653_v26, %v3649_v27  ;;  %v8464_v28 = vld [vmem:[%s12332_s3 + $0x129] ss:$0 sm:$0xff] }
 0xea3   :  { %v3656_v5 = vpack.c.bf16 %v3652_v21, %v3648_v25  ;;  %v3658_v29 = vpack.c.bf16 %v3654_v24, %v3650_v20  ;;  %v8463_v21 = vld [vmem:[%s12332_s3 + $0x128] ss:$0 sm:$0xff] }
 0xea5   :  { %3947 = vmatprep.mubr.bf16.mxu1 %v3656_v5  ;;  %3988 = vmatprep.mubr.bf16.mxu0 %v3658_v29 }
 0xea6   :  { %3948 = vmatmul.mubr.bf16.vlgmr.msra.gmra.mxu1 %v3655_v30  ;;  %3989 = vmatmul.mubr.bf16.vlgmr.msra.gmra.mxu0 %v3657_v51 }
 0xea7   :  { %9770 = vmatpush3.msra.mxu1 %v4051_v22 }
 0xea8   :  { %9771 = vmatprep.subr.mxu1 %v4050_v35 }
 0xea9   :  { %9772 = vmatpush3.msra.mxu1 %v4050_v35  ;;  %v8488_v35 = vld [vmem:[%s12332_s3 + $0x12c] ss:$0 sm:$0xff] }
 0xeaa   :  { %9773 = vmatprep.subr.mxu1 %v4049_v10 }
 0xeab   :  { %9774 = vmatpush3.msra.mxu1 %v4049_v10 }
 0xeac   :  { %9775 = vmatprep.subr.mxu1 %v4048_v11 }
 0xead   :  { %9776 = vmatpush3.msra.mxu1 %v4048_v11 }
 0xf66   :  { %v9254_v52 = vpop.f32.mrf.mxu1  ;;  %v9276_v31 = vpop.f32.mrf.mxu0 }
 0xf68   :  { %v9255_v23 = vpop.f32.mrf.mxu1  ;;  %v9277_v37 = vpop.f32.mrf.mxu0 }
 0xf69   :  { %v9256_v47 = vadd.f32 %v9255_v23, %v9254_v52  ;;  %v9278_v48 = vadd.f32 %v9277_v37, %v9276_v31  ;;  %v4333_v31 = vld [vmem:[%s12332_s3 + $0x90] sm:$0xff]  ;;  %v4332_v23 = vld [vmem:[%s12332_s3 + $0x88] sm:$0xff]  ;;  %v4331_v37 = vld [vmem:[%s12332_s3 + $0x80] sm:$0xff] }
 0xf6a   :  { %v9257_v39 = vpop.f32.mrf.mxu1  ;;  %v9279_v40 = vpop.f32.mrf.mxu0 }
 0xf6b   :  { %v3991_v41 = vadd.f32 %v9278_v48, %v9256_v47  ;;  %v4423_v47 = vld [vmem:[%s12334_s2 + $0x1b8] sm:$0xff]  ;;  %v4422_v48 = vld [vmem:[%s12334_s2 + $0x1b0] sm:$0xff] }
 0xf6c   :  { %v9258_v42 = vpop.f32.mrf.mxu1  ;;  %v9280_v44 = vpop.f32.mrf.mxu0 }
 0xf6d   :  { %v3997_v46 = vadd.f32 %v3991_v41, %v3489_v54  ;;  %v9259_v38 = vadd.f32 %v9258_v42, %v9257_v39  ;;  %v9281_v49 = vadd.f32 %v9280_v44, %v9279_v40  ;;  %v4421_v39 = vld [vmem:[%s12334_s2 + $0x1a8] sm:$0xff]  ;;  %v4420_v40 = vld [vmem:[%s12334_s2 + $0x1a0] sm:$0xff]  ;;  %v4695_v41 = vld [vmem:[%s12332_s3 + $0xb8] sm:$0xff] }
 0xf6e   :  { %v4694_v42 = vld [vmem:[%s12332_s3 + $0xb0] sm:$0xff]  ;;  %v4693_v44 = vld [vmem:[%s12332_s3 + $0xa8] sm:$0xff] }
 0xf6f   :  { %v3994_v50 = vadd.f32 %v9281_v49, %v9259_v38  ;;  %v4004_v53 = vadd.f32 %v8462_v45, %v3997_v46  ;;  %v8468_v46 = vld [vmem:[%s12334_s2 + $0x24c] ss:$0 sm:$0xff] }
 0xf71   :  { %v3998_v56 = vadd.f32 %v3994_v50, %v3490_v7  ;;  %v4006_v58 = vadd.f32 %v4004_v53, %v10796_v1  ;;  %v8465_v53 = vld [vmem:[%s12334_s2 + $0x244] ss:$0 sm:$0xff] }
 0xf73   :  { %v4008_v59 = vsel %vm151_vm2, %v4006_v58, 0.0  ;;  %v4005_v60 = vadd.f32 %v8462_v45, %v3998_v56  ;;  %v4692_v45 = vld [vmem:[%s12332_s3 + $0xa0] sm:$0xff] }
 0xf74   :  { %4009 = vadd.xlane.f32.xlu0 %v4008_v59 }
 0xf75   :  { %v4007_v61 = vadd.f32 %v4005_v60, %v10794_v0  ;;  %v4056_v0 = vld [vmem:[%s12334_s2 + $0x198] sm:$0xff] }
 0xf76   :  { %9780 = vmatprep.subr.mxu0 %v4056_v0 }
 0xf77   :  { %v4011_v62 = vsel %vm151_vm2, %v4007_v61, 0.0  ;;  %9781 = vmatpush3.msra.mxu0 %v4056_v0 }
 0xf78   :  { %4012 = vadd.xlane.f32.xlu1 %v4011_v62  ;;  %9782 = vmatprep.subr.mxu0 %v4055_v34  ;;  %v4418_v62 = vld [vmem:[%s12334_s2 + $0xb8] sm:$0xff] }
 0xf79   :  { %9783 = vmatpush3.msra.mxu0 %v4055_v34 }
 0xf7a   :  { %9784 = vmatprep.subr.mxu0 %v4054_v36 }
 0xf7b   :  { %9785 = vmatpush3.msra.mxu0 %v4054_v36 }
 0xf7c   :  { %9786 = vmatprep.subr.mxu0 %v4053_v2 }
 0xf7d   :  { %9787 = vmatpush3.msra.mxu0 %v4053_v2 }
 0xf7e   :  { %9798 = vmatprep.subr.mxu0 %v4334_v12 }
 0xffd   :  { %v4010_v63 = vpop.xlane.xlu0 %4009 }
 0xffe   :  { %v4014_v3 = vmul.f32 0.03125, %v4010_v63 }
0x1000   :  { %v4016_v4 = vsub.f32 %v4006_v58, %v4014_v3 }
0x1001   :  { %v4013_v54 = vpop.xlane.xlu1 %4012 }
0x1002   :  { %v4015_v14 = vmul.f32 0.03125, %v4013_v54  ;;  %v4018_v6 = vmul.f32 %v4016_v4, %v4016_v4 }
0x1004   :  { %v4017_v32 = vsub.f32 %v4007_v61, %v4015_v14  ;;  %v4020_v7 = vsel %vm151_vm2, %v4018_v6, 0.0  ;;  %v8475_v61 = vld [vmem:[%s12332_s3 + $0x12b] ss:$0 sm:$0xff]  ;;  %v4417_v6 = vld [vmem:[%s12334_s2 + $0xb0] sm:$0xff] }
0x1005   :  { %4021 = vadd.xlane.f32.xlu0 %v4020_v7  ;;  %v8481_v7 = vld [vmem:[%s12334_s2 + $0x24d] ss:$0 sm:$0xff] }
0x1006   :  { %v4019_v1 = vmul.f32 %v4017_v32, %v4017_v32 }
0x1008   :  { %v4023_v33 = vsel %vm151_vm2, %v4019_v1, 0.0  ;;  %v4415_v1 = vld [vmem:[%s12334_s2 + $0xa0] sm:$0xff] }
0x1009   :  { %4024 = vadd.xlane.f32.xlu1 %v4023_v33 }
0x108e   :  { %v4022_v15 = vpop.xlane.xlu0 %4021 }
0x108f   :  { %v4026_v13 = vmul.f32 0.03125, %v4022_v15 }
0x1091   :  { %v4028_v18 = vadd.f32 1e-05, %v4026_v13 }
0x1092   :  { %v4025_v19 = vpop.xlane.xlu1 %4024 }
0x1093   :  { %10276 = vrsqrt.f32 %v4028_v18  ;;  %v4027_v26 = vmul.f32 0.03125, %v4025_v19 }
0x1095   :  { %v4029_v25 = vadd.f32 1e-05, %v4027_v26  ;;  %v8478_v26 = vld [vmem:[%s12334_s2 + $0x245] ss:$0 sm:$0xff] }
0x1097   :  { %10278 = vrsqrt.f32 %v4029_v25 }
0x10a0   :  { %v10277_v20 = vpop.eup %10276 }
0x10a1   :  { %v4032_v24 = vmul.f32 %v10277_v20, %v4016_v4 }
0x10a3   :  { %v4039_v27 = vmul.f32 %v8463_v21, %v4032_v24 }
0x10a4   :  { %v10279_v5 = vpop.eup %10278 }
0x10a5   :  { %v11378_v29 = vadd.f32 %v8464_v28, %v4039_v27  ;;  %v4033_v30 = vmul.f32 %v10279_v5, %v4017_v32  ;;  %v4416_v32 = vld [vmem:[%s12334_s2 + $0xa8] sm:$0xff] }
0x10a7   :  { %v4040_v51 = vmul.f32 %v8463_v21, %v4033_v30  ;;  %9777 = vmatprep.mubr.msk.f32.mxu1 %vm151_vm2, %v11378_v29  ;;  %9788 = vmatprep.mubr.msk.f32.mxu0 %vm151_vm2, %v11378_v29 }
0x10a9   :  { %v11384_v52 = vadd.f32 %v8464_v28, %v4040_v51 }
0x10ab   :  { %9778 = vmatmul.mubr.msk.f32.vlgmr.msra.gmra.mxu1 %vm151_vm2, %v11384_v52  ;;  %9789 = vmatmul.mubr.msk.f32.vlgmr.msra.gmra.mxu0 %vm151_vm2, %v11384_v52 }
0x10ac   :  { %9799 = vmatpush3.msra.mxu0 %v4334_v12  ;;  %9806 = vmatprep.mubr.msk.f32.mxu0 %vm151_vm2, %v11378_v29 }
0x10ad   :  { %9800 = vmatprep.subr.mxu0 %v4333_v31 }
0x10ae   :  { %9801 = vmatpush3.msra.mxu0 %v4333_v31 }
0x10af   :  { %9802 = vmatprep.subr.mxu0 %v4332_v23 }
0x10b0   :  { %9803 = vmatpush3.msra.mxu0 %v4332_v23 }
0x10b1   :  { %9804 = vmatprep.subr.mxu0 %v4331_v37 }
0x10b2   :  { %9805 = vmatpush3.msra.mxu0 %v4331_v37 }
0x10b3   :  { %9807 = vmatmul.mubr.msk.f32.vlgmr.msra.gmra.mxu0 %vm151_vm2, %v11384_v52  ;;  %9820 = vmatprep.subr.mxu0 %v4423_v47 }
0x10b4   :  { %9821 = vmatpush3.msra.mxu0 %v4423_v47  ;;  %9828 = vmatprep.mubr.msk.f32.mxu0 %vm151_vm2, %v11378_v29 }
0x10b5   :  { %9822 = vmatprep.subr.mxu0 %v4422_v48 }
0x10b6   :  { %9823 = vmatpush3.msra.mxu0 %v4422_v48 }
0x10b7   :  { %9824 = vmatprep.subr.mxu0 %v4421_v39 }
0x10b8   :  { %9825 = vmatpush3.msra.mxu0 %v4421_v39 }
0x10b9   :  { %9826 = vmatprep.subr.mxu0 %v4420_v40 }
0x10ba   :  { %9827 = vmatpush3.msra.mxu0 %v4420_v40 }
0x10bb   :  { %9829 = vmatmul.mubr.msk.f32.vlgmr.msra.gmra.mxu0 %vm151_vm2, %v11384_v52  ;;  %9838 = vmatprep.subr.mxu0 %v4695_v41 }
0x10bc   :  { %9839 = vmatpush3.msra.mxu0 %v4695_v41  ;;  %9846 = vmatprep.mubr.msk.f32.mxu0 %vm151_vm2, %v11378_v29 }
0x10bd   :  { %9840 = vmatprep.subr.mxu0 %v4694_v42 }
0x10be   :  { %9841 = vmatpush3.msra.mxu0 %v4694_v42 }
0x10bf   :  { %9842 = vmatprep.subr.mxu0 %v4693_v44 }
0x10c0   :  { %9843 = vmatpush3.msra.mxu0 %v4693_v44 }
0x10c1   :  { %9844 = vmatprep.subr.mxu0 %v4692_v45 }
0x10c2   :  { %9845 = vmatpush3.msra.mxu0 %v4692_v45 }
0x10c3   :  { %9847 = vmatmul.mubr.msk.f32.vlgmr.msra.gmra.mxu0 %vm151_vm2, %v11384_v52 }
0x116b   :  { %v9779_v38 = vpop.f32.mrf.mxu1  ;;  %v9790_v49 = vpop.f32.mrf.mxu0 }
0x116c   :  { %v4219_v50 = vadd.f32 %v9790_v49, %v8468_v46  ;;  %v4140_v3 = vadd.f32 %v9779_v38, %v8465_v53  ;;  %v4946_v38 = vld [vmem:[%s12334_s2 + $0x1d8] sm:$0xff] }
0x116d   :  { %v4134_v56 = vpop.f32.mrf.mxu1  ;;  %v4213_v58 = vpop.f32.mrf.mxu0 }
0x116e   :  { %v4135_v59 = vadd.f32 %v8465_v53, %v4134_v56  ;;  %v4214_v60 = vadd.f32 %v8468_v46, %v4213_v58  ;;  %9791 = vmatprep.subr.msk.mxu1 %vm312_vm3, %v4219_v50 }
0x116f   :  { %9792 = vmatpush3.xpose.msk.msra.mxu1 %vm312_vm3, %v4219_v50 }
0x1170   :  { %9793 = vmatprep.subr.msk.mxu1 %vm312_vm3, %v4214_v60  ;;  %9795 = vmatprep.mubr.msk.f32.mxu1 %vm312_vm3, %v4135_v59 }
0x1173   :  { %v9808_v63 = vpop.f32.mrf.mxu0  ;;  %9794 = vmatpush3.xpose.msk.msra.mxu1 %vm312_vm3, %v4214_v60 }
0x1174   :  { %v4412_v4 = vadd.f32 %v9808_v63, %v8475_v61  ;;  %9809 = vmatprep.subr.mxu1 %v4418_v62 }
0x1175   :  { %v4406_v54 = vpop.f32.mrf.mxu0 }
0x1176   :  { %v4407_v14 = vadd.f32 %v8475_v61, %v4406_v54  ;;  %9856 = vmatprep.subr.mxu0 %v4412_v4  ;;  %9796 = vmatmul.mubr.msk.f32.vlgmr.msra.gmra.mxu1 %vm312_vm3, %v4140_v3 }
0x1177   :  { %9857 = vmatpush3.msra.mxu0 %v4412_v4  ;;  %9810 = vmatpush3.msra.mxu1 %v4418_v62 }
0x1178   :  { %9817 = vmatprep.mubr.msk.f32.mxu1 %vm151_vm2, %v11378_v29  ;;  %9858 = vmatprep.subr.mxu0 %v4407_v14 }
0x1179   :  { %9811 = vmatprep.subr.mxu1 %v4417_v6  ;;  %9859 = vmatpush3.msra.mxu0 %v4407_v14 }
0x117a   :  { %9812 = vmatpush3.msra.mxu1 %v4417_v6  ;;  %9874 = vmatprep.subr.mxu0 %v4946_v38 }
0x117b   :  { %9813 = vmatprep.subr.mxu1 %v4416_v32  ;;  %v9830_v33 = vpop.f32.mrf.mxu0 }
0x117c   :  { %v4580_v0 = vadd.f32 %v9830_v33, %v8481_v7  ;;  %9814 = vmatpush3.msra.mxu1 %v4416_v32  ;;  %v4943_v33 = vld [vmem:[%s12334_s2 + $0x1c0] sm:$0xff] }
0x117d   :  { %9815 = vmatprep.subr.mxu1 %v4415_v1  ;;  %v4574_v22 = vpop.f32.mrf.mxu0 }
0x117e   :  { %v4575_v34 = vadd.f32 %v8481_v7, %v4574_v22  ;;  %9816 = vmatpush3.msra.mxu1 %v4415_v1  ;;  %v4945_v7 = vld [vmem:[%s12334_s2 + $0x1d0] sm:$0xff]  ;;  %v4944_v1 = vld [vmem:[%s12334_s2 + $0x1c8] sm:$0xff] }
0x117f   :  { %9818 = vmatmul.mubr.msk.f32.vlgmr.msra.gmra.mxu1 %vm151_vm2, %v11384_v52  ;;  %9831 = vmatprep.subr.msk.mxu1 %vm312_vm3, %v4580_v0  ;;  %v5217_v22 = vld [vmem:[%s12332_s3 + $0xd0] sm:$0xff] }
0x1180   :  { %9832 = vmatpush3.xpose.msk.msra.mxu1 %vm312_vm3, %v4580_v0  ;;  %v5218_v0 = vld [vmem:[%s12332_s3 + $0xd8] sm:$0xff] }
0x1181   :  { %9833 = vmatprep.subr.msk.mxu1 %vm312_vm3, %v4575_v34 }
0x1183   :  { %v9848_v36 = vpop.f32.mrf.mxu0 }
0x1184   :  { %v4773_v10 = vadd.f32 %v9848_v36, %v8488_v35  ;;  %9834 = vmatpush3.xpose.msk.msra.mxu1 %vm312_vm3, %v4575_v34  ;;  %v5216_v34 = vld [vmem:[%s12332_s3 + $0xc8] sm:$0xff]  ;;  %v5385_v36 = vld [vmem:[%s12334_s2 + $0xf8] sm:$0xff] }
0x1185   :  { %v4767_v20 = vpop.f32.mrf.mxu0 }
0x1186   :  { %9849 = vmatprep.subr.mxu1 %v4773_v10  ;;  %v4768_v28 = vadd.f32 %v8488_v35, %v4767_v20  ;;  %v5215_v35 = vld [vmem:[%s12332_s3 + $0xc0] sm:$0xff]  ;;  %v4940_v20 = vld [vmem:[%s12334_s2 + $0xd0] sm:$0xff] }
0x1236   :  { %v9797_v2 = vpop.f32.mrf.mxu1 }
0x1237   :  { %v4306_v11 = vadd.f32 %v9797_v2, %v10549_v9  ;;  %v5383_v2 = vld [vmem:[%s12334_s2 + $0xe8] sm:$0xff] }
0x1238   :  { %v4300_v12 = vpop.f32.mrf.mxu1 }
0x1239   :  { %v4301_v15 = vadd.f32 %v4300_v12, %v10547_v8  ;;  %v4312_v13 = vsel %vm35_vm1, %v4306_v11, -inf  ;;  %v4941_v12 = vld [vmem:[%s12334_s2 + $0xd8] sm:$0xff] }
0x123a   :  { %4313 = vmax.xlane.f32.xlu1 %v4312_v13 }
0x123b   :  { %v4309_v18 = vsel %vm35_vm1, %v4301_v15, -inf }
0x123c   :  { %4310 = vmax.xlane.f32.xlu0 %v4309_v18 }
0x123f   :  { %v9819_v19 = vpop.f32.mrf.mxu1 }
0x1240   :  { %v4501_v24 = vadd.f32 %v9819_v19, %v8478_v26 }
0x1241   :  { %v4495_v25 = vpop.f32.mrf.mxu1 }
0x1242   :  { %v4496_v21 = vadd.f32 %v8478_v26, %v4495_v25 }
0x1244   :  { %9835 = vmatprep.mubr.msk.f32.mxu1 %vm312_vm3, %v4496_v21  ;;  %v4939_v21 = vld [vmem:[%s12334_s2 + $0xc8] sm:$0xff] }
0x1245   :  { %9836 = vmatmul.mubr.msk.f32.vlgmr.msra.gmra.mxu1 %vm312_vm3, %v4501_v24  ;;  %v4938_v24 = vld [vmem:[%s12334_s2 + $0xc0] sm:$0xff] }
0x1246   :  { %9850 = vmatpush3.msra.mxu1 %v4773_v10  ;;  %v5384_v10 = vld [vmem:[%s12334_s2 + $0xf0] sm:$0xff] }
0x1247   :  { %9851 = vmatprep.subr.mxu1 %v4768_v28 }
0x1248   :  { %9852 = vmatpush3.msra.mxu1 %v4768_v28 }
0x1249   :  { %9863 = vmatprep.subr.mxu1 %v4941_v12 }
0x12c3   :  { %v4314_v27 = vpop.xlane.xlu1 %4313 }
0x12c4   :  { %v4316_v30 = vsub.f32 %v4306_v11, %v4314_v27  ;;  %v5382_v11 = vld [vmem:[%s12334_s2 + $0xe0] sm:$0xff] }
0x12c5   :  { %v4311_v5 = vpop.xlane.xlu0 %4310 }
0x12c6   :  { %v4315_v51 = vsub.f32 %v4301_v15, %v4311_v5  ;;  %v4319_v31 = vmul.f32 1.442695, %v4316_v30  ;;  %v8498_v5 = vld [vmem:[%s12334_s2 + $0x24e] ss:$0 sm:$0xff] }
0x12c8   :  { %v4317_v23 = vmul.f32 1.442695, %v4315_v51  ;;  %10280 = vpow2.f32 %v4319_v31 }
0x12ca   :  { %10282 = vpow2.f32 %v4317_v23 }
0x12d5   :  { %v10281_v41 = vpop.eup %10280 }
0x12d6   :  { %v4324_v45 = vsel %vm35_vm1, %v10281_v41, 0.0 }
0x12d7   :  { %v10283_v44 = vpop.eup %10282 }
0x12d8   :  { %v4321_v46 = vsel %vm35_vm1, %v10283_v44, 0.0 }
0x1305   :  { %v9837_v37 = vpop.f32.mrf.mxu1 }
0x1306   :  { %v4667_v47 = vadd.f32 %v9837_v37, %v10549_v9  ;;  %v8505_v37 = vld [vmem:[%s12332_s3 + $0x12d] ss:$0 sm:$0xff] }
0x1307   :  { %v4661_v48 = vpop.f32.mrf.mxu1 }
0x1308   :  { %v4662_v39 = vadd.f32 %v4661_v48, %v10547_v8  ;;  %v4673_v40 = vsel %vm35_vm1, %v4667_v47, -inf }
0x1309   :  { %4674 = vmax.xlane.f32.xlu1 %v4673_v40 }
0x130a   :  { %v4670_v42 = vsel %vm35_vm1, %v4662_v39, -inf }
0x130b   :  { %4671 = vmax.xlane.f32.xlu0 %v4670_v42 }
0x130d   :  { %4325 = vadd.xlane.f32.xlu1 %v4324_v45 }
0x130f   :  { %4322 = vadd.xlane.f32.xlu0 %v4321_v46 }
0x1392   :  { %v4675_v49 = vpop.xlane.xlu1 %4674 }
0x1393   :  { %v4677_v50 = vsub.f32 %v4667_v47, %v4675_v49 }
0x1394   :  { %v4672_v53 = vpop.xlane.xlu0 %4671 }
0x1395   :  { %v4680_v56 = vmul.f32 1.442695, %v4677_v50  ;;  %v4676_v58 = vsub.f32 %v4662_v39, %v4672_v53  ;;  %v8495_v53 = vld [vmem:[%s12334_s2 + $0x246] ss:$0 sm:$0xff] }
0x1396   :  { %v4326_v59 = vpop.xlane.xlu1 %4325 }
0x1397   :  { %10284 = vpow2.f32 %v4680_v56  ;;  %v4678_v60 = vmul.f32 1.442695, %v4676_v58 }
0x1398   :  { %10286 = vrcp.f32 %v4326_v59  ;;  %v4323_v61 = vpop.xlane.xlu0 %4322 }
0x1399   :  { %10288 = vpow2.f32 %v4678_v60 }
0x139a   :  { %10290 = vrcp.f32 %v4323_v61 }
0x13a4   :  { %v10285_v62 = vpop.eup %10284 }
0x13a5   :  { %v10287_v63 = vpop.eup %10286  ;;  %v4685_v3 = vsel %vm35_vm1, %v10285_v62, 0.0 }
0x13a6   :  { %v10289_v4 = vpop.eup %10288  ;;  %4686 = vadd.xlane.f32.xlu1 %v4685_v3  ;;  %v4330_v32 = vmul.f32 %v10287_v63, %v10281_v41  ;;  %v8510_v41 = vld [vmem:[%s12334_s2 + $0x247] ss:$0 sm:$0xff] }
0x13a7   :  { %v10291_v54 = vpop.eup %10290  ;;  %v4682_v14 = vsel %vm35_vm1, %v10289_v4, 0.0 }
0x13a8   :  { %4683 = vadd.xlane.f32.xlu0 %v4682_v14  ;;  %v4328_v6 = vmul.f32 %v10291_v54, %v10283_v44 }
0x13aa   :  { %9860 = vmatprep.mubr.msk.f32.mxu0 %vm35_vm1, %v4328_v6 }
0x13ab   :  { %9861 = vmatmul.mubr.msk.f32.vlgmr.msra.gmra.mxu0 %vm35_vm1, %v4330_v32 }
0x13ac   :  { %9875 = vmatpush3.msra.mxu0 %v4946_v38  ;;  %9882 = vmatprep.mubr.msk.f32.mxu0 %vm151_vm2, %v11378_v29 }
0x13ad   :  { %9876 = vmatprep.subr.mxu0 %v4945_v7 }
0x13ae   :  { %9877 = vmatpush3.msra.mxu0 %v4945_v7 }
0x13af   :  { %9878 = vmatprep.subr.mxu0 %v4944_v1 }
0x13b0   :  { %9879 = vmatpush3.msra.mxu0 %v4944_v1 }
0x13b1   :  { %9880 = vmatprep.subr.mxu0 %v4943_v33 }
0x13b2   :  { %9881 = vmatpush3.msra.mxu0 %v4943_v33 }
0x13b3   :  { %9883 = vmatmul.mubr.msk.f32.vlgmr.msra.gmra.mxu0 %vm151_vm2, %v11384_v52  ;;  %9892 = vmatprep.subr.mxu0 %v5218_v0 }
0x13b4   :  { %9893 = vmatpush3.msra.mxu0 %v5218_v0  ;;  %9900 = vmatprep.mubr.msk.f32.mxu0 %vm151_vm2, %v11378_v29 }
0x13b5   :  { %9894 = vmatprep.subr.mxu0 %v5217_v22 }
0x13b6   :  { %9895 = vmatpush3.msra.mxu0 %v5217_v22 }
0x13b7   :  { %9896 = vmatprep.subr.mxu0 %v5216_v34 }
0x13b8   :  { %9897 = vmatpush3.msra.mxu0 %v5216_v34 }
0x13b9   :  { %9898 = vmatprep.subr.mxu0 %v5215_v35 }
0x13ba   :  { %9899 = vmatpush3.msra.mxu0 %v5215_v35  ;;  %v5390_v35 = vld [vmem:[%s12334_s2 + $0x1f8] sm:$0xff] }
0x13bb   :  { %9901 = vmatmul.mubr.msk.f32.vlgmr.msra.gmra.mxu0 %vm151_vm2, %v11384_v52  ;;  %9910 = vmatprep.subr.mxu0 %v5385_v36 }
0x13bc   :  { %9911 = vmatpush3.msra.mxu0 %v5385_v36  ;;  %9918 = vmatprep.mubr.msk.f32.mxu0 %vm151_vm2, %v11378_v29 }
0x13bd   :  { %9912 = vmatprep.subr.mxu0 %v5384_v10 }
0x13be   :  { %9913 = vmatpush3.msra.mxu0 %v5384_v10 }
0x13bf   :  { %9914 = vmatprep.subr.mxu0 %v5383_v2 }
0x13c0   :  { %9915 = vmatpush3.msra.mxu0 %v5383_v2 }
0x13c1   :  { %9916 = vmatprep.subr.mxu0 %v5382_v11 }
0x13c2   :  { %9917 = vmatpush3.msra.mxu0 %v5382_v11 }
0x13c3   :  { %9919 = vmatmul.mubr.msk.f32.vlgmr.msra.gmra.mxu0 %vm151_vm2, %v11384_v52 }
0x142f   :  { %v4687_v15 = vpop.xlane.xlu1 %4686 }
0x1430   :  { %10292 = vrcp.f32 %v4687_v15 }
0x1431   :  { %v4684_v13 = vpop.xlane.xlu0 %4683 }
0x1432   :  { %10294 = vrcp.f32 %v4684_v13  ;;  %v5389_v13 = vld [vmem:[%s12334_s2 + $0x1f0] sm:$0xff] }
0x143d   :  { %v10293_v18 = vpop.eup %10292 }
0x143e   :  { %v4691_v25 = vmul.f32 %v10293_v18, %v10285_v62  ;;  %v5388_v18 = vld [vmem:[%s12334_s2 + $0x1e8] sm:$0xff] }
0x143f   :  { %v10295_v19 = vpop.eup %10294 }
0x1440   :  { %v4689_v26 = vmul.f32 %v10295_v19, %v10289_v4  ;;  %v5387_v19 = vld [vmem:[%s12334_s2 + $0x1e0] sm:$0xff] }
0x1442   :  { %9853 = vmatprep.mubr.msk.f32.mxu1 %vm35_vm1, %v4689_v26  ;;  %v5662_v26 = vld [vmem:[%s12332_s3 + $0xf8] sm:$0xff] }
0x1443   :  { %9854 = vmatmul.mubr.msk.f32.vlgmr.msra.gmra.mxu1 %vm35_vm1, %v4691_v25  ;;  %v5661_v25 = vld [vmem:[%s12332_s3 + $0xf0] sm:$0xff] }
0x1444   :  { %9864 = vmatpush3.msra.mxu1 %v4941_v12  ;;  %9871 = vmatprep.mubr.msk.f32.mxu1 %vm151_vm2, %v11378_v29 }
0x1445   :  { %9865 = vmatprep.subr.mxu1 %v4940_v20 }
0x1446   :  { %9866 = vmatpush3.msra.mxu1 %v4940_v20  ;;  %v5660_v20 = vld [vmem:[%s12332_s3 + $0xe8] sm:$0xff] }
0x1447   :  { %9867 = vmatprep.subr.mxu1 %v4939_v21 }
0x1448   :  { %9868 = vmatpush3.msra.mxu1 %v4939_v21  ;;  %v5659_v21 = vld [vmem:[%s12332_s3 + $0xe0] sm:$0xff] }
0x1449   :  { %9869 = vmatprep.subr.mxu1 %v4938_v24 }
0x144a   :  { %9870 = vmatpush3.msra.mxu1 %v4938_v24 }
0x144b   :  { %9872 = vmatmul.mubr.msk.f32.vlgmr.msra.gmra.mxu1 %vm151_vm2, %v11384_v52 }
0x146b   :  { %v11561_v28 = vpop.f32.mrf.mxu0 }
0x146d   :  { %v11563_v27 = vpop.f32.mrf.mxu0 }
0x1473   :  { %v9884_v30 = vpop.f32.mrf.mxu0 }
0x1474   :  { %v5103_v51 = vadd.f32 %v9884_v30, %v8498_v5 }
0x1475   :  { %v5097_v31 = vpop.f32.mrf.mxu0 }
0x1476   :  { %v5098_v23 = vadd.f32 %v8498_v5, %v5097_v31  ;;  %9885 = vmatprep.subr.msk.mxu1 %vm312_vm3, %v5103_v51 }
0x1477   :  { %9886 = vmatpush3.xpose.msk.msra.mxu1 %vm312_vm3, %v5103_v51 }
0x1478   :  { %9887 = vmatprep.subr.msk.mxu1 %vm312_vm3, %v5098_v23 }
0x147b   :  { %9888 = vmatpush3.xpose.msk.msra.mxu1 %vm312_vm3, %v5098_v23  ;;  %v9902_v47 = vpop.f32.mrf.mxu0 }
0x147c   :  { %v5296_v48 = vadd.f32 %v9902_v47, %v8505_v37 }
0x147d   :  { %v5290_v39 = vpop.f32.mrf.mxu0 }
0x147e   :  { %v5291_v40 = vadd.f32 %v8505_v37, %v5290_v39  ;;  %9903 = vmatprep.subr.mxu1 %v5296_v48  ;;  %v8513_v37 = vld [vmem:[%s12334_s2 + $0x24f] ss:$0 sm:$0xff] }
0x1483   :  { %v9920_v42 = vpop.f32.mrf.mxu0 }
0x1484   :  { %v11578_v44 = vadd.f32 %v9920_v42, %v8510_v41 }
0x1485   :  { %v5462_v45 = vpop.f32.mrf.mxu0 }
0x1486   :  { %v5463_v46 = vadd.f32 %v8510_v41, %v5462_v45 }
0x1488   :  { %9936 = vmatprep.mubr.msk.f32.mxu0 %vm312_vm3, %v5463_v46 }
0x1503   :  { %v11581_v38 = vpop.f32.mrf.mxu1 }
0x1504   :  { %v4935_v24 = vadd.f32 %v11561_v28, %v11581_v38  ;;  %v8520_v28 = vld [vmem:[%s12332_s3 + $0x12e] ss:$0 sm:$0xff] }
0x1505   :  { %v11583_v49 = vpop.f32.mrf.mxu1 }
0x1506   :  { %v4930_v30 = vadd.f32 %v11563_v27, %v11583_v49 }
0x150b   :  { %v9873_v50 = vpop.f32.mrf.mxu1 }
0x150c   :  { %v5024_v59 = vadd.f32 %v9873_v50, %v8495_v53 }
0x150d   :  { %v5018_v56 = vpop.f32.mrf.mxu1 }
0x150e   :  { %v5019_v58 = vadd.f32 %v8495_v53, %v5018_v56 }
0x1510   :  { %9889 = vmatprep.mubr.msk.f32.mxu1 %vm312_vm3, %v5019_v58 }
0x1511   :  { %9890 = vmatmul.mubr.msk.f32.vlgmr.msra.gmra.mxu1 %vm312_vm3, %v5024_v59 }
0x1512   :  { %9904 = vmatpush3.msra.mxu1 %v5296_v48 }
0x1513   :  { %9905 = vmatprep.subr.mxu1 %v5291_v40 }
0x1514   :  { %9906 = vmatpush3.msra.mxu1 %v5291_v40 }
0x1515   :  { %9921 = vmatprep.subr.mxu1 %v5390_v35 }
0x15d1   :  { %v9891_v60 = vpop.f32.mrf.mxu1 }
0x15d2   :  { %v5190_v61 = vadd.f32 %v9891_v60, %v10549_v9 }
0x15d3   :  { %v5184_v62 = vpop.f32.mrf.mxu1 }
0x15d4   :  { %v5185_v63 = vadd.f32 %v5184_v62, %v10547_v8  ;;  %v5196_v3 = vsel %vm35_vm1, %v5190_v61, -inf }
0x15d5   :  { %5197 = vmax.xlane.f32.xlu1 %v5196_v3 }
0x15d6   :  { %v5193_v4 = vsel %vm35_vm1, %v5185_v63, -inf }
0x15d7   :  { %5194 = vmax.xlane.f32.xlu0 %v5193_v4 }
0x165e   :  { %v5198_v54 = vpop.xlane.xlu1 %5197 }
0x165f   :  { %v5200_v14 = vsub.f32 %v5190_v61, %v5198_v54 }
0x1660   :  { %v5195_v6 = vpop.xlane.xlu0 %5194 }
0x1661   :  { %v5203_v32 = vmul.f32 1.442695, %v5200_v14  ;;  %v5199_v7 = vsub.f32 %v5185_v63, %v5195_v6 }
0x1663   :  { %10296 = vpow2.f32 %v5203_v32  ;;  %v5201_v1 = vmul.f32 1.442695, %v5199_v7 }
0x1665   :  { %10298 = vpow2.f32 %v5201_v1 }
0x1670   :  { %v10297_v33 = vpop.eup %10296 }
0x1671   :  { %v5208_v0 = vsel %vm35_vm1, %v10297_v33, 0.0 }
0x1672   :  { %v10299_v22 = vpop.eup %10298  ;;  %5209 = vadd.xlane.f32.xlu1 %v5208_v0 }
0x1673   :  { %v5205_v34 = vsel %vm35_vm1, %v10299_v22, 0.0 }
0x1674   :  { %5206 = vadd.xlane.f32.xlu0 %v5205_v34 }
0x16fb   :  { %v5210_v36 = vpop.xlane.xlu1 %5209 }
0x16fc   :  { %10300 = vrcp.f32 %v5210_v36 }
0x16fd   :  { %v5207_v10 = vpop.xlane.xlu0 %5206 }
0x16fe   :  { %10302 = vrcp.f32 %v5207_v10 }
0x1709   :  { %v10301_v2 = vpop.eup %10300 }
0x170a   :  { %v5214_v15 = vmul.f32 %v10301_v2, %v10297_v33  ;;  %v8525_v33 = vld [vmem:[%s12332_s3 + $0x12f] ss:$0 sm:$0xff] }
0x170b   :  { %v10303_v11 = vpop.eup %10302 }
0x170c   :  { %v5212_v12 = vmul.f32 %v10303_v11, %v10299_v22 }
0x170e   :  { %9907 = vmatprep.mubr.msk.f32.mxu1 %vm35_vm1, %v5212_v12 }
0x170f   :  { %9908 = vmatmul.mubr.msk.f32.vlgmr.msra.gmra.mxu1 %vm35_vm1, %v5214_v15 }
0x1710   :  { %9922 = vmatpush3.msra.mxu1 %v5390_v35  ;;  %9929 = vmatprep.mubr.msk.f32.mxu1 %vm151_vm2, %v11378_v29 }
0x1711   :  { %9923 = vmatprep.subr.mxu1 %v5389_v13 }
0x1712   :  { %9924 = vmatpush3.msra.mxu1 %v5389_v13 }
0x1713   :  { %9925 = vmatprep.subr.mxu1 %v5388_v18 }
0x1714   :  { %9926 = vmatpush3.msra.mxu1 %v5388_v18 }
0x1715   :  { %9927 = vmatprep.subr.mxu1 %v5387_v19 }
0x1716   :  { %9928 = vmatpush3.msra.mxu1 %v5387_v19 }
0x1717   :  { %9930 = vmatmul.mubr.msk.f32.vlgmr.msra.gmra.mxu1 %vm151_vm2, %v11384_v52  ;;  %9939 = vmatprep.subr.mxu1 %v5662_v26 }
0x1718   :  { %9940 = vmatpush3.msra.mxu1 %v5662_v26  ;;  %9947 = vmatprep.mubr.msk.f32.mxu1 %vm151_vm2, %v11378_v29 }
0x1719   :  { %9941 = vmatprep.subr.mxu1 %v5661_v25 }
0x171a   :  { %9942 = vmatpush3.msra.mxu1 %v5661_v25 }
0x171b   :  { %9943 = vmatprep.subr.mxu1 %v5660_v20 }
0x171c   :  { %9944 = vmatpush3.msra.mxu1 %v5660_v20 }
0x171d   :  { %9945 = vmatprep.subr.mxu1 %v5659_v21 }
0x171e   :  { %9946 = vmatpush3.msra.mxu1 %v5659_v21 }
0x171f   :  { %9948 = vmatmul.mubr.msk.f32.vlgmr.msra.gmra.mxu1 %vm151_vm2, %v11384_v52 }
0x1720   :  { %5983 = vmatprep.mubr.bf16.mxu1 %v10347_v43 }
0x17cf   :  { %v9909_v5 = vpop.f32.mrf.mxu1 }
0x17d0   :  { %v5381_v51 = vadd.f32 %v9909_v5, %v4935_v24  ;;  %v8534_v5 = vld [vmem:[%s12335_s4 + $0x1c0] sm:$0xff] }
0x17d1   :  { %v5371_v31 = vpop.f32.mrf.mxu1 }
0x17d2   :  { %v5380_v23 = vadd.f32 %v5371_v31, %v4930_v30  ;;  %v8533_v30 = vld [vmem:[%s12335_s4 + $0x188] sm:$0xff] }
0x17d3   :  { %v8535_v31 = vld [vmem:[%s12335_s4 + $0x1c8] sm:$0xff] }
0x17d7   :  { %v9931_v47 = vpop.f32.mrf.mxu1 }
0x17d8   :  { %v5547_v48 = vadd.f32 %v9931_v47, %v8513_v37  ;;  %v8544_v47 = vcombine.high %v8533_v30, %v8535_v31 }
0x17d9   :  { %v5541_v39 = vpop.f32.mrf.mxu1 }
0x17da   :  { %v5542_v40 = vadd.f32 %v8513_v37, %v5541_v39  ;;  %9932 = vmatprep.subr.msk.mxu0 %vm312_vm3, %v5547_v48  ;;  %v8543_v37 = vcombine.low %v8533_v30, %v8535_v31  ;;  %v8530_v39 = vld [vmem:[%s12335_s4 + $0x140] sm:$0xff] }
0x17db   :  { %9933 = vmatpush3.xpose.msk.msra.mxu0 %vm312_vm3, %v5547_v48  ;;  %v8528_v48 = vld [vmem:[%s12335_s4 + $0x100] sm:$0xff] }
0x17dc   :  { %9934 = vmatprep.subr.msk.mxu0 %vm312_vm3, %v5542_v40  ;;  %v10124_v30 = vld [vmem:[%s12336_s6 + $0x560] sm:$0xff]  }
0x17dd   :  { %v10126_v31 = vld [vmem:[%s12336_s6 + $0x520] sm:$0xff]  }
0x17df   :  { %9935 = vmatpush3.xpose.msk.msra.mxu0 %vm312_vm3, %v5542_v40  ;;  %v9949_v27 = vpop.f32.mrf.mxu1  ;;  %v8529_v40 = vld [vmem:[%s12335_s4 + $0x108] sm:$0xff] }
0x17e0   :  { %v5740_v41 = vadd.f32 %v9949_v27, %v8520_v28  ;;  %v8531_v27 = vld [vmem:[%s12335_s4 + $0x148] sm:$0xff] }
0x17e1   :  { %v5734_v42 = vpop.f32.mrf.mxu1 }
0x17e2   :  { %v5735_v45 = vadd.f32 %v8520_v28, %v5734_v42  ;;  %9937 = vmatmul.mubr.msk.f32.vlgmr.msra.gmra.mxu0 %vm312_vm3, %v11578_v44  ;;  %9950 = vmatprep.subr.mxu0 %v5740_v41  ;;  %v8538_v28 = vcombine.high %v8528_v48, %v8530_v39  ;;  %v8539_v42 = vcombine.low %v8529_v40, %v8531_v27 }
0x17e3   :  { %9951 = vmatpush3.msra.mxu0 %v5740_v41  ;;  %v8537_v41 = vcombine.low %v8528_v48, %v8530_v39  ;;  %v10130_v48 = vld [vmem:[%s12336_s6 + $0x518] sm:$0xff]  }
0x17e4   :  { %9952 = vmatprep.subr.mxu0 %v5735_v45  ;;  %v10131_v39 = vld [vmem:[%s12336_s6 + $0x598] sm:$0xff]  }
0x17e5   :  { %9953 = vmatpush3.msra.mxu0 %v5735_v45  ;;  %v8540_v45 = vcombine.high %v8529_v40, %v8531_v27  ;;  %v10132_v40 = vld [vmem:[%s12336_s6 + $0x550] sm:$0xff]  }
0x17e6   :  { %6006 = vmatprep.subr.bf16.mxu0 %v8544_v47  ;;  %v10129_v47 = vld [vmem:[%s12336_s6 + $0x5d8] sm:$0xff]   ;;  %v10134_v27 = vld [vmem:[%s12336_s6 + $0x510] sm:$0xff]  }
0x18a2   :  { %v9938_v46 = vpop.f32.mrf.mxu0 }
0x18a3   :  { %v5634_v38 = vadd.f32 %v9938_v46, %v10549_v9  ;;  %v8615_v46 = vld [vmem:[%s12335_s4 + $0x190] sm:$0xff] }
0x18a4   :  { %v5628_v49 = vpop.f32.mrf.mxu0 }
0x18a5   :  { %v5629_v50 = vadd.f32 %v5628_v49, %v10547_v8  ;;  %v5640_v53 = vsel %vm35_vm1, %v5634_v38, -inf  ;;  %v8616_v49 = vld [vmem:[%s12335_s4 + $0x198] sm:$0xff] }
0x18a6   :  { %5641 = vmax.xlane.f32.xlu1 %v5640_v53  ;;  %v8618_v53 = vld [vmem:[%s12335_s4 + $0x1d8] sm:$0xff] }
0x18a7   :  { %v5637_v56 = vsel %vm35_vm1, %v5629_v50, -inf }
0x18a8   :  { %5638 = vmax.xlane.f32.xlu0 %v5637_v56 }
0x192f   :  { %v5642_v58 = vpop.xlane.xlu1 %5641 }
0x1930   :  { %v5644_v59 = vsub.f32 %v5634_v38, %v5642_v58  ;;  %v8617_v38 = vld [vmem:[%s12335_s4 + $0x1d0] sm:$0xff]  ;;  %v8626_v58 = vcombine.low %v8616_v49, %v8618_v53 }
0x1931   :  { %v5639_v60 = vpop.xlane.xlu0 %5638  ;;  %v8624_v56 = vcombine.low %v8615_v46, %v8617_v38 }
0x1932   :  { %v5647_v44 = vmul.f32 1.442695, %v5644_v59  ;;  %v5643_v61 = vsub.f32 %v5629_v50, %v5639_v60  ;;  %v8625_v50 = vcombine.high %v8615_v46, %v8617_v38  ;;  %v8627_v59 = vcombine.high %v8616_v49, %v8618_v53  ;;  %v10138_v46 = vld [vmem:[%s12336_s6 + $0x508] sm:$0xff]   ;;  %v10140_v49 = vld [vmem:[%s12336_s6 + $0x540] sm:$0xff]  }
0x1933   :  { %v10139_v38 = vld [vmem:[%s12336_s6 + $0x588] sm:$0xff]   ;;  %v10142_v53 = vld [vmem:[%s12336_s6 + $0x500] sm:$0xff]  }
0x1934   :  { %10304 = vpow2.f32 %v5647_v44  ;;  %v5645_v62 = vmul.f32 1.442695, %v5643_v61 }
0x1936   :  { %10306 = vpow2.f32 %v5645_v62 }
0x1941   :  { %v10305_v63 = vpop.eup %10304 }
0x1942   :  { %v5652_v9 = vsel %vm35_vm1, %v10305_v63, 0.0 }
0x1943   :  { %v10307_v3 = vpop.eup %10306  ;;  %5653 = vadd.xlane.f32.xlu1 %v5652_v9 }
0x1944   :  { %v5649_v8 = vsel %vm35_vm1, %v10307_v3, 0.0 }
0x1945   :  { %5650 = vadd.xlane.f32.xlu0 %v5649_v8  ;;  %v8526_v8 = vld [vmem:[%s12332_s3 + $0x130] ss:$0 sm:$0xff] }
0x19cc   :  { %v5654_v4 = vpop.xlane.xlu1 %5653 }
0x19cd   :  { %10308 = vrcp.f32 %v5654_v4 }
0x19ce   :  { %v5651_v54 = vpop.xlane.xlu0 %5650 }
0x19cf   :  { %10310 = vrcp.f32 %v5651_v54 }
0x19da   :  { %v10309_v14 = vpop.eup %10308 }
0x19db   :  { %v5658_v7 = vmul.f32 %v10309_v14, %v10305_v63 }
0x19dc   :  { %v10311_v6 = vpop.eup %10310 }
0x19dd   :  { %v5656_v32 = vmul.f32 %v10311_v6, %v10307_v3 }
0x19df   :  { %9954 = vmatprep.mubr.msk.f32.mxu0 %vm35_vm1, %v5656_v32  ;;  %v8527_v32 = vld [vmem:[%s12332_s3 + $0x131] ss:$0 sm:$0xff] }
0x19e0   :  { %9955 = vmatmul.mubr.msk.f32.vlgmr.msra.gmra.mxu0 %vm35_vm1, %v5658_v7 }
0x19e1   :  { %6026 = vmatprep.mubr.bf16.mxu0 %v10347_v43  ;;  %6007 = vmatpush1.bf16.msra.mxu0 %v8543_v37  ;;  %v10128_v37 = vld [vmem:[%s12336_s6 + $0x558] sm:$0xff]  }
0x19e2   :  { %6008 = vmatprep.subr.bf16.mxu0 %v8540_v45  ;;  %v10137_v45 = vld [vmem:[%s12336_s6 + $0x5c8] sm:$0xff]  }
0x19e5   :  { %6009 = vmatpush1.bf16.msra.mxu0 %v8539_v42  ;;  %v10136_v42 = vld [vmem:[%s12336_s6 + $0x548] sm:$0xff]  }
0x19e6   :  { %6239 = vmatprep.subr.bf16.mxu0 %v8627_v59  ;;  %v10145_v59 = vld [vmem:[%s12336_s6 + $0x4f8] sm:$0xff]  }
0x1aa0   :  { %v9956_v1 = vpop.f32.mrf.mxu0 }
0x1aa1   :  { %v5825_v0 = vadd.f32 %v9956_v1, %v5381_v51  ;;  %v8611_v1 = vld [vmem:[%s12335_s4 + $0x110] sm:$0xff] }
0x1aa2   :  { %v5815_v22 = vpop.f32.mrf.mxu0 }
0x1aa3   :  { %v5832_v34 = vadd.f32 %v8525_v33, %v5825_v0  ;;  %v5824_v35 = vadd.f32 %v5815_v22, %v5380_v23  ;;  %v8612_v0 = vld [vmem:[%s12335_s4 + $0x118] sm:$0xff] }
0x1aa4   :  { %v8614_v22 = vld [vmem:[%s12335_s4 + $0x158] sm:$0xff] }
0x1aa5   :  { %v5831_v36 = vadd.f32 %v8525_v33, %v5824_v35  ;;  %v5834_v10 = vadd.f32 %v5832_v34, %v11384_v52  ;;  %v8613_v33 = vld [vmem:[%s12335_s4 + $0x150] sm:$0xff] }
0x1aa7   :  { %v5838_v2 = vsel %vm151_vm2, %v5834_v10, 0.0  ;;  %v5833_v11 = vadd.f32 %v5831_v36, %v11378_v29  ;;  %v8532_v29 = vld [vmem:[%s12335_s4 + $0x180] sm:$0xff] }
0x1aa8   :  { %5839 = vadd.xlane.f32.xlu1 %v5838_v2  ;;  %v8542_v51 = vcombine.high %v8532_v29, %v8534_v5  ;;  %v8541_v23 = vcombine.low %v8532_v29, %v8534_v5  ;;  %v8623_v2 = vcombine.high %v8612_v0, %v8614_v22  ;;  %v10122_v29 = vld [vmem:[%s12336_s6 + $0x528] sm:$0xff]  }
0x1aa9   :  { %v5835_v12 = vsel %vm151_vm2, %v5833_v11, 0.0  ;;  %v10123_v5 = vld [vmem:[%s12336_s6 + $0x5a8] sm:$0xff]  }
0x1aaa   :  { %5836 = vadd.xlane.f32.xlu0 %v5835_v12  ;;  %5963 = vmatprep.subr.bf16.mxu1 %v8542_v51  ;;  %v8622_v12 = vcombine.low %v8612_v0, %v8614_v22  ;;  %v10125_v51 = vld [vmem:[%s12336_s6 + $0x5e0] sm:$0xff]   ;;  %v11857_v22 = vld [vmem:[%s12337_s5 + $0x10] sm:$0xf] }
0x1aab   :  { %5964 = vmatpush1.bf16.msra.mxu1 %v8541_v23  ;;  %v10127_v23 = vld [vmem:[%s12336_s6 + $0x5a0] sm:$0xff]  }
0x1aac   :  { %5965 = vmatprep.subr.bf16.mxu1 %v8538_v28  ;;  %v10133_v28 = vld [vmem:[%s12336_s6 + $0x5d0] sm:$0xff]  }
0x1aaf   :  { %5966 = vmatpush1.bf16.msra.mxu1 %v8537_v41  ;;  %v10135_v41 = vld [vmem:[%s12336_s6 + $0x590] sm:$0xff]  }
0x1ab0   :  { %6196 = vmatprep.subr.bf16.mxu1 %v8625_v50  ;;  %v10141_v50 = vld [vmem:[%s12336_s6 + $0x5c0] sm:$0xff]  }
0x1b31   :  { %v5840_v15 = vpop.xlane.xlu1 %5839 }
0x1b32   :  { %v5842_v13 = vmul.f32 0.03125, %v5840_v15  ;;  %v10112_v15 = vld [vmem:[%s12336_s6 + $0x578] sm:$0xff]  }
0x1b33   :  { %v5837_v18 = vpop.xlane.xlu0 %5836 }
0x1b34   :  { %v5844_v19 = vsub.f32 %v5834_v10, %v5842_v13  ;;  %v5841_v26 = vmul.f32 0.03125, %v5837_v18  ;;  %v8621_v10 = vcombine.high %v8611_v1, %v8613_v33  ;;  %v10113_v13 = vld [vmem:[%s12336_s6 + $0x5f8] sm:$0xff]  }
0x1b35   :  { %v10114_v18 = vld [vmem:[%s12336_s6 + $0x538] sm:$0xff]  }
0x1b36   :  { %v5843_v25 = vsub.f32 %v5833_v11, %v5841_v26  ;;  %v5846_v20 = vmul.f32 %v5844_v19, %v5844_v19  ;;  %v8620_v11 = vcombine.low %v8611_v1, %v8613_v33  ;;  %v10116_v26 = vld [vmem:[%s12336_s6 + $0x570] sm:$0xff]  }
0x1b38   :  { %v5850_v21 = vsel %vm151_vm2, %v5846_v20, 0.0  ;;  %v5845_v24 = vmul.f32 %v5843_v25, %v5843_v25  ;;  %v10118_v20 = vld [vmem:[%s12336_s6 + $0x530] sm:$0xff]  }
0x1b39   :  { %5851 = vadd.xlane.f32.xlu1 %v5850_v21  ;;  %v10119_v21 = vld [vmem:[%s12336_s6 + $0x5b0] sm:$0xff]  }
0x1b3a   :  { %v5847_v52 = vsel %vm151_vm2, %v5845_v24, 0.0  ;;  %v10120_v24 = vld [vmem:[%s12336_s6 + $0x568] sm:$0xff]  }
0x1b3b   :  { %5848 = vadd.xlane.f32.xlu0 %v5847_v52  ;;  %v10121_v52 = vld [vmem:[%s12336_s6 + $0x5e8] sm:$0xff]  }
0x1bc2   :  { %v5852_v60 = vpop.xlane.xlu1 %5851 }
0x1bc3   :  { %v5854_v44 = vmul.f32 0.03125, %v5852_v60 }
0x1bc4   :  { %v5849_v61 = vpop.xlane.xlu0 %5848 }
0x1bc5   :  { %v5856_v62 = vadd.f32 1e-05, %v5854_v44  ;;  %v5853_v63 = vmul.f32 0.03125, %v5849_v61 }
0x1bc7   :  { %10312 = vrsqrt.f32 %v5856_v62  ;;  %v5855_v9 = vadd.f32 1e-05, %v5853_v63 }
0x1bc9   :  { %10314 = vrsqrt.f32 %v5855_v9 }
0x1bd4   :  { %v10313_v3 = vpop.eup %10312 }
0x1bd5   :  { %v5860_v4 = vmul.f32 %v10313_v3, %v5844_v19  ;;  %v10115_v19 = vld [vmem:[%s12336_s6 + $0x5b8] sm:$0xff]  }
0x1bd6   :  { %v10315_v54 = vpop.eup %10314 }
0x1bd7   :  { %v5867_v14 = vmul.f32 %v8526_v8, %v5860_v4  ;;  %v5859_v6 = vmul.f32 %v10315_v54, %v5843_v25  ;;  %v10117_v25 = vld [vmem:[%s12336_s6 + $0x5f0] sm:$0xff]  }
0x1bd8   :  { %v8619_v4 = vld [vmem:[%s12337_s5 + $0x14] sm:$0xf] }
0x1bd9   :  { %v5866_v7 = vmul.f32 %v8526_v8, %v5859_v6  ;;  %v11719_v34 = vadd.f32 %v8527_v32, %v5867_v14  ;;  %v6131_v6 = vrot.slane %v8619_v4, %v10436_v17  ;;  %v6135_v1 = vrot.slane %v8619_v4, %v10929_v57 }
0x1bdb   :  { %v11721_v35 = vadd.f32 %v8527_v32, %v5866_v7  ;;  %v6139_v32 = vrot.slane %v8619_v4, %v10923_v55  ;;  %v6127_v7 = vrot.slane %v8619_v4, %v10433_v16  ;;  %v10152_v4 = vld [vmem:[%s12336_s6 + $0x468] sm:$0xff]  }
0x1bdd   :  { %v11725_v36 = vpack.c.bf16 %v11719_v34, %v11721_v35 }
0x1bdf   :  { %8545 = vmatmul.mubr.msk.bf16.vlgmr.msra.gmra.mxu1 %vm151_vm2, %v11725_v36  ;;  %8546 = vmatmul.mubr.msk.bf16.vlgmr.msra.gmra.mxu0 %vm151_vm2, %v11725_v36 }
0x1be0   :  { %6197 = vmatpush1.bf16.msra.mxu1 %v8624_v56  ;;  %6240 = vmatpush1.bf16.msra.mxu0 %v8626_v58  ;;  %v10143_v56 = vld [vmem:[%s12336_s6 + $0x580] sm:$0xff]   ;;  %v10144_v58 = vld [vmem:[%s12336_s6 + $0x478] sm:$0xff]  }
0x1be1   :  { %6198 = vmatprep.subr.bf16.mxu1 %v8621_v10  ;;  %6241 = vmatprep.subr.bf16.mxu0 %v8623_v2  ;;  %v5895_v10 = vrot.slane %v11857_v22, %v10436_v17  ;;  %v5903_v2 = vrot.slane %v11857_v22, %v10923_v55 }
0x1be2   :  { %6216 = vmatprep.mubr.bf16.mxu1 %v10347_v43  ;;  %6259 = vmatprep.mubr.bf16.mxu0 %v10347_v43 }
0x1be4   :  { %6199 = vmatpush1.bf16.msra.mxu1 %v8620_v11  ;;  %6242 = vmatpush1.bf16.msra.mxu0 %v8622_v12 }
0x1be5   :  { %9386 = vmatprep.subr.bf16.mxu1 %v10112_v15  ;;  %9408 = vmatprep.subr.bf16.mxu0 %v10113_v13 }
0x1be7   :  { %8628 = vmatmul.mubr.msk.bf16.vlgmr.msra.gmra.mxu1 %vm151_vm2, %v11725_v36  ;;  %8629 = vmatmul.mubr.msk.bf16.vlgmr.msra.gmra.mxu0 %vm151_vm2, %v11725_v36 }
0x1be8   :  { %9387 = vmatpush3.bf16.msra.mxu1 %v10114_v18  ;;  %9409 = vmatpush3.bf16.msra.mxu0 %v10115_v19 }
0x1be9   :  { %9388 = vmatprep.subr.bf16.mxu1 %v10116_v26  ;;  %9410 = vmatprep.subr.bf16.mxu0 %v10117_v25 }
0x1bec   :  { %9389 = vmatpush3.bf16.msra.mxu1 %v10118_v20  ;;  %9411 = vmatpush3.bf16.msra.mxu0 %v10119_v21 }
0x1bed   :  { %9390 = vmatprep.subr.bf16.mxu1 %v10120_v24  ;;  %9412 = vmatprep.subr.bf16.mxu0 %v10121_v52 }
0x1bf0   :  { %9391 = vmatpush3.bf16.msra.mxu1 %v10122_v29  ;;  %9413 = vmatpush3.bf16.msra.mxu0 %v10123_v5 }
0x1bf1   :  { %9392 = vmatprep.subr.bf16.mxu1 %v10124_v30  ;;  %9414 = vmatprep.subr.bf16.mxu0 %v10125_v51 }
0x1bf4   :  { %9393 = vmatpush3.bf16.msra.mxu1 %v10126_v31  ;;  %9415 = vmatpush3.bf16.msra.mxu0 %v10127_v23 }
0x1bf5   :  { %9394 = vmatprep.subr.bf16.mxu1 %v10128_v37  ;;  %9416 = vmatprep.subr.bf16.mxu0 %v10129_v47 }
0x1bf8   :  { %9395 = vmatpush3.bf16.msra.mxu1 %v10130_v48  ;;  %9417 = vmatpush3.bf16.msra.mxu0 %v10131_v39 }
0x1bf9   :  { %9396 = vmatprep.subr.bf16.mxu1 %v10132_v40  ;;  %9418 = vmatprep.subr.bf16.mxu0 %v10133_v28 }
0x1bfc   :  { %9397 = vmatpush3.bf16.msra.mxu1 %v10134_v27  ;;  %9419 = vmatpush3.bf16.msra.mxu0 %v10135_v41 }
0x1bfd   :  { %9398 = vmatprep.subr.bf16.mxu1 %v10136_v42  ;;  %9420 = vmatprep.subr.bf16.mxu0 %v10137_v45 }
0x1c00   :  { %9399 = vmatpush3.bf16.msra.mxu1 %v10138_v46  ;;  %9421 = vmatpush3.bf16.msra.mxu0 %v10139_v38  ;;  %v10146_v46 = vld [vmem:[%s12336_s6 + $0x438] sm:$0xff]  }
0x1c01   :  { %9400 = vmatprep.subr.bf16.mxu1 %v10140_v49  ;;  %9422 = vmatprep.subr.bf16.mxu0 %v10141_v50  ;;  %v10147_v38 = vld [vmem:[%s12336_s6 + $0x4b8] sm:$0xff]  }
0x1c04   :  { %9401 = vmatpush3.bf16.msra.mxu1 %v10142_v53  ;;  %9423 = vmatpush3.bf16.msra.mxu0 %v10143_v56 }
0x1c05   :  { %9430 = vmatprep.subr.bf16.mxu1 %v10144_v58  ;;  %9452 = vmatprep.subr.bf16.mxu0 %v10145_v59  ;;  %v10148_v58 = vld [vmem:[%s12336_s6 + $0x470] sm:$0xff]  }
0x1c06   :  { %v10149_v59 = vld [vmem:[%s12336_s6 + $0x4f0] sm:$0xff]  }
0x1c9f   :  { %v11839_v60 = vpop.f32.mrf.mxu1  ;;  %v11841_v44 = vpop.f32.mrf.mxu0 }
0x1ca1   :  { %v5987_v61 = vpop.f32.mrf.mxu1  ;;  %v6030_v62 = vpop.f32.mrf.mxu0 }
0x1ca2   :  { %v5988_v30 = vadd.f32 %v5987_v61, %v5895_v10  ;;  %v6031_v51 = vadd.f32 %v6030_v62, %v5903_v2 }
0x1ca3   :  { %v11843_v63 = vpop.f32.mrf.mxu1  ;;  %v11845_v9 = vpop.f32.mrf.mxu0 }
0x1ca4   :  { %v6038_v49 = vmax.f32 %v5988_v30, 0.0  ;;  %v6040_v50 = vmax.f32 %v6031_v51, 0.0  ;;  %v8762_v30 = vld [vmem:[%s12335_s4 + $0x1a0] sm:$0xff]  ;;  %v8765_v51 = vld [vmem:[%s12335_s4 + $0x1e8] sm:$0xff] }
0x1ca5   :  { %v5991_v3 = vpop.f32.mrf.mxu1  ;;  %v6034_v8 = vpop.f32.mrf.mxu0 }
0x1ca6   :  { %v5992_v26 = vadd.f32 %v5991_v3, %v5895_v10  ;;  %v6035_v25 = vadd.f32 %v6034_v8, %v5903_v2  ;;  %v10150_v3 = vld [vmem:[%s12336_s6 + $0x430] sm:$0xff]   ;;  %v10161_v10 = vld [vmem:[%s12336_s6 + $0x4d8] sm:$0xff]  }
0x1ca7   :  { %v6218_v54 = vpop.f32.mrf.mxu1  ;;  %v6261_v14 = vpop.f32.mrf.mxu0  ;;  %v10151_v8 = vld [vmem:[%s12336_s6 + $0x4b0] sm:$0xff]   ;;  %v10162_v2 = vld [vmem:[%s12336_s6 + $0x418] sm:$0xff]  }
0x1ca8   :  { %v6219_v20 = vadd.f32 %v6218_v54, %v6127_v7  ;;  %v6262_v21 = vadd.f32 %v6261_v14, %v6135_v1  ;;  %v6042_v40 = vmax.f32 %v5992_v26, 0.0  ;;  %v6044_v28 = vmax.f32 %v6035_v25, 0.0  ;;  %v10153_v54 = vld [vmem:[%s12336_s6 + $0x4e8] sm:$0xff]  }
0x1ca9   :  { %v6220_v33 = vpop.f32.mrf.mxu1  ;;  %v6263_v0 = vpop.f32.mrf.mxu0  ;;  %v10154_v14 = vld [vmem:[%s12336_s6 + $0x428] sm:$0xff]   ;;  %v5891_v25 = vrot.slane %v11857_v22, %v10433_v16 }
0x1caa   :  { %v6221_v15 = vadd.f32 %v6220_v33, %v6131_v6  ;;  %v6264_v13 = vadd.f32 %v6263_v0, %v6139_v32  ;;  %v6270_v27 = vmax.f32 %v6219_v20, 0.0  ;;  %v6272_v41 = vmax.f32 %v6262_v21, 0.0  ;;  %v10159_v33 = vld [vmem:[%s12336_s6 + $0x4a0] sm:$0xff]   ;;  %v10160_v0 = vld [vmem:[%s12336_s6 + $0x458] sm:$0xff]   ;;  %v10169_v26 = vld [vmem:[%s12336_s6 + $0x4c8] sm:$0xff]  }
0x1cab   :  { %v6222_v11 = vpop.f32.mrf.mxu1  ;;  %v6265_v12 = vpop.f32.mrf.mxu0  ;;  %v6046_v61 = vpack.c.bf16 %v6042_v40, %v6038_v49  ;;  %v6048_v62 = vpack.c.bf16 %v6044_v28, %v6040_v50  ;;  %v5899_v20 = vrot.slane %v11857_v22, %v10929_v57  ;;  %v10170_v21 = vld [vmem:[%s12336_s6 + $0x408] sm:$0xff]   ;;  %v10172_v22 = vld [vmem:[%s12336_s6 + $0x440] sm:$0xff]  }
0x1cac   :  { %v6223_v18 = vadd.f32 %v6222_v11, %v6127_v7  ;;  %v6266_v19 = vadd.f32 %v6265_v12, %v6135_v1  ;;  %v6271_v37 = vmax.f32 %v6221_v15, 0.0  ;;  %v6273_v47 = vmax.f32 %v6264_v13, 0.0  ;;  %v10157_v7 = vld [vmem:[%s12336_s6 + $0x4e0] sm:$0xff]   ;;  %v10163_v11 = vld [vmem:[%s12336_s6 + $0x498] sm:$0xff]   ;;  %v10164_v12 = vld [vmem:[%s12336_s6 + $0x450] sm:$0xff]  }
0x1cad   :  { %v6224_v24 = vpop.f32.mrf.mxu1  ;;  %v6267_v52 = vpop.f32.mrf.mxu0  ;;  %v10158_v1 = vld [vmem:[%s12336_s6 + $0x420] sm:$0xff]   ;;  %v10165_v15 = vld [vmem:[%s12336_s6 + $0x4d0] sm:$0xff]  }
0x1cae   :  { %v6225_v29 = vadd.f32 %v6224_v24, %v6131_v6  ;;  %v6268_v5 = vadd.f32 %v6267_v52, %v6139_v32  ;;  %v6274_v31 = vmax.f32 %v6223_v18, 0.0  ;;  %v6276_v23 = vmax.f32 %v6266_v19, 0.0  ;;  %v10155_v6 = vld [vmem:[%s12336_s6 + $0x4a8] sm:$0xff]   ;;  %v10156_v32 = vld [vmem:[%s12336_s6 + $0x460] sm:$0xff]   ;;  %v10166_v13 = vld [vmem:[%s12336_s6 + $0x410] sm:$0xff]  }
0x1caf   :  { %v10167_v18 = vld [vmem:[%s12336_s6 + $0x490] sm:$0xff]   ;;  %v10168_v19 = vld [vmem:[%s12336_s6 + $0x448] sm:$0xff]   ;;  %v5990_v52 = vadd.f32 %v11843_v63, %v5891_v25  ;;  %v8764_v63 = vld [vmem:[%s12335_s4 + $0x1e0] sm:$0xff] }
0x1cb0   :  { %v6275_v48 = vmax.f32 %v6225_v29, 0.0  ;;  %v6277_v39 = vmax.f32 %v6268_v5, 0.0  ;;  %v6278_v53 = vpack.c.bf16 %v6274_v31, %v6270_v27  ;;  %v6280_v56 = vpack.c.bf16 %v6276_v23, %v6272_v41  ;;  %v10171_v24 = vld [vmem:[%s12336_s6 + $0x488] sm:$0xff]   ;;  %v10173_v5 = vld [vmem:[%s12336_s6 + $0x4c0] sm:$0xff]  }
0x1cb1   :  { %v6033_v29 = vadd.f32 %v11845_v9, %v5899_v20  ;;  %v8763_v9 = vld [vmem:[%s12335_s4 + $0x1a8] sm:$0xff]  ;;  %v5986_v31 = vadd.f32 %v11839_v60, %v5891_v25  ;;  %v6029_v23 = vadd.f32 %v11841_v44, %v5899_v20  ;;  %v8772_v40 = vcombine.high %v8762_v30, %v8764_v63  ;;  %v8758_v60 = vld [vmem:[%s12335_s4 + $0x120] sm:$0xff]  ;;  %v10198_v25 = vld [vmem:[%s12336_s6 + $0x610] sm:$0xff]  }
0x1cb2   :  { %v6279_v42 = vpack.c.bf16 %v6275_v48, %v6271_v37  ;;  %v6281_v45 = vpack.c.bf16 %v6277_v39, %v6273_v47  ;;  %v10174_v37 = vld [vmem:[%s12336_s6 + $0x400] sm:$0xff]   ;;  %v6041_v48 = vmax.f32 %v5990_v52, 0.0  ;;  %v8774_v28 = vcombine.high %v8763_v9, %v8765_v51  ;;  %v8759_v27 = vld [vmem:[%s12335_s4 + $0x128] sm:$0xff]  ;;  %v10199_v20 = vld [vmem:[%s12336_s6 + $0x690] sm:$0xff]  }
0x1cb3   :  { %v10175_v47 = vld [vmem:[%s12336_s6 + $0x480] sm:$0xff]   ;;  %v6043_v39 = vmax.f32 %v6033_v29, 0.0  ;;  %v8761_v41 = vld [vmem:[%s12335_s4 + $0x168] sm:$0xff] }
0x1cb4   :  { %6570 = vmatprep.mubr.bf16.mxu1 %v6279_v42  ;;  %6611 = vmatprep.mubr.bf16.mxu0 %v6281_v45  ;;  %v8760_v44 = vld [vmem:[%s12335_s4 + $0x160] sm:$0xff]  ;;  %v6037_v42 = vmax.f32 %v5986_v31, 0.0  ;;  %v6039_v45 = vmax.f32 %v6029_v23, 0.0  ;;  %v10202_v52 = vld [vmem:[%s12336_s6 + $0x608] sm:$0xff]   ;;  %v12100_v31 = vld [vmem:[%s12335_s4 + $0x1b8] sm:$0xff] }
0x1cb5   :  { %6571 = vmatmul.mubr.bf16.vlgmr.msra.gmra.mxu1 %v6278_v53  ;;  %6612 = vmatmul.mubr.bf16.vlgmr.msra.gmra.mxu0 %v6280_v56  ;;  %v8768_v49 = vcombine.high %v8758_v60, %v8760_v44  ;;  %v8770_v56 = vcombine.high %v8759_v27, %v8761_v41  ;;  %v10203_v29 = vld [vmem:[%s12336_s6 + $0x688] sm:$0xff]  }
0x1cb6   :  { %9431 = vmatpush3.bf16.msra.mxu1 %v10146_v46  ;;  %9453 = vmatpush3.bf16.msra.mxu0 %v10147_v38  ;;  %v8771_v46 = vcombine.low %v8762_v30, %v8764_v63  ;;  %v8773_v38 = vcombine.low %v8763_v9, %v8765_v51  ;;  %v6045_v50 = vpack.c.bf16 %v6041_v48, %v6037_v42  ;;  %v10206_v30 = vld [vmem:[%s12336_s6 + $0x600] sm:$0xff]   ;;  %v12090_v9 = vld [vmem:[%s12335_s4 + $0x1b0] sm:$0xff] }
0x1cb7   :  { %6844 = vmatprep.mubr.bf16.mxu1 %v6046_v61  ;;  %6885 = vmatprep.mubr.bf16.mxu0 %v6048_v62  ;;  %v6047_v53 = vpack.c.bf16 %v6043_v39, %v6039_v45  ;;  %v10176_v61 = vld [vmem:[%s12336_s6 + $0x678] sm:$0xff]   ;;  %v10207_v63 = vld [vmem:[%s12336_s6 + $0x680] sm:$0xff]   ;;  %v12095_v51 = vld [vmem:[%s12335_s4 + $0x1f0] sm:$0xff] }
0x1cb8   :  { %9432 = vmatprep.subr.bf16.mxu1 %v10148_v58  ;;  %9454 = vmatprep.subr.bf16.mxu0 %v10149_v59  ;;  %v8767_v58 = vcombine.low %v8758_v60, %v8760_v44  ;;  %v8769_v59 = vcombine.low %v8759_v27, %v8761_v41  ;;  %v10177_v62 = vld [vmem:[%s12336_s6 + $0x6f8] sm:$0xff]   ;;  %v8887_v23 = vcombine.high %v12090_v9, %v12095_v51 }
0x1cba   :  { %9433 = vmatpush3.bf16.msra.mxu1 %v10150_v3  ;;  %9455 = vmatpush3.bf16.msra.mxu0 %v10151_v8  ;;  %v10178_v3 = vld [vmem:[%s12336_s6 + $0x638] sm:$0xff]  }
0x1cbb   :  { %9434 = vmatprep.subr.bf16.mxu1 %v10152_v4  ;;  %9456 = vmatprep.subr.bf16.mxu0 %v10153_v54  ;;  %v10179_v8 = vld [vmem:[%s12336_s6 + $0x6b8] sm:$0xff]   ;;  %v10180_v4 = vld [vmem:[%s12336_s6 + $0x670] sm:$0xff]  }
0x1cbc   :  { %v10181_v54 = vld [vmem:[%s12336_s6 + $0x6f0] sm:$0xff]  }
0x1cbe   :  { %9435 = vmatpush3.bf16.msra.mxu1 %v10154_v14  ;;  %9457 = vmatpush3.bf16.msra.mxu0 %v10155_v6  ;;  %v10182_v14 = vld [vmem:[%s12336_s6 + $0x630] sm:$0xff]  }
0x1cbf   :  { %9436 = vmatprep.subr.bf16.mxu1 %v10156_v32  ;;  %9458 = vmatprep.subr.bf16.mxu0 %v10157_v7  ;;  %v10183_v6 = vld [vmem:[%s12336_s6 + $0x6b0] sm:$0xff]   ;;  %v10184_v32 = vld [vmem:[%s12336_s6 + $0x668] sm:$0xff]  }
0x1cc0   :  { %v10185_v7 = vld [vmem:[%s12336_s6 + $0x6e8] sm:$0xff]  }
0x1cc2   :  { %9437 = vmatpush3.bf16.msra.mxu1 %v10158_v1  ;;  %9459 = vmatpush3.bf16.msra.mxu0 %v10159_v33  ;;  %v10186_v1 = vld [vmem:[%s12336_s6 + $0x628] sm:$0xff]  }
0x1cc3   :  { %9438 = vmatprep.subr.bf16.mxu1 %v10160_v0  ;;  %9460 = vmatprep.subr.bf16.mxu0 %v10161_v10  ;;  %v10187_v33 = vld [vmem:[%s12336_s6 + $0x6a8] sm:$0xff]   ;;  %v10188_v0 = vld [vmem:[%s12336_s6 + $0x660] sm:$0xff]  }
0x1cc4   :  { %v10189_v10 = vld [vmem:[%s12336_s6 + $0x6e0] sm:$0xff]  }
0x1cc6   :  { %9439 = vmatpush3.bf16.msra.mxu1 %v10162_v2  ;;  %9461 = vmatpush3.bf16.msra.mxu0 %v10163_v11  ;;  %v10190_v2 = vld [vmem:[%s12336_s6 + $0x620] sm:$0xff]  }
0x1cc7   :  { %9440 = vmatprep.subr.bf16.mxu1 %v10164_v12  ;;  %9462 = vmatprep.subr.bf16.mxu0 %v10165_v15  ;;  %v10191_v11 = vld [vmem:[%s12336_s6 + $0x6a0] sm:$0xff]   ;;  %v10192_v12 = vld [vmem:[%s12336_s6 + $0x658] sm:$0xff]  }
0x1cc8   :  { %v10193_v15 = vld [vmem:[%s12336_s6 + $0x6d8] sm:$0xff]  }
0x1cca   :  { %9441 = vmatpush3.bf16.msra.mxu1 %v10166_v13  ;;  %9463 = vmatpush3.bf16.msra.mxu0 %v10167_v18  ;;  %v10194_v13 = vld [vmem:[%s12336_s6 + $0x618] sm:$0xff]  }
0x1ccb   :  { %9442 = vmatprep.subr.bf16.mxu1 %v10168_v19  ;;  %9464 = vmatprep.subr.bf16.mxu0 %v10169_v26  ;;  %v10195_v18 = vld [vmem:[%s12336_s6 + $0x698] sm:$0xff]   ;;  %v10196_v19 = vld [vmem:[%s12336_s6 + $0x650] sm:$0xff]  }
0x1ccc   :  { %v10197_v26 = vld [vmem:[%s12336_s6 + $0x6d0] sm:$0xff]  }
0x1cce   :  { %9443 = vmatpush3.bf16.msra.mxu1 %v10170_v21  ;;  %9465 = vmatpush3.bf16.msra.mxu0 %v10171_v24  ;;  %v10200_v21 = vld [vmem:[%s12336_s6 + $0x648] sm:$0xff]  }
0x1ccf   :  { %9444 = vmatprep.subr.bf16.mxu1 %v10172_v22  ;;  %9466 = vmatprep.subr.bf16.mxu0 %v10173_v5  ;;  %v10201_v24 = vld [vmem:[%s12336_s6 + $0x6c8] sm:$0xff]   ;;  %v10204_v22 = vld [vmem:[%s12336_s6 + $0x640] sm:$0xff]  }
0x1cd0   :  { %v10205_v5 = vld [vmem:[%s12336_s6 + $0x6c0] sm:$0xff]  }
0x1cd2   :  { %9445 = vmatpush3.bf16.msra.mxu1 %v10174_v37  ;;  %9467 = vmatpush3.bf16.msra.mxu0 %v10175_v47  ;;  %v12107_v37 = vld [vmem:[%s12335_s4 + $0x1f8] sm:$0xff]  ;;  %v8886_v47 = vcombine.low %v12090_v9, %v12095_v51 }
0x1cd3   :  { %6976 = vmatprep.subr.bf16.mxu1 %v8772_v40  ;;  %7019 = vmatprep.subr.bf16.mxu0 %v8774_v28  ;;  %v8888_v48 = vcombine.low %v12100_v31, %v12107_v37  ;;  %v8889_v39 = vcombine.high %v12100_v31, %v12107_v37  ;;  %v10210_v9 = vld [vmem:[%s12336_s6 + $0x738] sm:$0xff]   ;;  %v10212_v31 = vld [vmem:[%s12336_s6 + $0x770] sm:$0xff]  }
0x1cd4   :  { %v10211_v51 = vld [vmem:[%s12336_s6 + $0x7b8] sm:$0xff]   ;;  %v10214_v37 = vld [vmem:[%s12336_s6 + $0x730] sm:$0xff]  }
0x1cd5   :  { %6845 = vmatmul.mubr.bf16.vlgmr.msra.gmra.mxu1 %v6045_v50  ;;  %6886 = vmatmul.mubr.bf16.vlgmr.msra.gmra.mxu0 %v6047_v53 }
0x1cd6   :  { %6977 = vmatpush1.bf16.msra.mxu1 %v8771_v46  ;;  %7020 = vmatpush1.bf16.msra.mxu0 %v8773_v38 }
0x1cd7   :  { %6978 = vmatprep.subr.bf16.mxu1 %v8768_v49  ;;  %7021 = vmatprep.subr.bf16.mxu0 %v8770_v56 }
0x1cd8   :  { %6996 = vmatprep.mubr.bf16.mxu1 %v10347_v43  ;;  %7039 = vmatprep.mubr.bf16.mxu0 %v10347_v43 }
0x1cda   :  { %6979 = vmatpush1.bf16.msra.mxu1 %v8767_v58  ;;  %7022 = vmatpush1.bf16.msra.mxu0 %v8769_v59 }
0x1cdb   :  { %9474 = vmatprep.subr.bf16.mxu1 %v10176_v61  ;;  %9496 = vmatprep.subr.bf16.mxu0 %v10177_v62 }
0x1cdd   :  { %8775 = vmatmul.mubr.msk.bf16.vlgmr.msra.gmra.mxu1 %vm151_vm2, %v11725_v36  ;;  %8776 = vmatmul.mubr.msk.bf16.vlgmr.msra.gmra.mxu0 %vm151_vm2, %v11725_v36 }
0x1cde   :  { %9475 = vmatpush3.bf16.msra.mxu1 %v10178_v3  ;;  %9497 = vmatpush3.bf16.msra.mxu0 %v10179_v8 }
0x1cdf   :  { %9476 = vmatprep.subr.bf16.mxu1 %v10180_v4  ;;  %9498 = vmatprep.subr.bf16.mxu0 %v10181_v54 }
0x1ce2   :  { %9477 = vmatpush3.bf16.msra.mxu1 %v10182_v14  ;;  %9499 = vmatpush3.bf16.msra.mxu0 %v10183_v6 }
0x1ce3   :  { %9478 = vmatprep.subr.bf16.mxu1 %v10184_v32  ;;  %9500 = vmatprep.subr.bf16.mxu0 %v10185_v7 }
0x1ce6   :  { %9479 = vmatpush3.bf16.msra.mxu1 %v10186_v1  ;;  %9501 = vmatpush3.bf16.msra.mxu0 %v10187_v33 }
0x1ce7   :  { %9480 = vmatprep.subr.bf16.mxu1 %v10188_v0  ;;  %9502 = vmatprep.subr.bf16.mxu0 %v10189_v10  ;;  %v8766_v0 = vld [vmem:[%s12337_s5 + $0x18] sm:$0xf] }
0x1cea   :  { %9481 = vmatpush3.bf16.msra.mxu1 %v10190_v2  ;;  %9503 = vmatpush3.bf16.msra.mxu0 %v10191_v11 }
0x1ceb   :  { %9482 = vmatprep.subr.bf16.mxu1 %v10192_v12  ;;  %9504 = vmatprep.subr.bf16.mxu0 %v10193_v15  ;;  %v6911_v12 = vrot.slane %v8766_v0, %v10436_v17  ;;  %v6919_v15 = vrot.slane %v8766_v0, %v10923_v55 }
0x1cee   :  { %9483 = vmatpush3.bf16.msra.mxu1 %v10194_v13  ;;  %9505 = vmatpush3.bf16.msra.mxu0 %v10195_v18  ;;  %v6907_v13 = vrot.slane %v8766_v0, %v10433_v16  ;;  %v6915_v18 = vrot.slane %v8766_v0, %v10929_v57  ;;  %v10222_v0 = vld [vmem:[%s12336_s6 + $0x720] sm:$0xff]  }
0x1cef   :  { %9484 = vmatprep.subr.bf16.mxu1 %v10196_v19  ;;  %9506 = vmatprep.subr.bf16.mxu0 %v10197_v26 }
0x1cf2   :  { %9485 = vmatpush3.bf16.msra.mxu1 %v10198_v25  ;;  %9507 = vmatpush3.bf16.msra.mxu0 %v10199_v20 }
0x1cf3   :  { %9486 = vmatprep.subr.bf16.mxu1 %v10200_v21  ;;  %9508 = vmatprep.subr.bf16.mxu0 %v10201_v24 }
0x1cf6   :  { %9487 = vmatpush3.bf16.msra.mxu1 %v10202_v52  ;;  %9509 = vmatpush3.bf16.msra.mxu0 %v10203_v29 }
0x1cf7   :  { %9488 = vmatprep.subr.bf16.mxu1 %v10204_v22  ;;  %9510 = vmatprep.subr.bf16.mxu0 %v10205_v5 }
0x1cfa   :  { %9489 = vmatpush3.bf16.msra.mxu1 %v10206_v30  ;;  %9511 = vmatpush3.bf16.msra.mxu0 %v10207_v63 }
0x1cfb   :  { %7484 = vmatprep.subr.bf16.mxu1 %v8887_v23  ;;  %7527 = vmatprep.subr.bf16.mxu0 %v8889_v39 }
0x1d75   :  { %v9402_v40 = vpop.f32.mrf.mxu1  ;;  %v9424_v28 = vpop.f32.mrf.mxu0 }
0x1d77   :  { %v9403_v60 = vpop.f32.mrf.mxu1  ;;  %v9425_v44 = vpop.f32.mrf.mxu0 }
0x1d78   :  { %v9404_v27 = vadd.f32 %v9403_v60, %v9402_v40  ;;  %v9426_v41 = vadd.f32 %v9425_v44, %v9424_v28  ;;  %v8873_v44 = vld [vmem:[%s12335_s4 + $0x130] sm:$0xff] }
0x1d79   :  { %v9405_v42 = vpop.f32.mrf.mxu1  ;;  %v9427_v45 = vpop.f32.mrf.mxu0 }
0x1d7a   :  { %v6614_v46 = vadd.f32 %v9426_v41, %v9404_v27  ;;  %v8875_v27 = vld [vmem:[%s12335_s4 + $0x170] sm:$0xff] }
0x1d7b   :  { %v9406_v38 = vpop.f32.mrf.mxu1  ;;  %v9428_v49 = vpop.f32.mrf.mxu0 }
0x1d7c   :  { %v9407_v50 = vadd.f32 %v9406_v38, %v9405_v42  ;;  %v9429_v53 = vadd.f32 %v9428_v49, %v9427_v45  ;;  %v8874_v38 = vld [vmem:[%s12335_s4 + $0x138] sm:$0xff] }
0x1d7d   :  { %v8876_v49 = vld [vmem:[%s12335_s4 + $0x178] sm:$0xff] }
0x1d7e   :  { %v6617_v56 = vadd.f32 %v9429_v53, %v9407_v50 }
0x1d95   :  { %v9446_v58 = vpop.f32.mrf.mxu1  ;;  %v9468_v59 = vpop.f32.mrf.mxu0 }
0x1d97   :  { %v9447_v61 = vpop.f32.mrf.mxu1  ;;  %v9469_v62 = vpop.f32.mrf.mxu0 }
0x1d98   :  { %v9448_v3 = vadd.f32 %v9447_v61, %v9446_v58  ;;  %v9470_v8 = vadd.f32 %v9469_v62, %v9468_v59  ;;  %v8883_v62 = vcombine.high %v8873_v44, %v8875_v27 }
0x1d99   :  { %v9449_v4 = vpop.f32.mrf.mxu1  ;;  %v9471_v54 = vpop.f32.mrf.mxu0 }
0x1d9a   :  { %v6847_v14 = vadd.f32 %v9448_v3, %v6614_v46  ;;  %v8885_v3 = vcombine.high %v8874_v38, %v8876_v49 }
0x1d9b   :  { %v9450_v6 = vpop.f32.mrf.mxu1  ;;  %v9472_v32 = vpop.f32.mrf.mxu0 }
0x1d9c   :  { %v12115_v7 = vadd.f32 %v9470_v8, %v6847_v14  ;;  %v9451_v1 = vadd.f32 %v9450_v6, %v9449_v4  ;;  %v9473_v33 = vadd.f32 %v9472_v32, %v9471_v54  ;;  %v8882_v8 = vcombine.low %v8873_v44, %v8875_v27  ;;  %v10208_v54 = vld [vmem:[%s12336_s6 + $0x778] sm:$0xff]   ;;  %v10218_v6 = vld [vmem:[%s12336_s6 + $0x728] sm:$0xff]  }
0x1d9d   :  { %v6998_v10 = vpop.f32.mrf.mxu1  ;;  %v7041_v2 = vpop.f32.mrf.mxu0  ;;  %v8884_v4 = vcombine.low %v8874_v38, %v8876_v49  ;;  %v10209_v14 = vld [vmem:[%s12336_s6 + $0x7f8] sm:$0xff]   ;;  %v10219_v32 = vld [vmem:[%s12336_s6 + $0x7a8] sm:$0xff]  }
0x1d9e   :  { %v6850_v11 = vadd.f32 %v9451_v1, %v6617_v56  ;;  %v6999_v5 = vadd.f32 %v6998_v10, %v6907_v13  ;;  %v7042_v30 = vadd.f32 %v7041_v2, %v6915_v18  ;;  %v10220_v1 = vld [vmem:[%s12336_s6 + $0x760] sm:$0xff]   ;;  %v10224_v2 = vld [vmem:[%s12336_s6 + $0x758] sm:$0xff]  }
0x1d9f   :  { %v7000_v19 = vpop.f32.mrf.mxu1  ;;  %v7043_v26 = vpop.f32.mrf.mxu0  ;;  %v10223_v10 = vld [vmem:[%s12336_s6 + $0x7a0] sm:$0xff]  }
0x1da0   :  { %v12124_v25 = vadd.f32 %v9473_v33, %v6850_v11  ;;  %v7001_v24 = vadd.f32 %v7000_v19, %v6911_v12  ;;  %v7044_v52 = vadd.f32 %v7043_v26, %v6919_v15  ;;  %v7050_v50 = vmax.f32 %v6999_v5, 0.0  ;;  %v10221_v33 = vld [vmem:[%s12336_s6 + $0x7e0] sm:$0xff]   ;;  %v10225_v11 = vld [vmem:[%s12336_s6 + $0x7d8] sm:$0xff]   ;;  %v10230_v19 = vld [vmem:[%s12336_s6 + $0x710] sm:$0xff]  }
0x1da1   :  { %v7002_v20 = vpop.f32.mrf.mxu1  ;;  %v7045_v21 = vpop.f32.mrf.mxu0  ;;  %v7052_v53 = vmax.f32 %v7042_v30, 0.0  ;;  %v10231_v26 = vld [vmem:[%s12336_s6 + $0x790] sm:$0xff]   ;;  %v10238_v5 = vld [vmem:[%s12336_s6 + $0x700] sm:$0xff]  }
0x1da2   :  { %v7003_v29 = vadd.f32 %v7002_v20, %v6907_v13  ;;  %v7046_v22 = vadd.f32 %v7045_v21, %v6915_v18  ;;  %v7051_v41 = vmax.f32 %v7001_v24, 0.0  ;;  %v7053_v42 = vmax.f32 %v7044_v52, 0.0  ;;  %v10228_v13 = vld [vmem:[%s12336_s6 + $0x750] sm:$0xff]   ;;  %v10232_v20 = vld [vmem:[%s12336_s6 + $0x748] sm:$0xff]   ;;  %v10239_v30 = vld [vmem:[%s12336_s6 + $0x780] sm:$0xff]  }
0x1da3   :  { %v7004_v63 = vpop.f32.mrf.mxu1  ;;  %v7047_v23 = vpop.f32.mrf.mxu0  ;;  %v10229_v18 = vld [vmem:[%s12336_s6 + $0x7d0] sm:$0xff]   ;;  %v10233_v21 = vld [vmem:[%s12336_s6 + $0x7c8] sm:$0xff]  }
0x1da4   :  { %v7005_v39 = vadd.f32 %v7004_v63, %v6911_v12  ;;  %v7048_v40 = vadd.f32 %v7047_v23, %v6919_v15  ;;  %v7054_v28 = vmax.f32 %v7003_v29, 0.0  ;;  %v7056_v60 = vmax.f32 %v7046_v22, 0.0  ;;  %v10226_v12 = vld [vmem:[%s12336_s6 + $0x718] sm:$0xff]   ;;  %v10234_v24 = vld [vmem:[%s12336_s6 + $0x708] sm:$0xff]   ;;  %v10236_v29 = vld [vmem:[%s12336_s6 + $0x740] sm:$0xff]  }
0x1da5   :  { %v10227_v15 = vld [vmem:[%s12336_s6 + $0x798] sm:$0xff]   ;;  %v10235_v52 = vld [vmem:[%s12336_s6 + $0x788] sm:$0xff]   ;;  %v10237_v22 = vld [vmem:[%s12336_s6 + $0x7c0] sm:$0xff]  }
0x1da6   :  { %v7055_v45 = vmax.f32 %v7005_v39, 0.0  ;;  %v7057_v46 = vmax.f32 %v7048_v40, 0.0  ;;  %v7058_v59 = vpack.c.bf16 %v7054_v28, %v7050_v50  ;;  %v7060_v61 = vpack.c.bf16 %v7056_v60, %v7052_v53  ;;  %v8881_v50 = vld [vmem:[%s12337_s5 + $0x1c] sm:$0xf] }
0x1da8   :  { %v7059_v56 = vpack.c.bf16 %v7055_v45, %v7051_v41  ;;  %v7061_v58 = vpack.c.bf16 %v7057_v46, %v7053_v42 }
0x1daa   :  { %7350 = vmatprep.mubr.bf16.mxu1 %v7059_v56  ;;  %7391 = vmatprep.mubr.bf16.mxu0 %v7061_v58 }
0x1dab   :  { %7351 = vmatmul.mubr.bf16.vlgmr.msra.gmra.mxu1 %v7058_v59  ;;  %7392 = vmatmul.mubr.bf16.vlgmr.msra.gmra.mxu0 %v7060_v61  ;;  %v7419_v59 = vrot.slane %v8881_v50, %v10436_v17  ;;  %v7427_v61 = vrot.slane %v8881_v50, %v10923_v55 }
0x1dac   :  { %7485 = vmatpush1.bf16.msra.mxu1 %v8886_v47  ;;  %7528 = vmatpush1.bf16.msra.mxu0 %v8888_v48  ;;  %v10215_v47 = vld [vmem:[%s12336_s6 + $0x7b0] sm:$0xff]   ;;  %v10216_v48 = vld [vmem:[%s12336_s6 + $0x768] sm:$0xff]  }
0x1dad   :  { %7486 = vmatprep.subr.bf16.mxu1 %v8883_v62  ;;  %7529 = vmatprep.subr.bf16.mxu0 %v8885_v3  ;;  %v7415_v62 = vrot.slane %v8881_v50, %v10433_v16  ;;  %v7423_v3 = vrot.slane %v8881_v50, %v10929_v57 }
0x1dae   :  { %7504 = vmatprep.mubr.bf16.mxu1 %v10347_v43  ;;  %7547 = vmatprep.mubr.bf16.mxu0 %v10347_v43  ;;  %v10213_v43 = vld [vmem:[%s12336_s6 + $0x7f0] sm:$0xff]  }
0x1db0   :  { %7487 = vmatpush1.bf16.msra.mxu1 %v8882_v8  ;;  %7530 = vmatpush1.bf16.msra.mxu0 %v8884_v4 }
0x1db1   :  { %9518 = vmatprep.subr.bf16.mxu1 %v10208_v54  ;;  %9540 = vmatprep.subr.bf16.mxu0 %v10209_v14 }
0x1db3   :  { %8890 = vmatmul.mubr.msk.bf16.vlgmr.msra.gmra.mxu1 %vm151_vm2, %v11725_v36  ;;  %8891 = vmatmul.mubr.msk.bf16.vlgmr.msra.gmra.mxu0 %vm151_vm2, %v11725_v36  ;;  %v10217_v36 = vld [vmem:[%s12336_s6 + $0x7e8] sm:$0xff]  }
0x1db4   :  { %9519 = vmatpush3.bf16.msra.mxu1 %v10210_v9  ;;  %9541 = vmatpush3.bf16.msra.mxu0 %v10211_v51 }
0x1db5   :  { %9520 = vmatprep.subr.bf16.mxu1 %v10212_v31  ;;  %9542 = vmatprep.subr.bf16.mxu0 %v10213_v43 }
0x1db8   :  { %9521 = vmatpush3.bf16.msra.mxu1 %v10214_v37  ;;  %9543 = vmatpush3.bf16.msra.mxu0 %v10215_v47 }
0x1db9   :  { %9522 = vmatprep.subr.bf16.mxu1 %v10216_v48  ;;  %9544 = vmatprep.subr.bf16.mxu0 %v10217_v36 }
0x1dbc   :  { %9523 = vmatpush3.bf16.msra.mxu1 %v10218_v6  ;;  %9545 = vmatpush3.bf16.msra.mxu0 %v10219_v32 }
0x1dbd   :  { %9524 = vmatprep.subr.bf16.mxu1 %v10220_v1  ;;  %9546 = vmatprep.subr.bf16.mxu0 %v10221_v33 }
0x1dc0   :  { %9525 = vmatpush3.bf16.msra.mxu1 %v10222_v0  ;;  %9547 = vmatpush3.bf16.msra.mxu0 %v10223_v10 }
0x1dc1   :  { %9526 = vmatprep.subr.bf16.mxu1 %v10224_v2  ;;  %9548 = vmatprep.subr.bf16.mxu0 %v10225_v11 }
0x1dc4   :  { %9527 = vmatpush3.bf16.msra.mxu1 %v10226_v12  ;;  %9549 = vmatpush3.bf16.msra.mxu0 %v10227_v15 }
0x1dc5   :  { %9528 = vmatprep.subr.bf16.mxu1 %v10228_v13  ;;  %9550 = vmatprep.subr.bf16.mxu0 %v10229_v18 }
0x1dc8   :  { %9529 = vmatpush3.bf16.msra.mxu1 %v10230_v19  ;;  %9551 = vmatpush3.bf16.msra.mxu0 %v10231_v26 }
0x1dc9   :  { %9530 = vmatprep.subr.bf16.mxu1 %v10232_v20  ;;  %9552 = vmatprep.subr.bf16.mxu0 %v10233_v21 }
0x1dcc   :  { %9531 = vmatpush3.bf16.msra.mxu1 %v10234_v24  ;;  %9553 = vmatpush3.bf16.msra.mxu0 %v10235_v52 }
0x1dcd   :  { %9532 = vmatprep.subr.bf16.mxu1 %v10236_v29  ;;  %9554 = vmatprep.subr.bf16.mxu0 %v10237_v22 }
0x1dd0   :  { %9533 = vmatpush3.bf16.msra.mxu1 %v10238_v5  ;;  %9555 = vmatpush3.bf16.msra.mxu0 %v10239_v30  ;;  %v8988_v5 = vld [vmem:[%s12332_s3 + $0x134] ss:$0 sm:$0xff] }
0x1e6b   :  { %v9490_v63 = vpop.f32.mrf.mxu1  ;;  %v9512_v23 = vpop.f32.mrf.mxu0 }
0x1e6d   :  { %v9491_v39 = vpop.f32.mrf.mxu1  ;;  %v9513_v40 = vpop.f32.mrf.mxu0 }
0x1e6e   :  { %v9492_v28 = vadd.f32 %v9491_v39, %v9490_v63  ;;  %v9514_v60 = vadd.f32 %v9513_v40, %v9512_v23 }
0x1e6f   :  { %v9493_v44 = vpop.f32.mrf.mxu1  ;;  %v9515_v27 = vpop.f32.mrf.mxu0 }
0x1e70   :  { %v7394_v41 = vadd.f32 %v9514_v60, %v9492_v28 }
0x1e71   :  { %v9494_v42 = vpop.f32.mrf.mxu1  ;;  %v9516_v45 = vpop.f32.mrf.mxu0 }
0x1e72   :  { %v7400_v46 = vadd.f32 %v7394_v41, %v12115_v7  ;;  %v9495_v38 = vadd.f32 %v9494_v42, %v9493_v44  ;;  %v9517_v49 = vadd.f32 %v9516_v45, %v9515_v27 }
0x1e73   :  { %v7506_v53 = vpop.f32.mrf.mxu1  ;;  %v7549_v56 = vpop.f32.mrf.mxu0 }
0x1e74   :  { %v7397_v58 = vadd.f32 %v9517_v49, %v9495_v38  ;;  %v7507_v37 = vadd.f32 %v7506_v53, %v7415_v62  ;;  %v7550_v47 = vadd.f32 %v7549_v56, %v7423_v3 }
0x1e75   :  { %v7508_v8 = vpop.f32.mrf.mxu1  ;;  %v7551_v4 = vpop.f32.mrf.mxu0 }
0x1e76   :  { %v7401_v7 = vadd.f32 %v7397_v58, %v12124_v25  ;;  %v7509_v9 = vadd.f32 %v7508_v8, %v7419_v59  ;;  %v7552_v51 = vadd.f32 %v7551_v4, %v7427_v61  ;;  %v7558_v0 = vmax.f32 %v7507_v37, 0.0  ;;  %v7960_v8 = vld [vmem:[%s12334_s2 + $0x208] sm:$0xff] }
0x1e77   :  { %v7510_v54 = vpop.f32.mrf.mxu1  ;;  %v7553_v14 = vpop.f32.mrf.mxu0  ;;  %v7560_v25 = vmax.f32 %v7550_v47, 0.0  ;;  %v7965_v4 = vld [vmem:[%s12334_s2 + $0x228] sm:$0xff] }
0x1e78   :  { %v7511_v31 = vadd.f32 %v7510_v54, %v7415_v62  ;;  %v7554_v43 = vadd.f32 %v7553_v14, %v7423_v3  ;;  %v7559_v32 = vmax.f32 %v7509_v9, 0.0  ;;  %v7561_v57 = vmax.f32 %v7552_v51, 0.0  ;;  %v7961_v62 = vld [vmem:[%s12334_s2 + $0x210] sm:$0xff]  ;;  %v7964_v54 = vld [vmem:[%s12334_s2 + $0x220] sm:$0xff] }
0x1e79   :  { %v7512_v48 = vpop.f32.mrf.mxu1  ;;  %v7555_v17 = vpop.f32.mrf.mxu0  ;;  %v7966_v3 = vld [vmem:[%s12334_s2 + $0x230] sm:$0xff] }
0x1e7a   :  { %v7513_v36 = vadd.f32 %v7512_v48, %v7419_v59  ;;  %v7556_v55 = vadd.f32 %v7555_v17, %v7427_v61  ;;  %v7562_v6 = vmax.f32 %v7511_v31, 0.0  ;;  %v7564_v16 = vmax.f32 %v7554_v43, 0.0  ;;  %v7967_v61 = vld [vmem:[%s12334_s2 + $0x238] sm:$0xff]  ;;  %v8989_v48 = vld [vmem:[%s12332_s3 + $0x132] ss:$0 sm:$0xff] }
0x1e7b   :  { %9968 = vmatprep.subr.mxu0 %v7967_v61 }
0x1e7c   :  { %v7563_v1 = vmax.f32 %v7513_v36, 0.0  ;;  %v7565_v33 = vmax.f32 %v7556_v55, 0.0  ;;  %v7566_v11 = vpack.c.bf16 %v7562_v6, %v7558_v0  ;;  %v7568_v12 = vpack.c.bf16 %v7564_v16, %v7560_v25  ;;  %v8990_v36 = vld [vmem:[%s12332_s3 + $0x133] ss:$0 sm:$0xff]  ;;  %v8994_v0 = vld [vmem:[%s12334_s2 + $0x251] ss:$0 sm:$0xff] }
0x1e7e   :  { %v7567_v10 = vpack.c.bf16 %v7563_v1, %v7559_v32  ;;  %v7569_v2 = vpack.c.bf16 %v7565_v33, %v7561_v57  ;;  %v8991_v33 = vld [vmem:[%s12334_s2 + $0x250] ss:$0 sm:$0xff] }
0x1e80   :  { %7858 = vmatprep.mubr.bf16.mxu1 %v7567_v10  ;;  %7899 = vmatprep.mubr.bf16.mxu0 %v7569_v2 }
0x1e81   :  { %7859 = vmatmul.mubr.bf16.vlgmr.msra.gmra.mxu1 %v7566_v11  ;;  %7900 = vmatmul.mubr.bf16.vlgmr.msra.gmra.mxu0 %v7568_v12 }
0x1e82   :  { %9969 = vmatpush3.msra.mxu0 %v7967_v61 }
0x1e83   :  { %9970 = vmatprep.subr.mxu0 %v7966_v3 }
0x1e84   :  { %9971 = vmatpush3.msra.mxu0 %v7966_v3 }
0x1e85   :  { %9972 = vmatprep.subr.mxu0 %v7965_v4 }
0x1e86   :  { %9973 = vmatpush3.msra.mxu0 %v7965_v4 }
0x1e87   :  { %9974 = vmatprep.subr.mxu0 %v7964_v54 }
0x1e88   :  { %9975 = vmatpush3.msra.mxu0 %v7964_v54 }
0x1f41   :  { %v9534_v15 = vpop.f32.mrf.mxu1  ;;  %v9556_v13 = vpop.f32.mrf.mxu0 }
0x1f43   :  { %v9535_v18 = vpop.f32.mrf.mxu1  ;;  %v9557_v19 = vpop.f32.mrf.mxu0 }
0x1f44   :  { %v9536_v26 = vadd.f32 %v9535_v18, %v9534_v15  ;;  %v9558_v20 = vadd.f32 %v9557_v19, %v9556_v13 }
0x1f45   :  { %v9537_v21 = vpop.f32.mrf.mxu1  ;;  %v9559_v24 = vpop.f32.mrf.mxu0 }
0x1f46   :  { %v7902_v52 = vadd.f32 %v9558_v20, %v9536_v26 }
0x1f47   :  { %v9538_v29 = vpop.f32.mrf.mxu1  ;;  %v9560_v22 = vpop.f32.mrf.mxu0 }
0x1f48   :  { %v7908_v30 = vadd.f32 %v7902_v52, %v7400_v46  ;;  %v9539_v63 = vadd.f32 %v9538_v29, %v9537_v21  ;;  %v9561_v23 = vadd.f32 %v9560_v22, %v9559_v24 }
0x1f4a   :  { %v7905_v39 = vadd.f32 %v9561_v23, %v9539_v63  ;;  %v7915_v40 = vadd.f32 %v8988_v5, %v7908_v30 }
0x1f4c   :  { %v7909_v28 = vadd.f32 %v7905_v39, %v7401_v7  ;;  %v7917_v60 = vadd.f32 %v7915_v40, %v11721_v35  ;;  %v7959_v7 = vld [vmem:[%s12334_s2 + $0x200] sm:$0xff]  ;;  %v8146_v40 = vld [vmem:[%s12339_s1 + $0x8] sm:$0xff] }
0x1f4d   :  { %v8154_v3 = vmul.f32 -0.5, %v8146_v40 }
0x1f4e   :  { %v7919_v44 = vsel %vm151_vm2, %v7917_v60, 0.0  ;;  %v7916_v27 = vadd.f32 %v8988_v5, %v7909_v28 }
0x1f4f   :  { %7920 = vadd.xlane.f32.xlu0 %v7919_v44  ;;  %v8145_v44 = vld [vmem:[%s12339_s1] sm:$0xff]  ;;  %s10348_s1 = smov 8  }
0x1f50   :  { %v7918_v41 = vadd.f32 %v7916_v27, %v11719_v34  ;;  %v7962_v34 = vld [vmem:[%s12334_s2 + $0x218] sm:$0xff]  ;;  %v8153_v54 = vmul.f32 -0.5, %v8145_v44 }
0x1f51   :  { %9957 = vmatprep.subr.mxu1 %v7962_v34 }
0x1f52   :  { %v7922_v42 = vsel %vm151_vm2, %v7918_v41, 0.0  ;;  %9958 = vmatpush3.msra.mxu1 %v7962_v34 }
0x1f53   :  { %7923 = vadd.xlane.f32.xlu1 %v7922_v42  ;;  %9959 = vmatprep.subr.mxu1 %v7961_v62 }
0x1f54   :  { %9960 = vmatpush3.msra.mxu1 %v7961_v62 }
0x1f55   :  { %9961 = vmatprep.subr.mxu1 %v7960_v8 }
0x1f56   :  { %9962 = vmatpush3.msra.mxu1 %v7960_v8 }
0x1f57   :  { %9963 = vmatprep.subr.mxu1 %v7959_v7 }
0x1f58   :  { %9964 = vmatpush3.msra.mxu1 %v7959_v7 }
0x1fd8   :  { %v7921_v45 = vpop.xlane.xlu0 %7920 }
0x1fd9   :  { %v7925_v38 = vmul.f32 0.03125, %v7921_v45 }
0x1fdb   :  { %v7927_v49 = vsub.f32 %v7917_v60, %v7925_v38 }
0x1fdc   :  { %v7924_v46 = vpop.xlane.xlu1 %7923 }
0x1fdd   :  { %v7926_v50 = vmul.f32 0.03125, %v7924_v46  ;;  %v7929_v53 = vmul.f32 %v7927_v49, %v7927_v49 }
0x1fdf   :  { %v7928_v56 = vsub.f32 %v7918_v41, %v7926_v50  ;;  %v7931_v58 = vsel %vm151_vm2, %v7929_v53, 0.0 }
0x1fe0   :  { %7932 = vadd.xlane.f32.xlu0 %v7931_v58 }
0x1fe1   :  { %v7930_v35 = vmul.f32 %v7928_v56, %v7928_v56 }
0x1fe3   :  { %v7934_v59 = vsel %vm151_vm2, %v7930_v35, 0.0 }
0x1fe4   :  { %7935 = vadd.xlane.f32.xlu1 %v7934_v59 }
0x2069   :  { %v7933_v14 = vpop.xlane.xlu0 %7932 }
0x206a   :  { %v7937_v9 = vmul.f32 0.03125, %v7933_v14  ;;  %v8156_v14 = vmul.f32 %v8154_v3, %v8146_v40 }
0x206c   :  { %v7939_v51 = vadd.f32 1e-05, %v7937_v9 }
0x206d   :  { %v7936_v31 = vpop.xlane.xlu1 %7935 }
0x206e   :  { %10316 = vrsqrt.f32 %v7939_v51  ;;  %v7938_v43 = vmul.f32 0.03125, %v7936_v31 }
0x2070   :  { %v7940_v37 = vadd.f32 1e-05, %v7938_v43 }
0x2072   :  { %10318 = vrsqrt.f32 %v7940_v37 }
0x207b   :  { %v10317_v47 = vpop.eup %10316 }
0x207c   :  { %v7943_v17 = vmul.f32 %v10317_v47, %v7927_v49 }
0x207e   :  { %v7950_v55 = vmul.f32 %v8989_v48, %v7943_v17  ;;  %v8155_v17 = vmul.f32 %v8153_v54, %v8145_v44 }
0x207f   :  { %v10319_v6 = vpop.eup %10318 }
0x2080   :  { %v7944_v16 = vmul.f32 %v10319_v6, %v7928_v56  ;;  %v7957_v32 = vadd.f32 %v8990_v36, %v7950_v55 }
0x2082   :  { %v7951_v57 = vmul.f32 %v8989_v48, %v7944_v16  ;;  %9965 = vmatprep.mubr.msk.f32.mxu1 %vm151_vm2, %v7957_v32  ;;  %9976 = vmatprep.mubr.msk.f32.mxu0 %vm151_vm2, %v7957_v32 }
0x2084   :  { %v7958_v1 = vadd.f32 %v8990_v36, %v7951_v57 }
0x2086   :  { %9966 = vmatmul.mubr.msk.f32.vlgmr.msra.gmra.mxu1 %vm151_vm2, %v7958_v1  ;;  %9977 = vmatmul.mubr.msk.f32.vlgmr.msra.gmra.mxu0 %vm151_vm2, %v7958_v1 }
0x2146   :  { %v9967_v25 = vpop.f32.mrf.mxu1  ;;  %v9978_v10 = vpop.f32.mrf.mxu0 }
0x2147   :  { %v8051_v2 = vadd.f32 %v9967_v25, %v8991_v33  ;;  %v8130_v11 = vadd.f32 %v9978_v10, %v8994_v0 }
0x2148   :  { %v8045_v12 = vpop.f32.mrf.mxu1  ;;  %v8124_v15 = vpop.f32.mrf.mxu0 }
0x2149   :  { %10320 = vtanh.f32 %v8051_v2  ;;  %v8046_v13 = vadd.f32 %v8991_v33, %v8045_v12  ;;  %v8125_v18 = vadd.f32 %v8994_v0, %v8124_v15 }
0x214a   :  { %10322 = vtanh.f32 %v8130_v11 }
0x214b   :  { %10324 = vtanh.f32 %v8046_v13 }
0x214c   :  { %10326 = vtanh.f32 %v8125_v18 }
0x2156   :  { %v10321_v19 = vpop.eup %10320 }
0x2157   :  { %v10323_v26 = vpop.eup %10322  ;;  %8210 = vst.msk [vmem:[%s12338_s7 + $0x8] sm:$0xff] %vm312_vm3, %v10321_v19 }
0x2158   :  { %v10325_v20 = vpop.eup %10324  ;;  %v8136_v21 = vadd.f32 1.0, %v10323_v26 }
0x2159   :  { %v10327_v24 = vpop.eup %10326  ;;  %8209 = vst.msk [vmem:[%s12338_s7] sm:$0xff] %vm312_vm3, %v10325_v20 }
0x215a   :  { %v8138_v52 = vmul.f32 3.5, %v8136_v21  ;;  %v8135_v29 = vadd.f32 1.0, %v10327_v24 }
0x215c   :  { %v8140_v22 = vadd.f32 -5.0, %v8138_v52  ;;  %v8137_v5 = vmul.f32 3.5, %v8135_v29 }
0x215e   :  { %v8143_v30 = vmul.f32 1.442695, %v8140_v22  ;;  %v8139_v63 = vadd.f32 -5.0, %v8137_v5  ;;  %v8158_v36 = vsub.f32 %v8156_v14, %v8140_v22 }
0x2160   :  { %10328 = vpow2.f32 %v8143_v30  ;;  %v8141_v23 = vmul.f32 1.442695, %v8139_v63  ;;  %v8157_v25 = vsub.f32 %v8155_v17, %v8139_v63  ;;  %v8998_v11 = vadd.f32 -0.9189385, %v8158_v36 }
0x2162   :  { %10330 = vpow2.f32 %v8141_v23  ;;  %v8997_v18 = vadd.f32 -0.9189385, %v8157_v25 }
0x216d   :  { %v10329_v39 = vpop.eup %10328 }
0x216e   :  { %v8148_v28 = vmul.f32 %v10329_v39, %v8146_v40 }
0x216f   :  { %v10331_v60 = vpop.eup %10330 }
0x2170   :  { %v8150_v27 = vadd.f32 %v8148_v28, %v8051_v2  ;;  %v8147_v41 = vmul.f32 %v10331_v60, %v8145_v44 }
0x2172   :  { %v8162_v42 = vmul.f32 -2.0, %v8150_v27  ;;  %v8149_v45 = vadd.f32 %v8147_v41, %v8046_v13  ;;  %v8194_v57 = vsub.f32 0.6931472, %v8150_v27 }
0x2174   :  { %v8166_v38 = vand.u32 2147483647, %v8162_v42  ;;  %v8161_v49 = vmul.f32 -2.0, %v8149_v45  ;;  %v8164_v48 = vmax.f32 %v8162_v42, 0.0  ;;  %v8193_v2 = vsub.f32 0.6931472, %v8149_v45 }
0x2176   :  { %v8168_v46 = vsub.f32 0.0, %v8166_v38  ;;  %v8165_v50 = vand.u32 2147483647, %v8161_v49  ;;  %v8163_v1 = vmax.f32 %v8161_v49, 0.0 }
0x2178   :  { %v8171_v53 = vmul.f32 1.442695, %v8168_v46  ;;  %v8167_v56 = vsub.f32 0.0, %v8165_v50 }
0x217a   :  { %10332 = vpow2.f32 %v8171_v53  ;;  %v8169_v58 = vmul.f32 1.442695, %v8167_v56 }
0x217c   :  { %10334 = vpow2.f32 %v8169_v58 }
0x2187   :  { %v10333_v35 = vpop.eup %10332 }
0x2188   :  { %v8182_v59 = vadd.f32 1.0, %v10333_v35  ;;  %v8185_v62 = vmul.f32 -0.5, %v10333_v35  ;;  %v8188_v7 = vand.u32 2147483647, %v10333_v35 }
0x2189   :  { %v10335_v34 = vpop.eup %10334 }
0x218a   :  { %10336 = vlog2.f32 %v8182_v59  ;;  %v8173_v61 = vadd.f32 1.0, %v10335_v34  ;;  %v8176_v8 = vmul.f32 -0.5, %v10335_v34  ;;  %v8186_v4 = vadd.f32 1.0, %v8185_v62 }
0x218b   :  { %v8179_v31 = vand.u32 2147483647, %v10335_v34  ;;  %vm8189_vm6 = vcmp.lt.f32.partialorder %v8188_v7, 0.0004427343 }
0x218c   :  { %10338 = vlog2.f32 %v8173_v61  ;;  %v8177_v9 = vadd.f32 1.0, %v8176_v8  ;;  %v8187_v37 = vmul.f32 %v10333_v35, %v8186_v4 }
0x218d   :  { %vm8180_vm7 = vcmp.lt.f32.partialorder %v8179_v31, 0.0004427343  ;;  %10340 = vtanh.f32 %v8150_v27 }
0x218e   :  { %v8178_v16 = vmul.f32 %v10335_v34, %v8177_v9  ;;  %10342 = vtanh.f32 %v8149_v45 }
0x2197   :  { %v10337_v51 = vpop.eup %10336 }
0x2198   :  { %v8184_v43 = vmul.f32 0.6931472, %v10337_v51 }
0x2199   :  { %v10339_v47 = vpop.eup %10338 }
0x219a   :  { %v8190_v55 = vsel %vm8189_vm6, %v8187_v37, %v8184_v43  ;;  %v8175_v6 = vmul.f32 0.6931472, %v10339_v47  ;;  %v10341_v24 = vpop.eup %10340 }
0x219b   :  { %v8192_v32 = vadd.f32 %v8190_v55, %v8164_v48  ;;  %v10343_v52 = vpop.eup %10342 }
0x219c   :  { %v8181_v33 = vsel %vm8180_vm7, %v8178_v16, %v8175_v6 }
0x219d   :  { %v8196_v0 = vsub.f32 %v8194_v57, %v8192_v32  ;;  %v8191_v10 = vadd.f32 %v8181_v33, %v8163_v1 }
0x219f   :  { %v8198_v12 = vmul.f32 2.0, %v8196_v0  ;;  %v8195_v15 = vsub.f32 %v8193_v2, %v8191_v10 }
0x21a1   :  { %v8200_v13 = vsub.f32 %v8998_v11, %v8198_v12  ;;  %v8197_v19 = vmul.f32 2.0, %v8195_v15 }
0x21a3   :  { %v8204_v26 = vsel %vm312_vm3, %v8200_v13, 0.0  ;;  %v8199_v20 = vsub.f32 %v8997_v18, %v8197_v19 }
0x21a4   :  { %8205 = vadd.xlane.f32.xlu1 %v8204_v26 }
0x21a5   :  { %v8201_v21 = vsel %vm312_vm3, %v8199_v20, 0.0 }
0x21a6   :  { %8202 = vadd.xlane.f32.xlu0 %v8201_v21 }
0x21b5   :  { %8215 = vrot.lane.b32.xlu1 %v10341_v24, %s10348_s1 }
0x21bc   :  { %8213 = vrot.lane.b32.xlu0 %v10343_v52, %s10348_s1 }
0x222d   :  { %v8206_v29 = vpop.xlane.xlu1 %8205 }
0x222f   :  { %v8203_v22 = vpop.xlane.xlu0 %8202 }
0x2231   :  { %v8216_v5 = vpop.permute.xlu1 %8215 }
0x2232   :  { %8221 = vst.msk [vmem:[%s12338_s7 + $0x8] sm:$0xff] %vm8219_vm8, %v8216_v5 }
0x2233   :  { %8224 = vst.msk [vmem:[%s12338_s7 + $0x8] sm:$0xff] %vm8222_vm9, %v8206_v29  ;;  %v8214_v30 = vpop.permute.xlu0 %8213 }
0x2234   :  { %8220 = vst.msk [vmem:[%s12338_s7] sm:$0xff] %vm8219_vm8, %v8214_v30 }
0x2235   :  { %8223 = vst.msk [vmem:[%s12338_s7] sm:$0xff] %vm8222_vm9, %v8203_v22 }

</bundles_post_ra>
